<compile_context>
chip_gen: v7x
topology: tpu7x:2x2x1
jax: 0.10.0
libtpu: 0.0.40
codegen_flags: <defaults>
</compile_context>

<pallas_src>
import jax
import jax.numpy as jnp
import numpy as np
from jax.experimental import pallas as pl
from jax.experimental.pallas import tpu as pltpu

CHANNEL_STRUCTURE = [16, 32, 32]       # channel_structure (before n_channels insert)
CONV_STRUCTURE = [1, 2, 2]             # convolution_structure
CLASSIFICATION_STRUCTURE = [32, 32]    # classification_structure
N_CHANNELS = 4
N_CLASSES = 2                          # -> final_n = 1


# -----------------------------------------------------------------------------
# In-kernel helpers.  Activation layout everywhere: (channels, N*H*W) with the
# flattened batch*spatial index q = n*H*W + h*W + w on the lane axis.
def _shift_lanes(x, off):
    """out[:, q] = x[:, q + off], zero-filled where q + off is out of range."""
    c, m = x.shape
    if off == 0:
        return x
    z = jnp.zeros((c, abs(off)), x.dtype)
    if off > 0:
        return jnp.concatenate([x[:, off:], z], axis=1)
    return jnp.concatenate([z, x[:, :m + off]], axis=1)


def _conv3x3_relu_t(x, w_t, b_t, patches_ref, h, wd):
    """3x3 conv (pad=1) + bias + ReLU on transposed activations.

    x:           (Cin, M) with M = N*H*W
    w_t:         (Cout, 9*Cin)   taps flattened (dy, dx, cin) row-major
    b_t:         (Cout, 1)
    patches_ref: VMEM scratch, at least (9*Cin, M)
    """
    cin, m = x.shape
    hw = h * wd
    # H, W are powers of two (16/8/4 here) so index math can use bit ops.
    assert (wd & (wd - 1)) == 0 and (hw & (hw - 1)) == 0
    lshift = wd.bit_length() - 1
    q = jax.lax.broadcasted_iota(jnp.int32, (cin, m), 1)
    col = q & (wd - 1)                       # w coordinate of output pixel
    row = (q & (hw - 1)) >> lshift           # h coordinate of output pixel

    t = 0
    for dy in (-1, 0, 1):
        for dx in (-1, 0, 1):
            off = dy * wd + dx
            tap = _shift_lanes(x, off)       # x[:, q + off]
            conds = []
            if dx < 0:
                conds.append(col >= -dx)     # w + dx >= 0
            if dx > 0:
                conds.append(col < wd - dx)  # w + dx < W
            if dy < 0:
                conds.append(row >= -dy)     # h + dy >= 0
            if dy > 0:
                conds.append(row < h - dy)   # h + dy < H
            if conds:
                valid = conds[0]
                for cnd in conds[1:]:
                    valid = valid & cnd
                tap = jnp.where(valid, tap, 0.0)
            patches_ref[t * cin:(t + 1) * cin, :m] = tap
            t += 1

    patches = patches_ref[:9 * cin, :m]                      # (9*Cin, M)
    y = jnp.dot(w_t, patches, preferred_element_type=jnp.float32) + b_t
    return jnp.maximum(y, 0.0)


# TODO(synk): vgg_block internals are not shown in the reference; assumed
#   [Conv(k=3, pad=1) + ReLU] x size, followed by MaxPool(kernel=2, stride=2)
#   (maxpool_structure=None default).
def _maxpool2_t(x, pmat_t, wd):
    """2x2 / stride-2 max pool.  x: (C, N*H*W); pmat_t: (N*H*W, N*Ho*Wo) 0/1."""
    m1 = jnp.maximum(x, _shift_lanes(x, 1))    # pairwise max along w
    m2 = jnp.maximum(m1, _shift_lanes(m1, wd))  # pairwise max along h
    # Downsample (select top-left of every 2x2 window) with a selection matmul.
    return jnp.dot(m2, pmat_t, preferred_element_type=jnp.float32)


def _bn_gelu_t(hcn, gamma, beta, eps=1e-5):
    """BatchNorm1d (training-mode batch stats) + GELU on (features, batch)."""
    # TODO(synk): training-mode batch statistics assumed (eval-mode running
    #   stats are not representable without extra state).
    mu = jnp.mean(hcn, axis=1, keepdims=True)
    var = jnp.mean(jnp.square(hcn - mu), axis=1, keepdims=True)
    hn = (hcn - mu) * jax.lax.rsqrt(var + eps) * gamma + beta
    # TODO(synk): nn.GELU default is the exact erf formulation; tanh-approx
    #   GELU is used here for a Mosaic-safe transcendental path.
    k = 0.7978845608028654  # sqrt(2/pi)
    return 0.5 * hn * (1.0 + jnp.tanh(k * (hn + 0.044715 * hn * hn * hn)))


def _build_vgg_kernel(h0, w0, conv_structure, n_hidden):
    """Builds the fully fused forward kernel.

    Ref order: x, then per block [ (w, b) per conv ..., pool_matrix ],
    then gpool_matrix, then per hidden layer (w, b, gamma, beta),
    then (w_final, b_final), then out_ref, then patches scratch.
    """
    def kernel(*refs):
        patches_ref = refs[-1]
        out_ref = refs[-2]
        it = iter(refs[:-2])

        x = next(it)[...]                          # (Cin0, N*H0*W0)
        hh, ww = h0, w0
        for n_convs in conv_structure:             # self.body
            for _ in range(n_convs):
                w_t = next(it)[...]
                b_t = next(it)[...]
                x = _conv3x3_relu_t(x, w_t, b_t, patches_ref, hh, ww)
            pmat_t = next(it)[...]
            x = _maxpool2_t(x, pmat_t, ww)
            hh //= 2
            ww //= 2

        # GlobalPooling (spatial mean) as a tiny averaging matmul -> (C, N).
        gmat_t = next(it)[...]
        h = jnp.dot(x, gmat_t, preferred_element_type=jnp.float32)

        # MLP head: Linear -> BN -> GELU (x n_hidden), then final Linear.
        for _ in range(n_hidden):
            w_t = next(it)[...]
            b_t = next(it)[...]
            gm = next(it)[...]
            bt = next(it)[...]
            h = jnp.dot(w_t, h, preferred_element_type=jnp.float32) + b_t
            h = _bn_gelu_t(h, gm, bt)
        w_t = next(it)[...]
        b_t = next(it)[...]
        out_ref[...] = (jnp.dot(w_t, h, preferred_element_type=jnp.float32)
                        + b_t).astype(out_ref.dtype)

    return kernel


# -----------------------------------------------------------------------------
# Host-built constant selection / averaging matrices (tiny, traced as consts).
def _pool_select_matrix_t(n, h, w):
    """(N*H*W, N*Ho*Wo) 0/1 matrix selecting the top-left of each 2x2 window."""
    ho, wo = h // 2, w // 2
    rows_out = n * ho * wo
    out_idx = np.arange(rows_out)
    wo_i = out_idx % wo
    ho_i = (out_idx // wo) % ho
    n_i = out_idx // (ho * wo)
    src = n_i * h * w + 2 * ho_i * w + 2 * wo_i
    p = np.zeros((n * h * w, rows_out), np.float32)
    p[src, out_idx] = 1.0
    return jnp.asarray(p)


def _global_pool_matrix_t(n, hw):
    """(N*hw, N) averaging matrix: per-batch spatial mean."""
    g = np.zeros((n * hw, n), np.float32)
    for i in range(n):
        g[i * hw:(i + 1) * hw, i] = 1.0 / hw
    return jnp.asarray(g)


# -----------------------------------------------------------------------------
def init_params(key):
    """Deterministic synthetic parameters (shapes follow the module __init__)."""
    chans = [N_CHANNELS] + list(CHANNEL_STRUCTURE)
    params = {"blocks": []}
    for i, n_convs in enumerate(CONV_STRUCTURE):
        convs = []
        cin, cout = chans[i], chans[i + 1]
        for j in range(n_convs):
            key, kw = jax.random.split(key)
            c_in = cin if j == 0 else cout
            wgt = jax.random.normal(kw, (3, 3, c_in, cout), jnp.float32) \
                * (2.0 / (9 * c_in)) ** 0.5
            bias = jnp.zeros((cout,), jnp.float32)
            convs.append((wgt, bias))
        params["blocks"].append(convs)

    dims = [CHANNEL_STRUCTURE[-1]] + list(CLASSIFICATION_STRUCTURE)
    head = {}
    for li in range(len(CLASSIFICATION_STRUCTURE)):
        key, kw = jax.random.split(key)
        head[f"w{li + 1}"] = jax.random.normal(
            kw, (dims[li], dims[li + 1]), jnp.float32) * (1.0 / dims[li]) ** 0.5
        head[f"b{li + 1}"] = jnp.zeros((1, dims[li + 1]), jnp.float32)
        head[f"g{li + 1}"] = jnp.ones((1, dims[li + 1]), jnp.float32)
        head[f"be{li + 1}"] = jnp.zeros((1, dims[li + 1]), jnp.float32)
    final_n = 1 if N_CLASSES == 2 else N_CLASSES
    key, kw = jax.random.split(key)
    head["w3"] = jax.random.normal(
        kw, (dims[-1], final_n), jnp.float32) * (1.0 / dims[-1]) ** 0.5
    head["b3"] = jnp.zeros((1, final_n), jnp.float32)
    params["head"] = head
    return params


def vgg_forward(x_nchw, params):
    n, cin0, h0, w0 = x_nchw.shape
    # NCHW -> (C, N*H*W) transposed/flattened layout (the only HBM-side glue).
    x_t = jnp.transpose(x_nchw, (1, 0, 2, 3)).astype(jnp.float32) \
             .reshape(cin0, n * h0 * w0)

    args = [x_t]
    max_k, max_m = 8, 128
    hh, ww = h0, w0
    for convs in params["blocks"]:
        m = n * hh * ww
        for wgt, bias in convs:
            kh, kw, ci, co = wgt.shape
            # (3,3,Cin,Cout) -> (Cout, 9*Cin), taps row-major over (dy, dx, ci).
            args.append(jnp.transpose(wgt.reshape(kh * kw * ci, co)))
            args.append(bias.reshape(co, 1))
            max_k = max(max_k, kh * kw * ci)
            max_m = max(max_m, m)
        args.append(_pool_select_matrix_t(n, hh, ww))
        hh //= 2
        ww //= 2
    args.append(_global_pool_matrix_t(n, hh * ww))

    head = params["head"]
    n_hidden = len(CLASSIFICATION_STRUCTURE)
    for li in range(1, n_hidden + 1):
        args.append(jnp.transpose(head[f"w{li}"]))       # (out, in)
        args.append(head[f"b{li}"].reshape(-1, 1))
        args.append(head[f"g{li}"].reshape(-1, 1))
        args.append(head[f"be{li}"].reshape(-1, 1))
    final_n = head[f"w{n_hidden + 1}"].shape[-1]
    args.append(jnp.transpose(head[f"w{n_hidden + 1}"]))
    args.append(head[f"b{n_hidden + 1}"].reshape(-1, 1))

    kernel = _build_vgg_kernel(h0, w0, CONV_STRUCTURE, n_hidden)
    out_t = pl.pallas_call(
        kernel,
        out_shape=jax.ShapeDtypeStruct((final_n, n), jnp.float32),
        scratch_shapes=[pltpu.VMEM((max_k, max_m), jnp.float32)],
    )(*args)
    # (final_n, N) -> (N, final_n) raw logits
    # (last_act Sigmoid is NOT applied by the reference forward).
    return out_t.T


if __name__ == "__main__":
    key = jax.random.PRNGKey(0)
    kx, kp = jax.random.split(key)
    x = jax.random.normal(kx, (2, N_CHANNELS, 16, 16), jnp.float32)  # NCHW input
    params = init_params(kp)
    out = jax.jit(vgg_forward)(x, params)
    out = jax.block_until_ready(out)
    assert out.shape == (2, 1), out.shape
    assert bool(jnp.all(jnp.isfinite(out)))
    print("KERNEL_OK")
</pallas_src>

<mosaic_0001>
module attributes {stable_mosaic.version = 11 : i64} {
  func.func @kernel(%arg0: memref<4x512xf32, #tpu.memory_space<vmem>>, %arg1: memref<16x36xf32, #tpu.memory_space<vmem>>, %arg2: memref<16x1xf32, #tpu.memory_space<vmem>>, %arg3: memref<512x128xf32, #tpu.memory_space<vmem>>, %arg4: memref<32x144xf32, #tpu.memory_space<vmem>>, %arg5: memref<32x1xf32, #tpu.memory_space<vmem>>, %arg6: memref<32x288xf32, #tpu.memory_space<vmem>>, %arg7: memref<32x1xf32, #tpu.memory_space<vmem>>, %arg8: memref<128x32xf32, #tpu.memory_space<vmem>>, %arg9: memref<32x288xf32, #tpu.memory_space<vmem>>, %arg10: memref<32x1xf32, #tpu.memory_space<vmem>>, %arg11: memref<32x288xf32, #tpu.memory_space<vmem>>, %arg12: memref<32x1xf32, #tpu.memory_space<vmem>>, %arg13: memref<32x8xf32, #tpu.memory_space<vmem>>, %arg14: memref<8x2xf32, #tpu.memory_space<vmem>>, %arg15: memref<32x32xf32, #tpu.memory_space<vmem>>, %arg16: memref<32x1xf32, #tpu.memory_space<vmem>>, %arg17: memref<32x1xf32, #tpu.memory_space<vmem>>, %arg18: memref<32x1xf32, #tpu.memory_space<vmem>>, %arg19: memref<32x32xf32, #tpu.memory_space<vmem>>, %arg20: memref<32x1xf32, #tpu.memory_space<vmem>>, %arg21: memref<32x1xf32, #tpu.memory_space<vmem>>, %arg22: memref<32x1xf32, #tpu.memory_space<vmem>>, %arg23: memref<1x32xf32, #tpu.memory_space<vmem>>, %arg24: memref<1x1xf32, #tpu.memory_space<vmem>>, %arg25: memref<1x2xf32, #tpu.memory_space<vmem>>, %arg26: memref<288x512xf32, #tpu.memory_space<vmem>>) attributes {dimension_semantics = [], scalar_prefetch = 0 : i64, scratch_operands = 1 : i64, tpu.core_type = #tpu.core_type<tc>} {
    %c0 = arith.constant 0 : index
    %c0_0 = arith.constant 0 : index
    %0 = vector.load %arg0[%c0, %c0_0] : memref<4x512xf32, #tpu.memory_space<vmem>>, vector<4x512xf32>
    %c0_1 = arith.constant 0 : index
    %c0_2 = arith.constant 0 : index
    %1 = vector.load %arg1[%c0_1, %c0_2] : memref<16x36xf32, #tpu.memory_space<vmem>>, vector<16x36xf32>
    %c0_3 = arith.constant 0 : index
    %c0_4 = arith.constant 0 : index
    %2 = vector.load %arg2[%c0_3, %c0_4] : memref<16x1xf32, #tpu.memory_space<vmem>>, vector<16x1xf32>
    %3 = tpu.iota {dimensions = array<i32: 1>} : vector<4x512xi32>
    %c15_i32 = arith.constant 15 : i32
    %4 = vector.broadcast %c15_i32 : i32 to vector<4x512xi32>
    %5 = arith.andi %3, %4 : vector<4x512xi32>
    %c255_i32 = arith.constant 255 : i32
    %6 = vector.broadcast %c255_i32 : i32 to vector<4x512xi32>
    %7 = arith.andi %3, %6 : vector<4x512xi32>
    %c4_i32 = arith.constant 4 : i32
    %8 = vector.broadcast %c4_i32 : i32 to vector<4x512xi32>
    %9 = arith.shrsi %7, %8 : vector<4x512xi32>
    %cst = arith.constant 0.000000e+00 : f32
    %10 = vector.broadcast %cst : f32 to vector<4x17xf32>
    %11 = vector.extract_strided_slice %0 {offsets = [0, 0], sizes = [4, 495], strides = [1, 1]} : vector<4x512xf32> to vector<4x495xf32>
    %12 = tpu.concatenate %10, %11 in 1 : vector<4x17xf32>, vector<4x495xf32> -> vector<4x512xf32>
    %c1_i32 = arith.constant 1 : i32
    %13 = vector.broadcast %c1_i32 : i32 to vector<4x512xi32>
    %14 = arith.cmpi sge, %5, %13 : vector<4x512xi32>
    %c1_i32_5 = arith.constant 1 : i32
    %15 = vector.broadcast %c1_i32_5 : i32 to vector<4x512xi32>
    %16 = arith.cmpi sge, %9, %15 : vector<4x512xi32>
    %17 = arith.andi %14, %16 : vector<4x512xi1>
    %cst_6 = arith.constant 0.000000e+00 : f32
    %18 = vector.broadcast %cst_6 : f32 to vector<4x512xf32>
    %19 = arith.select %17, %12, %18 : vector<4x512xi1>, vector<4x512xf32>
    %c0_7 = arith.constant 0 : index
    %c0_8 = arith.constant 0 : index
    %20 = vector.load %arg26[%c0_7, %c0_8] : memref<288x512xf32, #tpu.memory_space<vmem>>, vector<4x512xf32>
    tpu.vector_store %arg26[%c0_7, %c0_8], %19 {strides = array<i32>} : memref<288x512xf32, #tpu.memory_space<vmem>>, vector<4x512xf32>,
    %cst_9 = arith.constant 0.000000e+00 : f32
    %21 = vector.broadcast %cst_9 : f32 to vector<4x16xf32>
    %22 = vector.extract_strided_slice %0 {offsets = [0, 0], sizes = [4, 496], strides = [1, 1]} : vector<4x512xf32> to vector<4x496xf32>
    %23 = tpu.concatenate %21, %22 in 1 : vector<4x16xf32>, vector<4x496xf32> -> vector<4x512xf32>
    %c1_i32_10 = arith.constant 1 : i32
    %24 = vector.broadcast %c1_i32_10 : i32 to vector<4x512xi32>
    %25 = arith.cmpi sge, %9, %24 : vector<4x512xi32>
    %cst_11 = arith.constant 0.000000e+00 : f32
    %26 = vector.broadcast %cst_11 : f32 to vector<4x512xf32>
    %27 = arith.select %25, %23, %26 : vector<4x512xi1>, vector<4x512xf32>
    %c4 = arith.constant 4 : index
    %c0_12 = arith.constant 0 : index
    %28 = vector.load %arg26[%c4, %c0_12] : memref<288x512xf32, #tpu.memory_space<vmem>>, vector<4x512xf32>
    tpu.vector_store %arg26[%c4, %c0_12], %27 {strides = array<i32>} : memref<288x512xf32, #tpu.memory_space<vmem>>, vector<4x512xf32>,
    %cst_13 = arith.constant 0.000000e+00 : f32
    %29 = vector.broadcast %cst_13 : f32 to vector<4x15xf32>
    %30 = vector.extract_strided_slice %0 {offsets = [0, 0], sizes = [4, 497], strides = [1, 1]} : vector<4x512xf32> to vector<4x497xf32>
    %31 = tpu.concatenate %29, %30 in 1 : vector<4x15xf32>, vector<4x497xf32> -> vector<4x512xf32>
    %c15_i32_14 = arith.constant 15 : i32
    %32 = vector.broadcast %c15_i32_14 : i32 to vector<4x512xi32>
    %33 = arith.cmpi slt, %5, %32 : vector<4x512xi32>
    %c1_i32_15 = arith.constant 1 : i32
    %34 = vector.broadcast %c1_i32_15 : i32 to vector<4x512xi32>
    %35 = arith.cmpi sge, %9, %34 : vector<4x512xi32>
    %36 = arith.andi %33, %35 : vector<4x512xi1>
    %cst_16 = arith.constant 0.000000e+00 : f32
    %37 = vector.broadcast %cst_16 : f32 to vector<4x512xf32>
    %38 = arith.select %36, %31, %37 : vector<4x512xi1>, vector<4x512xf32>
    %c8 = arith.constant 8 : index
    %c0_17 = arith.constant 0 : index
    %39 = vector.load %arg26[%c8, %c0_17] : memref<288x512xf32, #tpu.memory_space<vmem>>, vector<4x512xf32>
    tpu.vector_store %arg26[%c8, %c0_17], %38 {strides = array<i32>} : memref<288x512xf32, #tpu.memory_space<vmem>>, vector<4x512xf32>,
    %cst_18 = arith.constant 0.000000e+00 : f32
    %40 = vector.broadcast %cst_18 : f32 to vector<4x1xf32>
    %41 = vector.extract_strided_slice %0 {offsets = [0, 0], sizes = [4, 511], strides = [1, 1]} : vector<4x512xf32> to vector<4x511xf32>
    %42 = tpu.concatenate %40, %41 in 1 : vector<4x1xf32>, vector<4x511xf32> -> vector<4x512xf32>
    %c1_i32_19 = arith.constant 1 : i32
    %43 = vector.broadcast %c1_i32_19 : i32 to vector<4x512xi32>
    %44 = arith.cmpi sge, %5, %43 : vector<4x512xi32>
    %cst_20 = arith.constant 0.000000e+00 : f32
    %45 = vector.broadcast %cst_20 : f32 to vector<4x512xf32>
    %46 = arith.select %44, %42, %45 : vector<4x512xi1>, vector<4x512xf32>
    %c12 = arith.constant 12 : index
    %c0_21 = arith.constant 0 : index
    %47 = vector.load %arg26[%c12, %c0_21] : memref<288x512xf32, #tpu.memory_space<vmem>>, vector<4x512xf32>
    tpu.vector_store %arg26[%c12, %c0_21], %46 {strides = array<i32>} : memref<288x512xf32, #tpu.memory_space<vmem>>, vector<4x512xf32>,
    %c16 = arith.constant 16 : index
    %c0_22 = arith.constant 0 : index
    %48 = vector.load %arg26[%c16, %c0_22] : memref<288x512xf32, #tpu.memory_space<vmem>>, vector<4x512xf32>
    tpu.vector_store %arg26[%c16, %c0_22], %0 {strides = array<i32>} : memref<288x512xf32, #tpu.memory_space<vmem>>, vector<4x512xf32>,
    %cst_23 = arith.constant 0.000000e+00 : f32
    %49 = vector.broadcast %cst_23 : f32 to vector<4x1xf32>
    %50 = vector.extract_strided_slice %0 {offsets = [0, 1], sizes = [4, 511], strides = [1, 1]} : vector<4x512xf32> to vector<4x511xf32>
    %51 = tpu.concatenate %50, %49 in 1 : vector<4x511xf32>, vector<4x1xf32> -> vector<4x512xf32>
    %c15_i32_24 = arith.constant 15 : i32
    %52 = vector.broadcast %c15_i32_24 : i32 to vector<4x512xi32>
    %53 = arith.cmpi slt, %5, %52 : vector<4x512xi32>
    %cst_25 = arith.constant 0.000000e+00 : f32
    %54 = vector.broadcast %cst_25 : f32 to vector<4x512xf32>
    %55 = arith.select %53, %51, %54 : vector<4x512xi1>, vector<4x512xf32>
    %c20 = arith.constant 20 : index
    %c0_26 = arith.constant 0 : index
    %56 = vector.load %arg26[%c20, %c0_26] : memref<288x512xf32, #tpu.memory_space<vmem>>, vector<4x512xf32>
    tpu.vector_store %arg26[%c20, %c0_26], %55 {strides = array<i32>} : memref<288x512xf32, #tpu.memory_space<vmem>>, vector<4x512xf32>,
    %cst_27 = arith.constant 0.000000e+00 : f32
    %57 = vector.broadcast %cst_27 : f32 to vector<4x15xf32>
    %58 = vector.extract_strided_slice %0 {offsets = [0, 15], sizes = [4, 497], strides = [1, 1]} : vector<4x512xf32> to vector<4x497xf32>
    %59 = tpu.concatenate %58, %57 in 1 : vector<4x497xf32>, vector<4x15xf32> -> vector<4x512xf32>
    %c1_i32_28 = arith.constant 1 : i32
    %60 = vector.broadcast %c1_i32_28 : i32 to vector<4x512xi32>
    %61 = arith.cmpi sge, %5, %60 : vector<4x512xi32>
    %c15_i32_29 = arith.constant 15 : i32
    %62 = vector.broadcast %c15_i32_29 : i32 to vector<4x512xi32>
    %63 = arith.cmpi slt, %9, %62 : vector<4x512xi32>
    %64 = arith.andi %61, %63 : vector<4x512xi1>
    %cst_30 = arith.constant 0.000000e+00 : f32
    %65 = vector.broadcast %cst_30 : f32 to vector<4x512xf32>
    %66 = arith.select %64, %59, %65 : vector<4x512xi1>, vector<4x512xf32>
    %c24 = arith.constant 24 : index
    %c0_31 = arith.constant 0 : index
    %67 = vector.load %arg26[%c24, %c0_31] : memref<288x512xf32, #tpu.memory_space<vmem>>, vector<4x512xf32>
    tpu.vector_store %arg26[%c24, %c0_31], %66 {strides = array<i32>} : memref<288x512xf32, #tpu.memory_space<vmem>>, vector<4x512xf32>,
    %cst_32 = arith.constant 0.000000e+00 : f32
    %68 = vector.broadcast %cst_32 : f32 to vector<4x16xf32>
    %69 = vector.extract_strided_slice %0 {offsets = [0, 16], sizes = [4, 496], strides = [1, 1]} : vector<4x512xf32> to vector<4x496xf32>
    %70 = tpu.concatenate %69, %68 in 1 : vector<4x496xf32>, vector<4x16xf32> -> vector<4x512xf32>
    %c15_i32_33 = arith.constant 15 : i32
    %71 = vector.broadcast %c15_i32_33 : i32 to vector<4x512xi32>
    %72 = arith.cmpi slt, %9, %71 : vector<4x512xi32>
    %cst_34 = arith.constant 0.000000e+00 : f32
    %73 = vector.broadcast %cst_34 : f32 to vector<4x512xf32>
    %74 = arith.select %72, %70, %73 : vector<4x512xi1>, vector<4x512xf32>
    %c28 = arith.constant 28 : index
    %c0_35 = arith.constant 0 : index
    %75 = vector.load %arg26[%c28, %c0_35] : memref<288x512xf32, #tpu.memory_space<vmem>>, vector<4x512xf32>
    tpu.vector_store %arg26[%c28, %c0_35], %74 {strides = array<i32>} : memref<288x512xf32, #tpu.memory_space<vmem>>, vector<4x512xf32>,
    %cst_36 = arith.constant 0.000000e+00 : f32
    %76 = vector.broadcast %cst_36 : f32 to vector<4x17xf32>
    %77 = vector.extract_strided_slice %0 {offsets = [0, 17], sizes = [4, 495], strides = [1, 1]} : vector<4x512xf32> to vector<4x495xf32>
    %78 = tpu.concatenate %77, %76 in 1 : vector<4x495xf32>, vector<4x17xf32> -> vector<4x512xf32>
    %c15_i32_37 = arith.constant 15 : i32
    %79 = vector.broadcast %c15_i32_37 : i32 to vector<4x512xi32>
    %80 = arith.cmpi slt, %5, %79 : vector<4x512xi32>
    %c15_i32_38 = arith.constant 15 : i32
    %81 = vector.broadcast %c15_i32_38 : i32 to vector<4x512xi32>
    %82 = arith.cmpi slt, %9, %81 : vector<4x512xi32>
    %83 = arith.andi %80, %82 : vector<4x512xi1>
    %cst_39 = arith.constant 0.000000e+00 : f32
    %84 = vector.broadcast %cst_39 : f32 to vector<4x512xf32>
    %85 = arith.select %83, %78, %84 : vector<4x512xi1>, vector<4x512xf32>
    %c32 = arith.constant 32 : index
    %c0_40 = arith.constant 0 : index
    %86 = vector.load %arg26[%c32, %c0_40] : memref<288x512xf32, #tpu.memory_space<vmem>>, vector<4x512xf32>
    tpu.vector_store %arg26[%c32, %c0_40], %85 {strides = array<i32>} : memref<288x512xf32, #tpu.memory_space<vmem>>, vector<4x512xf32>,
    %c0_41 = arith.constant 0 : index
    %c0_42 = arith.constant 0 : index
    %87 = vector.load %arg26[%c0_41, %c0_42] : memref<288x512xf32, #tpu.memory_space<vmem>>, vector<36x512xf32>
    %cst_43 = arith.constant dense<0.000000e+00> : vector<16x512xf32>
    %88 = tpu.matmul %1, %87, %cst_43 {dimension_numbers = #tpu.dot_dimension_numbers<[1], [0], [0], [1], [0, 0, 1, 1], [], []>} : vector<16x36xf32>, vector<36x512xf32>, vector<16x512xf32> -> vector<16x512xf32>
    %89 = vector.broadcast %2 : vector<16x1xf32> to vector<16x512xf32>
    %90 = arith.addf %88, %89 : vector<16x512xf32>
    %cst_44 = arith.constant 0.000000e+00 : f32
    %91 = vector.broadcast %cst_44 : f32 to vector<16x512xf32>
    %92 = arith.maximumf %90, %91 : vector<16x512xf32>
    %c0_45 = arith.constant 0 : index
    %c0_46 = arith.constant 0 : index
    %93 = vector.load %arg3[%c0_45, %c0_46] : memref<512x128xf32, #tpu.memory_space<vmem>>, vector<512x128xf32>
    %cst_47 = arith.constant 0.000000e+00 : f32
    %94 = vector.broadcast %cst_47 : f32 to vector<16x1xf32>
    %95 = vector.extract_strided_slice %92 {offsets = [0, 1], sizes = [16, 511], strides = [1, 1]} : vector<16x512xf32> to vector<16x511xf32>
    %96 = tpu.concatenate %95, %94 in 1 : vector<16x511xf32>, vector<16x1xf32> -> vector<16x512xf32>
    %97 = arith.maximumf %92, %96 : vector<16x512xf32>
    %cst_48 = arith.constant 0.000000e+00 : f32
    %98 = vector.broadcast %cst_48 : f32 to vector<16x16xf32>
    %99 = vector.extract_strided_slice %97 {offsets = [0, 16], sizes = [16, 496], strides = [1, 1]} : vector<16x512xf32> to vector<16x496xf32>
    %100 = tpu.concatenate %99, %98 in 1 : vector<16x496xf32>, vector<16x16xf32> -> vector<16x512xf32>
    %101 = arith.maximumf %97, %100 : vector<16x512xf32>
    %cst_49 = arith.constant dense<0.000000e+00> : vector<16x128xf32>
    %102 = tpu.matmul %101, %93, %cst_49 {dimension_numbers = #tpu.dot_dimension_numbers<[1], [0], [0], [1], [0, 0, 1, 1], [], []>} : vector<16x512xf32>, vector<512x128xf32>, vector<16x128xf32> -> vector<16x128xf32>
    %c0_50 = arith.constant 0 : index
    %c0_51 = arith.constant 0 : index
    %103 = vector.load %arg4[%c0_50, %c0_51] : memref<32x144xf32, #tpu.memory_space<vmem>>, vector<32x144xf32>
    %c0_52 = arith.constant 0 : index
    %c0_53 = arith.constant 0 : index
    %104 = vector.load %arg5[%c0_52, %c0_53] : memref<32x1xf32, #tpu.memory_space<vmem>>, vector<32x1xf32>
    %105 = tpu.iota {dimensions = array<i32: 1>} : vector<16x128xi32>
    %c7_i32 = arith.constant 7 : i32
    %106 = vector.broadcast %c7_i32 : i32 to vector<16x128xi32>
    %107 = arith.andi %105, %106 : vector<16x128xi32>
    %c63_i32 = arith.constant 63 : i32
    %108 = vector.broadcast %c63_i32 : i32 to vector<16x128xi32>
    %109 = arith.andi %105, %108 : vector<16x128xi32>
    %c3_i32 = arith.constant 3 : i32
    %110 = vector.broadcast %c3_i32 : i32 to vector<16x128xi32>
    %111 = arith.shrsi %109, %110 : vector<16x128xi32>
    %cst_54 = arith.constant 0.000000e+00 : f32
    %112 = vector.broadcast %cst_54 : f32 to vector<16x9xf32>
    %113 = vector.extract_strided_slice %102 {offsets = [0, 0], sizes = [16, 119], strides = [1, 1]} : vector<16x128xf32> to vector<16x119xf32>
    %114 = tpu.concatenate %112, %113 in 1 : vector<16x9xf32>, vector<16x119xf32> -> vector<16x128xf32>
    %c1_i32_55 = arith.constant 1 : i32
    %115 = vector.broadcast %c1_i32_55 : i32 to vector<16x128xi32>
    %116 = arith.cmpi sge, %107, %115 : vector<16x128xi32>
    %c1_i32_56 = arith.constant 1 : i32
    %117 = vector.broadcast %c1_i32_56 : i32 to vector<16x128xi32>
    %118 = arith.cmpi sge, %111, %117 : vector<16x128xi32>
    %119 = arith.andi %116, %118 : vector<16x128xi1>
    %cst_57 = arith.constant 0.000000e+00 : f32
    %120 = vector.broadcast %cst_57 : f32 to vector<16x128xf32>
    %121 = arith.select %119, %114, %120 : vector<16x128xi1>, vector<16x128xf32>
    %c0_58 = arith.constant 0 : index
    %c0_59 = arith.constant 0 : index
    %122 = vector.load %arg26[%c0_58, %c0_59] : memref<288x512xf32, #tpu.memory_space<vmem>>, vector<16x128xf32>
    tpu.vector_store %arg26[%c0_58, %c0_59], %121 {strides = array<i32>} : memref<288x512xf32, #tpu.memory_space<vmem>>, vector<16x128xf32>,
    %cst_60 = arith.constant 0.000000e+00 : f32
    %123 = vector.broadcast %cst_60 : f32 to vector<16x8xf32>
    %124 = vector.extract_strided_slice %102 {offsets = [0, 0], sizes = [16, 120], strides = [1, 1]} : vector<16x128xf32> to vector<16x120xf32>
    %125 = tpu.concatenate %123, %124 in 1 : vector<16x8xf32>, vector<16x120xf32> -> vector<16x128xf32>
    %c1_i32_61 = arith.constant 1 : i32
    %126 = vector.broadcast %c1_i32_61 : i32 to vector<16x128xi32>
    %127 = arith.cmpi sge, %111, %126 : vector<16x128xi32>
    %cst_62 = arith.constant 0.000000e+00 : f32
    %128 = vector.broadcast %cst_62 : f32 to vector<16x128xf32>
    %129 = arith.select %127, %125, %128 : vector<16x128xi1>, vector<16x128xf32>
    %c16_63 = arith.constant 16 : index
    %c0_64 = arith.constant 0 : index
    %130 = vector.load %arg26[%c16_63, %c0_64] : memref<288x512xf32, #tpu.memory_space<vmem>>, vector<16x128xf32>
    tpu.vector_store %arg26[%c16_63, %c0_64], %129 {strides = array<i32>} : memref<288x512xf32, #tpu.memory_space<vmem>>, vector<16x128xf32>,
    %cst_65 = arith.constant 0.000000e+00 : f32
    %131 = vector.broadcast %cst_65 : f32 to vector<16x7xf32>
    %132 = vector.extract_strided_slice %102 {offsets = [0, 0], sizes = [16, 121], strides = [1, 1]} : vector<16x128xf32> to vector<16x121xf32>
    %133 = tpu.concatenate %131, %132 in 1 : vector<16x7xf32>, vector<16x121xf32> -> vector<16x128xf32>
    %c7_i32_66 = arith.constant 7 : i32
    %134 = vector.broadcast %c7_i32_66 : i32 to vector<16x128xi32>
    %135 = arith.cmpi slt, %107, %134 : vector<16x128xi32>
    %c1_i32_67 = arith.constant 1 : i32
    %136 = vector.broadcast %c1_i32_67 : i32 to vector<16x128xi32>
    %137 = arith.cmpi sge, %111, %136 : vector<16x128xi32>
    %138 = arith.andi %135, %137 : vector<16x128xi1>
    %cst_68 = arith.constant 0.000000e+00 : f32
    %139 = vector.broadcast %cst_68 : f32 to vector<16x128xf32>
    %140 = arith.select %138, %133, %139 : vector<16x128xi1>, vector<16x128xf32>
    %c32_69 = arith.constant 32 : index
    %c0_70 = arith.constant 0 : index
    %141 = vector.load %arg26[%c32_69, %c0_70] : memref<288x512xf32, #tpu.memory_space<vmem>>, vector<16x128xf32>
    tpu.vector_store %arg26[%c32_69, %c0_70], %140 {strides = array<i32>} : memref<288x512xf32, #tpu.memory_space<vmem>>, vector<16x128xf32>,
    %cst_71 = arith.constant 0.000000e+00 : f32
    %142 = vector.broadcast %cst_71 : f32 to vector<16x1xf32>
    %143 = vector.extract_strided_slice %102 {offsets = [0, 0], sizes = [16, 127], strides = [1, 1]} : vector<16x128xf32> to vector<16x127xf32>
    %144 = tpu.concatenate %142, %143 in 1 : vector<16x1xf32>, vector<16x127xf32> -> vector<16x128xf32>
    %c1_i32_72 = arith.constant 1 : i32
    %145 = vector.broadcast %c1_i32_72 : i32 to vector<16x128xi32>
    %146 = arith.cmpi sge, %107, %145 : vector<16x128xi32>
    %cst_73 = arith.constant 0.000000e+00 : f32
    %147 = vector.broadcast %cst_73 : f32 to vector<16x128xf32>
    %148 = arith.select %146, %144, %147 : vector<16x128xi1>, vector<16x128xf32>
    %c48 = arith.constant 48 : index
    %c0_74 = arith.constant 0 : index
    %149 = vector.load %arg26[%c48, %c0_74] : memref<288x512xf32, #tpu.memory_space<vmem>>, vector<16x128xf32>
    tpu.vector_store %arg26[%c48, %c0_74], %148 {strides = array<i32>} : memref<288x512xf32, #tpu.memory_space<vmem>>, vector<16x128xf32>,
    %c64 = arith.constant 64 : index
    %c0_75 = arith.constant 0 : index
    %150 = vector.load %arg26[%c64, %c0_75] : memref<288x512xf32, #tpu.memory_space<vmem>>, vector<16x128xf32>
    tpu.vector_store %arg26[%c64, %c0_75], %102 {strides = array<i32>} : memref<288x512xf32, #tpu.memory_space<vmem>>, vector<16x128xf32>,
    %cst_76 = arith.constant 0.000000e+00 : f32
    %151 = vector.broadcast %cst_76 : f32 to vector<16x1xf32>
    %152 = vector.extract_strided_slice %102 {offsets = [0, 1], sizes = [16, 127], strides = [1, 1]} : vector<16x128xf32> to vector<16x127xf32>
    %153 = tpu.concatenate %152, %151 in 1 : vector<16x127xf32>, vector<16x1xf32> -> vector<16x128xf32>
    %c7_i32_77 = arith.constant 7 : i32
    %154 = vector.broadcast %c7_i32_77 : i32 to vector<16x128xi32>
    %155 = arith.cmpi slt, %107, %154 : vector<16x128xi32>
    %cst_78 = arith.constant 0.000000e+00 : f32
    %156 = vector.broadcast %cst_78 : f32 to vector<16x128xf32>
    %157 = arith.select %155, %153, %156 : vector<16x128xi1>, vector<16x128xf32>
    %c80 = arith.constant 80 : index
    %c0_79 = arith.constant 0 : index
    %158 = vector.load %arg26[%c80, %c0_79] : memref<288x512xf32, #tpu.memory_space<vmem>>, vector<16x128xf32>
    tpu.vector_store %arg26[%c80, %c0_79], %157 {strides = array<i32>} : memref<288x512xf32, #tpu.memory_space<vmem>>, vector<16x128xf32>,
    %cst_80 = arith.constant 0.000000e+00 : f32
    %159 = vector.broadcast %cst_80 : f32 to vector<16x7xf32>
    %160 = vector.extract_strided_slice %102 {offsets = [0, 7], sizes = [16, 121], strides = [1, 1]} : vector<16x128xf32> to vector<16x121xf32>
    %161 = tpu.concatenate %160, %159 in 1 : vector<16x121xf32>, vector<16x7xf32> -> vector<16x128xf32>
    %c1_i32_81 = arith.constant 1 : i32
    %162 = vector.broadcast %c1_i32_81 : i32 to vector<16x128xi32>
    %163 = arith.cmpi sge, %107, %162 : vector<16x128xi32>
    %c7_i32_82 = arith.constant 7 : i32
    %164 = vector.broadcast %c7_i32_82 : i32 to vector<16x128xi32>
    %165 = arith.cmpi slt, %111, %164 : vector<16x128xi32>
    %166 = arith.andi %163, %165 : vector<16x128xi1>
    %cst_83 = arith.constant 0.000000e+00 : f32
    %167 = vector.broadcast %cst_83 : f32 to vector<16x128xf32>
    %168 = arith.select %166, %161, %167 : vector<16x128xi1>, vector<16x128xf32>
    %c96 = arith.constant 96 : index
    %c0_84 = arith.constant 0 : index
    %169 = vector.load %arg26[%c96, %c0_84] : memref<288x512xf32, #tpu.memory_space<vmem>>, vector<16x128xf32>
    tpu.vector_store %arg26[%c96, %c0_84], %168 {strides = array<i32>} : memref<288x512xf32, #tpu.memory_space<vmem>>, vector<16x128xf32>,
    %cst_85 = arith.constant 0.000000e+00 : f32
    %170 = vector.broadcast %cst_85 : f32 to vector<16x8xf32>
    %171 = vector.extract_strided_slice %102 {offsets = [0, 8], sizes = [16, 120], strides = [1, 1]} : vector<16x128xf32> to vector<16x120xf32>
    %172 = tpu.concatenate %171, %170 in 1 : vector<16x120xf32>, vector<16x8xf32> -> vector<16x128xf32>
    %c7_i32_86 = arith.constant 7 : i32
    %173 = vector.broadcast %c7_i32_86 : i32 to vector<16x128xi32>
    %174 = arith.cmpi slt, %111, %173 : vector<16x128xi32>
    %cst_87 = arith.constant 0.000000e+00 : f32
    %175 = vector.broadcast %cst_87 : f32 to vector<16x128xf32>
    %176 = arith.select %174, %172, %175 : vector<16x128xi1>, vector<16x128xf32>
    %c112 = arith.constant 112 : index
    %c0_88 = arith.constant 0 : index
    %177 = vector.load %arg26[%c112, %c0_88] : memref<288x512xf32, #tpu.memory_space<vmem>>, vector<16x128xf32>
    tpu.vector_store %arg26[%c112, %c0_88], %176 {strides = array<i32>} : memref<288x512xf32, #tpu.memory_space<vmem>>, vector<16x128xf32>,
    %cst_89 = arith.constant 0.000000e+00 : f32
    %178 = vector.broadcast %cst_89 : f32 to vector<16x9xf32>
    %179 = vector.extract_strided_slice %102 {offsets = [0, 9], sizes = [16, 119], strides = [1, 1]} : vector<16x128xf32> to vector<16x119xf32>
    %180 = tpu.concatenate %179, %178 in 1 : vector<16x119xf32>, vector<16x9xf32> -> vector<16x128xf32>
    %c7_i32_90 = arith.constant 7 : i32
    %181 = vector.broadcast %c7_i32_90 : i32 to vector<16x128xi32>
    %182 = arith.cmpi slt, %107, %181 : vector<16x128xi32>
    %c7_i32_91 = arith.constant 7 : i32
    %183 = vector.broadcast %c7_i32_91 : i32 to vector<16x128xi32>
    %184 = arith.cmpi slt, %111, %183 : vector<16x128xi32>
    %185 = arith.andi %182, %184 : vector<16x128xi1>
    %cst_92 = arith.constant 0.000000e+00 : f32
    %186 = vector.broadcast %cst_92 : f32 to vector<16x128xf32>
    %187 = arith.select %185, %180, %186 : vector<16x128xi1>, vector<16x128xf32>
    %c128 = arith.constant 128 : index
    %c0_93 = arith.constant 0 : index
    %188 = vector.load %arg26[%c128, %c0_93] : memref<288x512xf32, #tpu.memory_space<vmem>>, vector<16x128xf32>
    tpu.vector_store %arg26[%c128, %c0_93], %187 {strides = array<i32>} : memref<288x512xf32, #tpu.memory_space<vmem>>, vector<16x128xf32>,
    %c0_94 = arith.constant 0 : index
    %c0_95 = arith.constant 0 : index
    %189 = vector.load %arg26[%c0_94, %c0_95] : memref<288x512xf32, #tpu.memory_space<vmem>>, vector<144x128xf32>
    %cst_96 = arith.constant dense<0.000000e+00> : vector<32x128xf32>
    %190 = tpu.matmul %103, %189, %cst_96 {dimension_numbers = #tpu.dot_dimension_numbers<[1], [0], [0], [1], [0, 0, 1, 1], [], []>} : vector<32x144xf32>, vector<144x128xf32>, vector<32x128xf32> -> vector<32x128xf32>
    %191 = vector.broadcast %104 : vector<32x1xf32> to vector<32x128xf32>
    %192 = arith.addf %190, %191 : vector<32x128xf32>
    %cst_97 = arith.constant 0.000000e+00 : f32
    %193 = vector.broadcast %cst_97 : f32 to vector<32x128xf32>
    %194 = arith.maximumf %192, %193 : vector<32x128xf32>
    %c0_98 = arith.constant 0 : index
    %c0_99 = arith.constant 0 : index
    %195 = vector.load %arg6[%c0_98, %c0_99] : memref<32x288xf32, #tpu.memory_space<vmem>>, vector<32x288xf32>
    %c0_100 = arith.constant 0 : index
    %c0_101 = arith.constant 0 : index
    %196 = vector.load %arg7[%c0_100, %c0_101] : memref<32x1xf32, #tpu.memory_space<vmem>>, vector<32x1xf32>
    %197 = tpu.iota {dimensions = array<i32: 1>} : vector<32x128xi32>
    %c7_i32_102 = arith.constant 7 : i32
    %198 = vector.broadcast %c7_i32_102 : i32 to vector<32x128xi32>
    %199 = arith.andi %197, %198 : vector<32x128xi32>
    %c63_i32_103 = arith.constant 63 : i32
    %200 = vector.broadcast %c63_i32_103 : i32 to vector<32x128xi32>
    %201 = arith.andi %197, %200 : vector<32x128xi32>
    %c3_i32_104 = arith.constant 3 : i32
    %202 = vector.broadcast %c3_i32_104 : i32 to vector<32x128xi32>
    %203 = arith.shrsi %201, %202 : vector<32x128xi32>
    %cst_105 = arith.constant 0.000000e+00 : f32
    %204 = vector.broadcast %cst_105 : f32 to vector<32x9xf32>
    %205 = vector.extract_strided_slice %194 {offsets = [0, 0], sizes = [32, 119], strides = [1, 1]} : vector<32x128xf32> to vector<32x119xf32>
    %206 = tpu.concatenate %204, %205 in 1 : vector<32x9xf32>, vector<32x119xf32> -> vector<32x128xf32>
    %c1_i32_106 = arith.constant 1 : i32
    %207 = vector.broadcast %c1_i32_106 : i32 to vector<32x128xi32>
    %208 = arith.cmpi sge, %199, %207 : vector<32x128xi32>
    %c1_i32_107 = arith.constant 1 : i32
    %209 = vector.broadcast %c1_i32_107 : i32 to vector<32x128xi32>
    %210 = arith.cmpi sge, %203, %209 : vector<32x128xi32>
    %211 = arith.andi %208, %210 : vector<32x128xi1>
    %cst_108 = arith.constant 0.000000e+00 : f32
    %212 = vector.broadcast %cst_108 : f32 to vector<32x128xf32>
    %213 = arith.select %211, %206, %212 : vector<32x128xi1>, vector<32x128xf32>
    %c0_109 = arith.constant 0 : index
    %c0_110 = arith.constant 0 : index
    %214 = vector.load %arg26[%c0_109, %c0_110] : memref<288x512xf32, #tpu.memory_space<vmem>>, vector<32x128xf32>
    tpu.vector_store %arg26[%c0_109, %c0_110], %213 {strides = array<i32>} : memref<288x512xf32, #tpu.memory_space<vmem>>, vector<32x128xf32>,
    %cst_111 = arith.constant 0.000000e+00 : f32
    %215 = vector.broadcast %cst_111 : f32 to vector<32x8xf32>
    %216 = vector.extract_strided_slice %194 {offsets = [0, 0], sizes = [32, 120], strides = [1, 1]} : vector<32x128xf32> to vector<32x120xf32>
    %217 = tpu.concatenate %215, %216 in 1 : vector<32x8xf32>, vector<32x120xf32> -> vector<32x128xf32>
    %c1_i32_112 = arith.constant 1 : i32
    %218 = vector.broadcast %c1_i32_112 : i32 to vector<32x128xi32>
    %219 = arith.cmpi sge, %203, %218 : vector<32x128xi32>
    %cst_113 = arith.constant 0.000000e+00 : f32
    %220 = vector.broadcast %cst_113 : f32 to vector<32x128xf32>
    %221 = arith.select %219, %217, %220 : vector<32x128xi1>, vector<32x128xf32>
    %c32_114 = arith.constant 32 : index
    %c0_115 = arith.constant 0 : index
    %222 = vector.load %arg26[%c32_114, %c0_115] : memref<288x512xf32, #tpu.memory_space<vmem>>, vector<32x128xf32>
    tpu.vector_store %arg26[%c32_114, %c0_115], %221 {strides = array<i32>} : memref<288x512xf32, #tpu.memory_space<vmem>>, vector<32x128xf32>,
    %cst_116 = arith.constant 0.000000e+00 : f32
    %223 = vector.broadcast %cst_116 : f32 to vector<32x7xf32>
    %224 = vector.extract_strided_slice %194 {offsets = [0, 0], sizes = [32, 121], strides = [1, 1]} : vector<32x128xf32> to vector<32x121xf32>
    %225 = tpu.concatenate %223, %224 in 1 : vector<32x7xf32>, vector<32x121xf32> -> vector<32x128xf32>
    %c7_i32_117 = arith.constant 7 : i32
    %226 = vector.broadcast %c7_i32_117 : i32 to vector<32x128xi32>
    %227 = arith.cmpi slt, %199, %226 : vector<32x128xi32>
    %c1_i32_118 = arith.constant 1 : i32
    %228 = vector.broadcast %c1_i32_118 : i32 to vector<32x128xi32>
    %229 = arith.cmpi sge, %203, %228 : vector<32x128xi32>
    %230 = arith.andi %227, %229 : vector<32x128xi1>
    %cst_119 = arith.constant 0.000000e+00 : f32
    %231 = vector.broadcast %cst_119 : f32 to vector<32x128xf32>
    %232 = arith.select %230, %225, %231 : vector<32x128xi1>, vector<32x128xf32>
    %c64_120 = arith.constant 64 : index
    %c0_121 = arith.constant 0 : index
    %233 = vector.load %arg26[%c64_120, %c0_121] : memref<288x512xf32, #tpu.memory_space<vmem>>, vector<32x128xf32>
    tpu.vector_store %arg26[%c64_120, %c0_121], %232 {strides = array<i32>} : memref<288x512xf32, #tpu.memory_space<vmem>>, vector<32x128xf32>,
    %cst_122 = arith.constant 0.000000e+00 : f32
    %234 = vector.broadcast %cst_122 : f32 to vector<32x1xf32>
    %235 = vector.extract_strided_slice %194 {offsets = [0, 0], sizes = [32, 127], strides = [1, 1]} : vector<32x128xf32> to vector<32x127xf32>
    %236 = tpu.concatenate %234, %235 in 1 : vector<32x1xf32>, vector<32x127xf32> -> vector<32x128xf32>
    %c1_i32_123 = arith.constant 1 : i32
    %237 = vector.broadcast %c1_i32_123 : i32 to vector<32x128xi32>
    %238 = arith.cmpi sge, %199, %237 : vector<32x128xi32>
    %cst_124 = arith.constant 0.000000e+00 : f32
    %239 = vector.broadcast %cst_124 : f32 to vector<32x128xf32>
    %240 = arith.select %238, %236, %239 : vector<32x128xi1>, vector<32x128xf32>
    %c96_125 = arith.constant 96 : index
    %c0_126 = arith.constant 0 : index
    %241 = vector.load %arg26[%c96_125, %c0_126] : memref<288x512xf32, #tpu.memory_space<vmem>>, vector<32x128xf32>
    tpu.vector_store %arg26[%c96_125, %c0_126], %240 {strides = array<i32>} : memref<288x512xf32, #tpu.memory_space<vmem>>, vector<32x128xf32>,
    %c128_127 = arith.constant 128 : index
    %c0_128 = arith.constant 0 : index
    %242 = vector.load %arg26[%c128_127, %c0_128] : memref<288x512xf32, #tpu.memory_space<vmem>>, vector<32x128xf32>
    tpu.vector_store %arg26[%c128_127, %c0_128], %194 {strides = array<i32>} : memref<288x512xf32, #tpu.memory_space<vmem>>, vector<32x128xf32>,
    %cst_129 = arith.constant 0.000000e+00 : f32
    %243 = vector.broadcast %cst_129 : f32 to vector<32x1xf32>
    %244 = vector.extract_strided_slice %194 {offsets = [0, 1], sizes = [32, 127], strides = [1, 1]} : vector<32x128xf32> to vector<32x127xf32>
    %245 = tpu.concatenate %244, %243 in 1 : vector<32x127xf32>, vector<32x1xf32> -> vector<32x128xf32>
    %c7_i32_130 = arith.constant 7 : i32
    %246 = vector.broadcast %c7_i32_130 : i32 to vector<32x128xi32>
    %247 = arith.cmpi slt, %199, %246 : vector<32x128xi32>
    %cst_131 = arith.constant 0.000000e+00 : f32
    %248 = vector.broadcast %cst_131 : f32 to vector<32x128xf32>
    %249 = arith.select %247, %245, %248 : vector<32x128xi1>, vector<32x128xf32>
    %c160 = arith.constant 160 : index
    %c0_132 = arith.constant 0 : index
    %250 = vector.load %arg26[%c160, %c0_132] : memref<288x512xf32, #tpu.memory_space<vmem>>, vector<32x128xf32>
    tpu.vector_store %arg26[%c160, %c0_132], %249 {strides = array<i32>} : memref<288x512xf32, #tpu.memory_space<vmem>>, vector<32x128xf32>,
    %cst_133 = arith.constant 0.000000e+00 : f32
    %251 = vector.broadcast %cst_133 : f32 to vector<32x7xf32>
    %252 = vector.extract_strided_slice %194 {offsets = [0, 7], sizes = [32, 121], strides = [1, 1]} : vector<32x128xf32> to vector<32x121xf32>
    %253 = tpu.concatenate %252, %251 in 1 : vector<32x121xf32>, vector<32x7xf32> -> vector<32x128xf32>
    %c1_i32_134 = arith.constant 1 : i32
    %254 = vector.broadcast %c1_i32_134 : i32 to vector<32x128xi32>
    %255 = arith.cmpi sge, %199, %254 : vector<32x128xi32>
    %c7_i32_135 = arith.constant 7 : i32
    %256 = vector.broadcast %c7_i32_135 : i32 to vector<32x128xi32>
    %257 = arith.cmpi slt, %203, %256 : vector<32x128xi32>
    %258 = arith.andi %255, %257 : vector<32x128xi1>
    %cst_136 = arith.constant 0.000000e+00 : f32
    %259 = vector.broadcast %cst_136 : f32 to vector<32x128xf32>
    %260 = arith.select %258, %253, %259 : vector<32x128xi1>, vector<32x128xf32>
    %c192 = arith.constant 192 : index
    %c0_137 = arith.constant 0 : index
    %261 = vector.load %arg26[%c192, %c0_137] : memref<288x512xf32, #tpu.memory_space<vmem>>, vector<32x128xf32>
    tpu.vector_store %arg26[%c192, %c0_137], %260 {strides = array<i32>} : memref<288x512xf32, #tpu.memory_space<vmem>>, vector<32x128xf32>,
    %cst_138 = arith.constant 0.000000e+00 : f32
    %262 = vector.broadcast %cst_138 : f32 to vector<32x8xf32>
    %263 = vector.extract_strided_slice %194 {offsets = [0, 8], sizes = [32, 120], strides = [1, 1]} : vector<32x128xf32> to vector<32x120xf32>
    %264 = tpu.concatenate %263, %262 in 1 : vector<32x120xf32>, vector<32x8xf32> -> vector<32x128xf32>
    %c7_i32_139 = arith.constant 7 : i32
    %265 = vector.broadcast %c7_i32_139 : i32 to vector<32x128xi32>
    %266 = arith.cmpi slt, %203, %265 : vector<32x128xi32>
    %cst_140 = arith.constant 0.000000e+00 : f32
    %267 = vector.broadcast %cst_140 : f32 to vector<32x128xf32>
    %268 = arith.select %266, %264, %267 : vector<32x128xi1>, vector<32x128xf32>
    %c224 = arith.constant 224 : index
    %c0_141 = arith.constant 0 : index
    %269 = vector.load %arg26[%c224, %c0_141] : memref<288x512xf32, #tpu.memory_space<vmem>>, vector<32x128xf32>
    tpu.vector_store %arg26[%c224, %c0_141], %268 {strides = array<i32>} : memref<288x512xf32, #tpu.memory_space<vmem>>, vector<32x128xf32>,
    %cst_142 = arith.constant 0.000000e+00 : f32
    %270 = vector.broadcast %cst_142 : f32 to vector<32x9xf32>
    %271 = vector.extract_strided_slice %194 {offsets = [0, 9], sizes = [32, 119], strides = [1, 1]} : vector<32x128xf32> to vector<32x119xf32>
    %272 = tpu.concatenate %271, %270 in 1 : vector<32x119xf32>, vector<32x9xf32> -> vector<32x128xf32>
    %c7_i32_143 = arith.constant 7 : i32
    %273 = vector.broadcast %c7_i32_143 : i32 to vector<32x128xi32>
    %274 = arith.cmpi slt, %199, %273 : vector<32x128xi32>
    %c7_i32_144 = arith.constant 7 : i32
    %275 = vector.broadcast %c7_i32_144 : i32 to vector<32x128xi32>
    %276 = arith.cmpi slt, %203, %275 : vector<32x128xi32>
    %277 = arith.andi %274, %276 : vector<32x128xi1>
    %cst_145 = arith.constant 0.000000e+00 : f32
    %278 = vector.broadcast %cst_145 : f32 to vector<32x128xf32>
    %279 = arith.select %277, %272, %278 : vector<32x128xi1>, vector<32x128xf32>
    %c256 = arith.constant 256 : index
    %c0_146 = arith.constant 0 : index
    %280 = vector.load %arg26[%c256, %c0_146] : memref<288x512xf32, #tpu.memory_space<vmem>>, vector<32x128xf32>
    tpu.vector_store %arg26[%c256, %c0_146], %279 {strides = array<i32>} : memref<288x512xf32, #tpu.memory_space<vmem>>, vector<32x128xf32>,
    %c0_147 = arith.constant 0 : index
    %c0_148 = arith.constant 0 : index
    %281 = vector.load %arg26[%c0_147, %c0_148] : memref<288x512xf32, #tpu.memory_space<vmem>>, vector<288x128xf32>
    %cst_149 = arith.constant dense<0.000000e+00> : vector<32x128xf32>
    %282 = tpu.matmul %195, %281, %cst_149 {dimension_numbers = #tpu.dot_dimension_numbers<[1], [0], [0], [1], [0, 0, 1, 1], [], []>} : vector<32x288xf32>, vector<288x128xf32>, vector<32x128xf32> -> vector<32x128xf32>
    %283 = vector.broadcast %196 : vector<32x1xf32> to vector<32x128xf32>
    %284 = arith.addf %282, %283 : vector<32x128xf32>
    %cst_150 = arith.constant 0.000000e+00 : f32
    %285 = vector.broadcast %cst_150 : f32 to vector<32x128xf32>
    %286 = arith.maximumf %284, %285 : vector<32x128xf32>
    %c0_151 = arith.constant 0 : index
    %c0_152 = arith.constant 0 : index
    %287 = vector.load %arg8[%c0_151, %c0_152] : memref<128x32xf32, #tpu.memory_space<vmem>>, vector<128x32xf32>
    %cst_153 = arith.constant 0.000000e+00 : f32
    %288 = vector.broadcast %cst_153 : f32 to vector<32x1xf32>
    %289 = vector.extract_strided_slice %286 {offsets = [0, 1], sizes = [32, 127], strides = [1, 1]} : vector<32x128xf32> to vector<32x127xf32>
    %290 = tpu.concatenate %289, %288 in 1 : vector<32x127xf32>, vector<32x1xf32> -> vector<32x128xf32>
    %291 = arith.maximumf %286, %290 : vector<32x128xf32>
    %cst_154 = arith.constant 0.000000e+00 : f32
    %292 = vector.broadcast %cst_154 : f32 to vector<32x8xf32>
    %293 = vector.extract_strided_slice %291 {offsets = [0, 8], sizes = [32, 120], strides = [1, 1]} : vector<32x128xf32> to vector<32x120xf32>
    %294 = tpu.concatenate %293, %292 in 1 : vector<32x120xf32>, vector<32x8xf32> -> vector<32x128xf32>
    %295 = arith.maximumf %291, %294 : vector<32x128xf32>
    %cst_155 = arith.constant dense<0.000000e+00> : vector<32x32xf32>
    %296 = tpu.matmul %295, %287, %cst_155 {dimension_numbers = #tpu.dot_dimension_numbers<[1], [0], [0], [1], [0, 0, 1, 1], [], []>} : vector<32x128xf32>, vector<128x32xf32>, vector<32x32xf32> -> vector<32x32xf32>
    %c0_156 = arith.constant 0 : index
    %c0_157 = arith.constant 0 : index
    %297 = vector.load %arg9[%c0_156, %c0_157] : memref<32x288xf32, #tpu.memory_space<vmem>>, vector<32x288xf32>
    %c0_158 = arith.constant 0 : index
    %c0_159 = arith.constant 0 : index
    %298 = vector.load %arg10[%c0_158, %c0_159] : memref<32x1xf32, #tpu.memory_space<vmem>>, vector<32x1xf32>
    %299 = tpu.iota {dimensions = array<i32: 1>} : vector<32x32xi32>
    %c3_i32_160 = arith.constant 3 : i32
    %300 = vector.broadcast %c3_i32_160 : i32 to vector<32x32xi32>
    %301 = arith.andi %299, %300 : vector<32x32xi32>
    %c15_i32_161 = arith.constant 15 : i32
    %302 = vector.broadcast %c15_i32_161 : i32 to vector<32x32xi32>
    %303 = arith.andi %299, %302 : vector<32x32xi32>
    %c2_i32 = arith.constant 2 : i32
    %304 = vector.broadcast %c2_i32 : i32 to vector<32x32xi32>
    %305 = arith.shrsi %303, %304 : vector<32x32xi32>
    %cst_162 = arith.constant 0.000000e+00 : f32
    %306 = vector.broadcast %cst_162 : f32 to vector<32x5xf32>
    %307 = vector.extract_strided_slice %296 {offsets = [0, 0], sizes = [32, 27], strides = [1, 1]} : vector<32x32xf32> to vector<32x27xf32>
    %308 = tpu.concatenate %306, %307 in 1 : vector<32x5xf32>, vector<32x27xf32> -> vector<32x32xf32>
    %c1_i32_163 = arith.constant 1 : i32
    %309 = vector.broadcast %c1_i32_163 : i32 to vector<32x32xi32>
    %310 = arith.cmpi sge, %301, %309 : vector<32x32xi32>
    %c1_i32_164 = arith.constant 1 : i32
    %311 = vector.broadcast %c1_i32_164 : i32 to vector<32x32xi32>
    %312 = arith.cmpi sge, %305, %311 : vector<32x32xi32>
    %313 = arith.andi %310, %312 : vector<32x32xi1>
    %cst_165 = arith.constant 0.000000e+00 : f32
    %314 = vector.broadcast %cst_165 : f32 to vector<32x32xf32>
    %315 = arith.select %313, %308, %314 : vector<32x32xi1>, vector<32x32xf32>
    %c0_166 = arith.constant 0 : index
    %c0_167 = arith.constant 0 : index
    %316 = vector.load %arg26[%c0_166, %c0_167] : memref<288x512xf32, #tpu.memory_space<vmem>>, vector<32x32xf32>
    tpu.vector_store %arg26[%c0_166, %c0_167], %315 {strides = array<i32>} : memref<288x512xf32, #tpu.memory_space<vmem>>, vector<32x32xf32>,
    %cst_168 = arith.constant 0.000000e+00 : f32
    %317 = vector.broadcast %cst_168 : f32 to vector<32x4xf32>
    %318 = vector.extract_strided_slice %296 {offsets = [0, 0], sizes = [32, 28], strides = [1, 1]} : vector<32x32xf32> to vector<32x28xf32>
    %319 = tpu.concatenate %317, %318 in 1 : vector<32x4xf32>, vector<32x28xf32> -> vector<32x32xf32>
    %c1_i32_169 = arith.constant 1 : i32
    %320 = vector.broadcast %c1_i32_169 : i32 to vector<32x32xi32>
    %321 = arith.cmpi sge, %305, %320 : vector<32x32xi32>
    %cst_170 = arith.constant 0.000000e+00 : f32
    %322 = vector.broadcast %cst_170 : f32 to vector<32x32xf32>
    %323 = arith.select %321, %319, %322 : vector<32x32xi1>, vector<32x32xf32>
    %c32_171 = arith.constant 32 : index
    %c0_172 = arith.constant 0 : index
    %324 = vector.load %arg26[%c32_171, %c0_172] : memref<288x512xf32, #tpu.memory_space<vmem>>, vector<32x32xf32>
    tpu.vector_store %arg26[%c32_171, %c0_172], %323 {strides = array<i32>} : memref<288x512xf32, #tpu.memory_space<vmem>>, vector<32x32xf32>,
    %cst_173 = arith.constant 0.000000e+00 : f32
    %325 = vector.broadcast %cst_173 : f32 to vector<32x3xf32>
    %326 = vector.extract_strided_slice %296 {offsets = [0, 0], sizes = [32, 29], strides = [1, 1]} : vector<32x32xf32> to vector<32x29xf32>
    %327 = tpu.concatenate %325, %326 in 1 : vector<32x3xf32>, vector<32x29xf32> -> vector<32x32xf32>
    %c3_i32_174 = arith.constant 3 : i32
    %328 = vector.broadcast %c3_i32_174 : i32 to vector<32x32xi32>
    %329 = arith.cmpi slt, %301, %328 : vector<32x32xi32>
    %c1_i32_175 = arith.constant 1 : i32
    %330 = vector.broadcast %c1_i32_175 : i32 to vector<32x32xi32>
    %331 = arith.cmpi sge, %305, %330 : vector<32x32xi32>
    %332 = arith.andi %329, %331 : vector<32x32xi1>
    %cst_176 = arith.constant 0.000000e+00 : f32
    %333 = vector.broadcast %cst_176 : f32 to vector<32x32xf32>
    %334 = arith.select %332, %327, %333 : vector<32x32xi1>, vector<32x32xf32>
    %c64_177 = arith.constant 64 : index
    %c0_178 = arith.constant 0 : index
    %335 = vector.load %arg26[%c64_177, %c0_178] : memref<288x512xf32, #tpu.memory_space<vmem>>, vector<32x32xf32>
    tpu.vector_store %arg26[%c64_177, %c0_178], %334 {strides = array<i32>} : memref<288x512xf32, #tpu.memory_space<vmem>>, vector<32x32xf32>,
    %cst_179 = arith.constant 0.000000e+00 : f32
    %336 = vector.broadcast %cst_179 : f32 to vector<32x1xf32>
    %337 = vector.extract_strided_slice %296 {offsets = [0, 0], sizes = [32, 31], strides = [1, 1]} : vector<32x32xf32> to vector<32x31xf32>
    %338 = tpu.concatenate %336, %337 in 1 : vector<32x1xf32>, vector<32x31xf32> -> vector<32x32xf32>
    %c1_i32_180 = arith.constant 1 : i32
    %339 = vector.broadcast %c1_i32_180 : i32 to vector<32x32xi32>
    %340 = arith.cmpi sge, %301, %339 : vector<32x32xi32>
    %cst_181 = arith.constant 0.000000e+00 : f32
    %341 = vector.broadcast %cst_181 : f32 to vector<32x32xf32>
    %342 = arith.select %340, %338, %341 : vector<32x32xi1>, vector<32x32xf32>
    %c96_182 = arith.constant 96 : index
    %c0_183 = arith.constant 0 : index
    %343 = vector.load %arg26[%c96_182, %c0_183] : memref<288x512xf32, #tpu.memory_space<vmem>>, vector<32x32xf32>
    tpu.vector_store %arg26[%c96_182, %c0_183], %342 {strides = array<i32>} : memref<288x512xf32, #tpu.memory_space<vmem>>, vector<32x32xf32>,
    %c128_184 = arith.constant 128 : index
    %c0_185 = arith.constant 0 : index
    %344 = vector.load %arg26[%c128_184, %c0_185] : memref<288x512xf32, #tpu.memory_space<vmem>>, vector<32x32xf32>
    tpu.vector_store %arg26[%c128_184, %c0_185], %296 {strides = array<i32>} : memref<288x512xf32, #tpu.memory_space<vmem>>, vector<32x32xf32>,
    %cst_186 = arith.constant 0.000000e+00 : f32
    %345 = vector.broadcast %cst_186 : f32 to vector<32x1xf32>
    %346 = vector.extract_strided_slice %296 {offsets = [0, 1], sizes = [32, 31], strides = [1, 1]} : vector<32x32xf32> to vector<32x31xf32>
    %347 = tpu.concatenate %346, %345 in 1 : vector<32x31xf32>, vector<32x1xf32> -> vector<32x32xf32>
    %c3_i32_187 = arith.constant 3 : i32
    %348 = vector.broadcast %c3_i32_187 : i32 to vector<32x32xi32>
    %349 = arith.cmpi slt, %301, %348 : vector<32x32xi32>
    %cst_188 = arith.constant 0.000000e+00 : f32
    %350 = vector.broadcast %cst_188 : f32 to vector<32x32xf32>
    %351 = arith.select %349, %347, %350 : vector<32x32xi1>, vector<32x32xf32>
    %c160_189 = arith.constant 160 : index
    %c0_190 = arith.constant 0 : index
    %352 = vector.load %arg26[%c160_189, %c0_190] : memref<288x512xf32, #tpu.memory_space<vmem>>, vector<32x32xf32>
    tpu.vector_store %arg26[%c160_189, %c0_190], %351 {strides = array<i32>} : memref<288x512xf32, #tpu.memory_space<vmem>>, vector<32x32xf32>,
    %cst_191 = arith.constant 0.000000e+00 : f32
    %353 = vector.broadcast %cst_191 : f32 to vector<32x3xf32>
    %354 = vector.extract_strided_slice %296 {offsets = [0, 3], sizes = [32, 29], strides = [1, 1]} : vector<32x32xf32> to vector<32x29xf32>
    %355 = tpu.concatenate %354, %353 in 1 : vector<32x29xf32>, vector<32x3xf32> -> vector<32x32xf32>
    %c1_i32_192 = arith.constant 1 : i32
    %356 = vector.broadcast %c1_i32_192 : i32 to vector<32x32xi32>
    %357 = arith.cmpi sge, %301, %356 : vector<32x32xi32>
    %c3_i32_193 = arith.constant 3 : i32
    %358 = vector.broadcast %c3_i32_193 : i32 to vector<32x32xi32>
    %359 = arith.cmpi slt, %305, %358 : vector<32x32xi32>
    %360 = arith.andi %357, %359 : vector<32x32xi1>
    %cst_194 = arith.constant 0.000000e+00 : f32
    %361 = vector.broadcast %cst_194 : f32 to vector<32x32xf32>
    %362 = arith.select %360, %355, %361 : vector<32x32xi1>, vector<32x32xf32>
    %c192_195 = arith.constant 192 : index
    %c0_196 = arith.constant 0 : index
    %363 = vector.load %arg26[%c192_195, %c0_196] : memref<288x512xf32, #tpu.memory_space<vmem>>, vector<32x32xf32>
    tpu.vector_store %arg26[%c192_195, %c0_196], %362 {strides = array<i32>} : memref<288x512xf32, #tpu.memory_space<vmem>>, vector<32x32xf32>,
    %cst_197 = arith.constant 0.000000e+00 : f32
    %364 = vector.broadcast %cst_197 : f32 to vector<32x4xf32>
    %365 = vector.extract_strided_slice %296 {offsets = [0, 4], sizes = [32, 28], strides = [1, 1]} : vector<32x32xf32> to vector<32x28xf32>
    %366 = tpu.concatenate %365, %364 in 1 : vector<32x28xf32>, vector<32x4xf32> -> vector<32x32xf32>
    %c3_i32_198 = arith.constant 3 : i32
    %367 = vector.broadcast %c3_i32_198 : i32 to vector<32x32xi32>
    %368 = arith.cmpi slt, %305, %367 : vector<32x32xi32>
    %cst_199 = arith.constant 0.000000e+00 : f32
    %369 = vector.broadcast %cst_199 : f32 to vector<32x32xf32>
    %370 = arith.select %368, %366, %369 : vector<32x32xi1>, vector<32x32xf32>
    %c224_200 = arith.constant 224 : index
    %c0_201 = arith.constant 0 : index
    %371 = vector.load %arg26[%c224_200, %c0_201] : memref<288x512xf32, #tpu.memory_space<vmem>>, vector<32x32xf32>
    tpu.vector_store %arg26[%c224_200, %c0_201], %370 {strides = array<i32>} : memref<288x512xf32, #tpu.memory_space<vmem>>, vector<32x32xf32>,
    %cst_202 = arith.constant 0.000000e+00 : f32
    %372 = vector.broadcast %cst_202 : f32 to vector<32x5xf32>
    %373 = vector.extract_strided_slice %296 {offsets = [0, 5], sizes = [32, 27], strides = [1, 1]} : vector<32x32xf32> to vector<32x27xf32>
    %374 = tpu.concatenate %373, %372 in 1 : vector<32x27xf32>, vector<32x5xf32> -> vector<32x32xf32>
    %c3_i32_203 = arith.constant 3 : i32
    %375 = vector.broadcast %c3_i32_203 : i32 to vector<32x32xi32>
    %376 = arith.cmpi slt, %301, %375 : vector<32x32xi32>
    %c3_i32_204 = arith.constant 3 : i32
    %377 = vector.broadcast %c3_i32_204 : i32 to vector<32x32xi32>
    %378 = arith.cmpi slt, %305, %377 : vector<32x32xi32>
    %379 = arith.andi %376, %378 : vector<32x32xi1>
    %cst_205 = arith.constant 0.000000e+00 : f32
    %380 = vector.broadcast %cst_205 : f32 to vector<32x32xf32>
    %381 = arith.select %379, %374, %380 : vector<32x32xi1>, vector<32x32xf32>
    %c256_206 = arith.constant 256 : index
    %c0_207 = arith.constant 0 : index
    %382 = vector.load %arg26[%c256_206, %c0_207] : memref<288x512xf32, #tpu.memory_space<vmem>>, vector<32x32xf32>
    tpu.vector_store %arg26[%c256_206, %c0_207], %381 {strides = array<i32>} : memref<288x512xf32, #tpu.memory_space<vmem>>, vector<32x32xf32>,
    %c0_208 = arith.constant 0 : index
    %c0_209 = arith.constant 0 : index
    %383 = vector.load %arg26[%c0_208, %c0_209] : memref<288x512xf32, #tpu.memory_space<vmem>>, vector<288x32xf32>
    %cst_210 = arith.constant dense<0.000000e+00> : vector<32x32xf32>
    %384 = tpu.matmul %297, %383, %cst_210 {dimension_numbers = #tpu.dot_dimension_numbers<[1], [0], [0], [1], [0, 0, 1, 1], [], []>} : vector<32x288xf32>, vector<288x32xf32>, vector<32x32xf32> -> vector<32x32xf32>
    %385 = vector.broadcast %298 : vector<32x1xf32> to vector<32x32xf32>
    %386 = arith.addf %384, %385 : vector<32x32xf32>
    %cst_211 = arith.constant 0.000000e+00 : f32
    %387 = vector.broadcast %cst_211 : f32 to vector<32x32xf32>
    %388 = arith.maximumf %386, %387 : vector<32x32xf32>
    %c0_212 = arith.constant 0 : index
    %c0_213 = arith.constant 0 : index
    %389 = vector.load %arg11[%c0_212, %c0_213] : memref<32x288xf32, #tpu.memory_space<vmem>>, vector<32x288xf32>
    %c0_214 = arith.constant 0 : index
    %c0_215 = arith.constant 0 : index
    %390 = vector.load %arg12[%c0_214, %c0_215] : memref<32x1xf32, #tpu.memory_space<vmem>>, vector<32x1xf32>
    %391 = tpu.iota {dimensions = array<i32: 1>} : vector<32x32xi32>
    %c3_i32_216 = arith.constant 3 : i32
    %392 = vector.broadcast %c3_i32_216 : i32 to vector<32x32xi32>
    %393 = arith.andi %391, %392 : vector<32x32xi32>
    %c15_i32_217 = arith.constant 15 : i32
    %394 = vector.broadcast %c15_i32_217 : i32 to vector<32x32xi32>
    %395 = arith.andi %391, %394 : vector<32x32xi32>
    %c2_i32_218 = arith.constant 2 : i32
    %396 = vector.broadcast %c2_i32_218 : i32 to vector<32x32xi32>
    %397 = arith.shrsi %395, %396 : vector<32x32xi32>
    %cst_219 = arith.constant 0.000000e+00 : f32
    %398 = vector.broadcast %cst_219 : f32 to vector<32x5xf32>
    %399 = vector.extract_strided_slice %388 {offsets = [0, 0], sizes = [32, 27], strides = [1, 1]} : vector<32x32xf32> to vector<32x27xf32>
    %400 = tpu.concatenate %398, %399 in 1 : vector<32x5xf32>, vector<32x27xf32> -> vector<32x32xf32>
    %c1_i32_220 = arith.constant 1 : i32
    %401 = vector.broadcast %c1_i32_220 : i32 to vector<32x32xi32>
    %402 = arith.cmpi sge, %393, %401 : vector<32x32xi32>
    %c1_i32_221 = arith.constant 1 : i32
    %403 = vector.broadcast %c1_i32_221 : i32 to vector<32x32xi32>
    %404 = arith.cmpi sge, %397, %403 : vector<32x32xi32>
    %405 = arith.andi %402, %404 : vector<32x32xi1>
    %cst_222 = arith.constant 0.000000e+00 : f32
    %406 = vector.broadcast %cst_222 : f32 to vector<32x32xf32>
    %407 = arith.select %405, %400, %406 : vector<32x32xi1>, vector<32x32xf32>
    %c0_223 = arith.constant 0 : index
    %c0_224 = arith.constant 0 : index
    %408 = vector.load %arg26[%c0_223, %c0_224] : memref<288x512xf32, #tpu.memory_space<vmem>>, vector<32x32xf32>
    tpu.vector_store %arg26[%c0_223, %c0_224], %407 {strides = array<i32>} : memref<288x512xf32, #tpu.memory_space<vmem>>, vector<32x32xf32>,
    %cst_225 = arith.constant 0.000000e+00 : f32
    %409 = vector.broadcast %cst_225 : f32 to vector<32x4xf32>
    %410 = vector.extract_strided_slice %388 {offsets = [0, 0], sizes = [32, 28], strides = [1, 1]} : vector<32x32xf32> to vector<32x28xf32>
    %411 = tpu.concatenate %409, %410 in 1 : vector<32x4xf32>, vector<32x28xf32> -> vector<32x32xf32>
    %c1_i32_226 = arith.constant 1 : i32
    %412 = vector.broadcast %c1_i32_226 : i32 to vector<32x32xi32>
    %413 = arith.cmpi sge, %397, %412 : vector<32x32xi32>
    %cst_227 = arith.constant 0.000000e+00 : f32
    %414 = vector.broadcast %cst_227 : f32 to vector<32x32xf32>
    %415 = arith.select %413, %411, %414 : vector<32x32xi1>, vector<32x32xf32>
    %c32_228 = arith.constant 32 : index
    %c0_229 = arith.constant 0 : index
    %416 = vector.load %arg26[%c32_228, %c0_229] : memref<288x512xf32, #tpu.memory_space<vmem>>, vector<32x32xf32>
    tpu.vector_store %arg26[%c32_228, %c0_229], %415 {strides = array<i32>} : memref<288x512xf32, #tpu.memory_space<vmem>>, vector<32x32xf32>,
    %cst_230 = arith.constant 0.000000e+00 : f32
    %417 = vector.broadcast %cst_230 : f32 to vector<32x3xf32>
    %418 = vector.extract_strided_slice %388 {offsets = [0, 0], sizes = [32, 29], strides = [1, 1]} : vector<32x32xf32> to vector<32x29xf32>
    %419 = tpu.concatenate %417, %418 in 1 : vector<32x3xf32>, vector<32x29xf32> -> vector<32x32xf32>
    %c3_i32_231 = arith.constant 3 : i32
    %420 = vector.broadcast %c3_i32_231 : i32 to vector<32x32xi32>
    %421 = arith.cmpi slt, %393, %420 : vector<32x32xi32>
    %c1_i32_232 = arith.constant 1 : i32
    %422 = vector.broadcast %c1_i32_232 : i32 to vector<32x32xi32>
    %423 = arith.cmpi sge, %397, %422 : vector<32x32xi32>
    %424 = arith.andi %421, %423 : vector<32x32xi1>
    %cst_233 = arith.constant 0.000000e+00 : f32
    %425 = vector.broadcast %cst_233 : f32 to vector<32x32xf32>
    %426 = arith.select %424, %419, %425 : vector<32x32xi1>, vector<32x32xf32>
    %c64_234 = arith.constant 64 : index
    %c0_235 = arith.constant 0 : index
    %427 = vector.load %arg26[%c64_234, %c0_235] : memref<288x512xf32, #tpu.memory_space<vmem>>, vector<32x32xf32>
    tpu.vector_store %arg26[%c64_234, %c0_235], %426 {strides = array<i32>} : memref<288x512xf32, #tpu.memory_space<vmem>>, vector<32x32xf32>,
    %cst_236 = arith.constant 0.000000e+00 : f32
    %428 = vector.broadcast %cst_236 : f32 to vector<32x1xf32>
    %429 = vector.extract_strided_slice %388 {offsets = [0, 0], sizes = [32, 31], strides = [1, 1]} : vector<32x32xf32> to vector<32x31xf32>
    %430 = tpu.concatenate %428, %429 in 1 : vector<32x1xf32>, vector<32x31xf32> -> vector<32x32xf32>
    %c1_i32_237 = arith.constant 1 : i32
    %431 = vector.broadcast %c1_i32_237 : i32 to vector<32x32xi32>
    %432 = arith.cmpi sge, %393, %431 : vector<32x32xi32>
    %cst_238 = arith.constant 0.000000e+00 : f32
    %433 = vector.broadcast %cst_238 : f32 to vector<32x32xf32>
    %434 = arith.select %432, %430, %433 : vector<32x32xi1>, vector<32x32xf32>
    %c96_239 = arith.constant 96 : index
    %c0_240 = arith.constant 0 : index
    %435 = vector.load %arg26[%c96_239, %c0_240] : memref<288x512xf32, #tpu.memory_space<vmem>>, vector<32x32xf32>
    tpu.vector_store %arg26[%c96_239, %c0_240], %434 {strides = array<i32>} : memref<288x512xf32, #tpu.memory_space<vmem>>, vector<32x32xf32>,
    %c128_241 = arith.constant 128 : index
    %c0_242 = arith.constant 0 : index
    %436 = vector.load %arg26[%c128_241, %c0_242] : memref<288x512xf32, #tpu.memory_space<vmem>>, vector<32x32xf32>
    tpu.vector_store %arg26[%c128_241, %c0_242], %388 {strides = array<i32>} : memref<288x512xf32, #tpu.memory_space<vmem>>, vector<32x32xf32>,
    %cst_243 = arith.constant 0.000000e+00 : f32
    %437 = vector.broadcast %cst_243 : f32 to vector<32x1xf32>
    %438 = vector.extract_strided_slice %388 {offsets = [0, 1], sizes = [32, 31], strides = [1, 1]} : vector<32x32xf32> to vector<32x31xf32>
    %439 = tpu.concatenate %438, %437 in 1 : vector<32x31xf32>, vector<32x1xf32> -> vector<32x32xf32>
    %c3_i32_244 = arith.constant 3 : i32
    %440 = vector.broadcast %c3_i32_244 : i32 to vector<32x32xi32>
    %441 = arith.cmpi slt, %393, %440 : vector<32x32xi32>
    %cst_245 = arith.constant 0.000000e+00 : f32
    %442 = vector.broadcast %cst_245 : f32 to vector<32x32xf32>
    %443 = arith.select %441, %439, %442 : vector<32x32xi1>, vector<32x32xf32>
    %c160_246 = arith.constant 160 : index
    %c0_247 = arith.constant 0 : index
    %444 = vector.load %arg26[%c160_246, %c0_247] : memref<288x512xf32, #tpu.memory_space<vmem>>, vector<32x32xf32>
    tpu.vector_store %arg26[%c160_246, %c0_247], %443 {strides = array<i32>} : memref<288x512xf32, #tpu.memory_space<vmem>>, vector<32x32xf32>,
    %cst_248 = arith.constant 0.000000e+00 : f32
    %445 = vector.broadcast %cst_248 : f32 to vector<32x3xf32>
    %446 = vector.extract_strided_slice %388 {offsets = [0, 3], sizes = [32, 29], strides = [1, 1]} : vector<32x32xf32> to vector<32x29xf32>
    %447 = tpu.concatenate %446, %445 in 1 : vector<32x29xf32>, vector<32x3xf32> -> vector<32x32xf32>
    %c1_i32_249 = arith.constant 1 : i32
    %448 = vector.broadcast %c1_i32_249 : i32 to vector<32x32xi32>
    %449 = arith.cmpi sge, %393, %448 : vector<32x32xi32>
    %c3_i32_250 = arith.constant 3 : i32
    %450 = vector.broadcast %c3_i32_250 : i32 to vector<32x32xi32>
    %451 = arith.cmpi slt, %397, %450 : vector<32x32xi32>
    %452 = arith.andi %449, %451 : vector<32x32xi1>
    %cst_251 = arith.constant 0.000000e+00 : f32
    %453 = vector.broadcast %cst_251 : f32 to vector<32x32xf32>
    %454 = arith.select %452, %447, %453 : vector<32x32xi1>, vector<32x32xf32>
    %c192_252 = arith.constant 192 : index
    %c0_253 = arith.constant 0 : index
    %455 = vector.load %arg26[%c192_252, %c0_253] : memref<288x512xf32, #tpu.memory_space<vmem>>, vector<32x32xf32>
    tpu.vector_store %arg26[%c192_252, %c0_253], %454 {strides = array<i32>} : memref<288x512xf32, #tpu.memory_space<vmem>>, vector<32x32xf32>,
    %cst_254 = arith.constant 0.000000e+00 : f32
    %456 = vector.broadcast %cst_254 : f32 to vector<32x4xf32>
    %457 = vector.extract_strided_slice %388 {offsets = [0, 4], sizes = [32, 28], strides = [1, 1]} : vector<32x32xf32> to vector<32x28xf32>
    %458 = tpu.concatenate %457, %456 in 1 : vector<32x28xf32>, vector<32x4xf32> -> vector<32x32xf32>
    %c3_i32_255 = arith.constant 3 : i32
    %459 = vector.broadcast %c3_i32_255 : i32 to vector<32x32xi32>
    %460 = arith.cmpi slt, %397, %459 : vector<32x32xi32>
    %cst_256 = arith.constant 0.000000e+00 : f32
    %461 = vector.broadcast %cst_256 : f32 to vector<32x32xf32>
    %462 = arith.select %460, %458, %461 : vector<32x32xi1>, vector<32x32xf32>
    %c224_257 = arith.constant 224 : index
    %c0_258 = arith.constant 0 : index
    %463 = vector.load %arg26[%c224_257, %c0_258] : memref<288x512xf32, #tpu.memory_space<vmem>>, vector<32x32xf32>
    tpu.vector_store %arg26[%c224_257, %c0_258], %462 {strides = array<i32>} : memref<288x512xf32, #tpu.memory_space<vmem>>, vector<32x32xf32>,
    %cst_259 = arith.constant 0.000000e+00 : f32
    %464 = vector.broadcast %cst_259 : f32 to vector<32x5xf32>
    %465 = vector.extract_strided_slice %388 {offsets = [0, 5], sizes = [32, 27], strides = [1, 1]} : vector<32x32xf32> to vector<32x27xf32>
    %466 = tpu.concatenate %465, %464 in 1 : vector<32x27xf32>, vector<32x5xf32> -> vector<32x32xf32>
    %c3_i32_260 = arith.constant 3 : i32
    %467 = vector.broadcast %c3_i32_260 : i32 to vector<32x32xi32>
    %468 = arith.cmpi slt, %393, %467 : vector<32x32xi32>
    %c3_i32_261 = arith.constant 3 : i32
    %469 = vector.broadcast %c3_i32_261 : i32 to vector<32x32xi32>
    %470 = arith.cmpi slt, %397, %469 : vector<32x32xi32>
    %471 = arith.andi %468, %470 : vector<32x32xi1>
    %cst_262 = arith.constant 0.000000e+00 : f32
    %472 = vector.broadcast %cst_262 : f32 to vector<32x32xf32>
    %473 = arith.select %471, %466, %472 : vector<32x32xi1>, vector<32x32xf32>
    %c256_263 = arith.constant 256 : index
    %c0_264 = arith.constant 0 : index
    %474 = vector.load %arg26[%c256_263, %c0_264] : memref<288x512xf32, #tpu.memory_space<vmem>>, vector<32x32xf32>
    tpu.vector_store %arg26[%c256_263, %c0_264], %473 {strides = array<i32>} : memref<288x512xf32, #tpu.memory_space<vmem>>, vector<32x32xf32>,
    %c0_265 = arith.constant 0 : index
    %c0_266 = arith.constant 0 : index
    %475 = vector.load %arg26[%c0_265, %c0_266] : memref<288x512xf32, #tpu.memory_space<vmem>>, vector<288x32xf32>
    %cst_267 = arith.constant dense<0.000000e+00> : vector<32x32xf32>
    %476 = tpu.matmul %389, %475, %cst_267 {dimension_numbers = #tpu.dot_dimension_numbers<[1], [0], [0], [1], [0, 0, 1, 1], [], []>} : vector<32x288xf32>, vector<288x32xf32>, vector<32x32xf32> -> vector<32x32xf32>
    %477 = vector.broadcast %390 : vector<32x1xf32> to vector<32x32xf32>
    %478 = arith.addf %476, %477 : vector<32x32xf32>
    %cst_268 = arith.constant 0.000000e+00 : f32
    %479 = vector.broadcast %cst_268 : f32 to vector<32x32xf32>
    %480 = arith.maximumf %478, %479 : vector<32x32xf32>
    %c0_269 = arith.constant 0 : index
    %c0_270 = arith.constant 0 : index
    %481 = vector.load %arg13[%c0_269, %c0_270] : memref<32x8xf32, #tpu.memory_space<vmem>>, vector<32x8xf32>
    %cst_271 = arith.constant 0.000000e+00 : f32
    %482 = vector.broadcast %cst_271 : f32 to vector<32x1xf32>
    %483 = vector.extract_strided_slice %480 {offsets = [0, 1], sizes = [32, 31], strides = [1, 1]} : vector<32x32xf32> to vector<32x31xf32>
    %484 = tpu.concatenate %483, %482 in 1 : vector<32x31xf32>, vector<32x1xf32> -> vector<32x32xf32>
    %485 = arith.maximumf %480, %484 : vector<32x32xf32>
    %cst_272 = arith.constant 0.000000e+00 : f32
    %486 = vector.broadcast %cst_272 : f32 to vector<32x4xf32>
    %487 = vector.extract_strided_slice %485 {offsets = [0, 4], sizes = [32, 28], strides = [1, 1]} : vector<32x32xf32> to vector<32x28xf32>
    %488 = tpu.concatenate %487, %486 in 1 : vector<32x28xf32>, vector<32x4xf32> -> vector<32x32xf32>
    %489 = arith.maximumf %485, %488 : vector<32x32xf32>
    %cst_273 = arith.constant dense<0.000000e+00> : vector<32x8xf32>
    %490 = tpu.matmul %489, %481, %cst_273 {dimension_numbers = #tpu.dot_dimension_numbers<[1], [0], [0], [1], [0, 0, 1, 1], [], []>} : vector<32x32xf32>, vector<32x8xf32>, vector<32x8xf32> -> vector<32x8xf32>
    %c0_274 = arith.constant 0 : index
    %c0_275 = arith.constant 0 : index
    %491 = vector.load %arg14[%c0_274, %c0_275] : memref<8x2xf32, #tpu.memory_space<vmem>>, vector<8x2xf32>
    %cst_276 = arith.constant dense<0.000000e+00> : vector<32x2xf32>
    %492 = tpu.matmul %490, %491, %cst_276 {dimension_numbers = #tpu.dot_dimension_numbers<[1], [0], [0], [1], [0, 0, 1, 1], [], []>} : vector<32x8xf32>, vector<8x2xf32>, vector<32x2xf32> -> vector<32x2xf32>
    %c0_277 = arith.constant 0 : index
    %c0_278 = arith.constant 0 : index
    %493 = vector.load %arg15[%c0_277, %c0_278] : memref<32x32xf32, #tpu.memory_space<vmem>>, vector<32x32xf32>
    %c0_279 = arith.constant 0 : index
    %c0_280 = arith.constant 0 : index
    %494 = vector.load %arg16[%c0_279, %c0_280] : memref<32x1xf32, #tpu.memory_space<vmem>>, vector<32x1xf32>
    %c0_281 = arith.constant 0 : index
    %c0_282 = arith.constant 0 : index
    %495 = vector.load %arg17[%c0_281, %c0_282] : memref<32x1xf32, #tpu.memory_space<vmem>>, vector<32x1xf32>
    %c0_283 = arith.constant 0 : index
    %c0_284 = arith.constant 0 : index
    %496 = vector.load %arg18[%c0_283, %c0_284] : memref<32x1xf32, #tpu.memory_space<vmem>>, vector<32x1xf32>
    %cst_285 = arith.constant dense<0.000000e+00> : vector<32x2xf32>
    %497 = tpu.matmul %493, %492, %cst_285 {dimension_numbers = #tpu.dot_dimension_numbers<[1], [0], [0], [1], [0, 0, 1, 1], [], []>} : vector<32x32xf32>, vector<32x2xf32>, vector<32x2xf32> -> vector<32x2xf32>
    %498 = vector.broadcast %494 : vector<32x1xf32> to vector<32x2xf32>
    %499 = arith.addf %497, %498 : vector<32x2xf32>
    %cst_286 = arith.constant dense<0.000000e+00> : vector<32xf32>
    %500 = vector.multi_reduction <add>, %499, %cst_286 [1] : vector<32x2xf32> to vector<32xf32>
    %501 = vector.shape_cast %500 : vector<32xf32> to vector<32x1xf32>
    %cst_287 = arith.constant 2.000000e+00 : f32
    %502 = vector.broadcast %cst_287 : f32 to vector<32x1xf32>
    %503 = arith.divf %501, %502 : vector<32x1xf32>
    %504 = vector.broadcast %503 : vector<32x1xf32> to vector<32x2xf32>
    %505 = arith.subf %499, %504 : vector<32x2xf32>
    %506 = arith.mulf %505, %505 : vector<32x2xf32>
    %cst_288 = arith.constant dense<0.000000e+00> : vector<32xf32>
    %507 = vector.multi_reduction <add>, %506, %cst_288 [1] : vector<32x2xf32> to vector<32xf32>
    %508 = vector.shape_cast %507 : vector<32xf32> to vector<32x1xf32>
    %cst_289 = arith.constant 2.000000e+00 : f32
    %509 = vector.broadcast %cst_289 : f32 to vector<32x1xf32>
    %510 = arith.divf %508, %509 : vector<32x1xf32>
    %511 = vector.broadcast %503 : vector<32x1xf32> to vector<32x2xf32>
    %512 = arith.subf %499, %511 : vector<32x2xf32>
    %cst_290 = arith.constant 9.99999974E-6 : f32
    %513 = vector.broadcast %cst_290 : f32 to vector<32x1xf32>
    %514 = arith.addf %510, %513 : vector<32x1xf32>
    %515 = math.rsqrt %514 : vector<32x1xf32>
    %516 = vector.broadcast %515 : vector<32x1xf32> to vector<32x2xf32>
    %517 = arith.mulf %512, %516 : vector<32x2xf32>
    %518 = vector.broadcast %495 : vector<32x1xf32> to vector<32x2xf32>
    %519 = arith.mulf %517, %518 : vector<32x2xf32>
    %520 = vector.broadcast %496 : vector<32x1xf32> to vector<32x2xf32>
    %521 = arith.addf %519, %520 : vector<32x2xf32>
    %cst_291 = arith.constant 5.000000e-01 : f32
    %522 = vector.broadcast %cst_291 : f32 to vector<32x2xf32>
    %523 = arith.mulf %522, %521 : vector<32x2xf32>
    %cst_292 = arith.constant 4.471500e-02 : f32
    %524 = vector.broadcast %cst_292 : f32 to vector<32x2xf32>
    %525 = arith.mulf %524, %521 : vector<32x2xf32>
    %526 = arith.mulf %525, %521 : vector<32x2xf32>
    %527 = arith.mulf %526, %521 : vector<32x2xf32>
    %528 = arith.addf %521, %527 : vector<32x2xf32>
    %cst_293 = arith.constant 0.797884583 : f32
    %529 = vector.broadcast %cst_293 : f32 to vector<32x2xf32>
    %530 = arith.mulf %529, %528 : vector<32x2xf32>
    %531 = math.tanh %530 : vector<32x2xf32>
    %cst_294 = arith.constant 1.000000e+00 : f32
    %532 = vector.broadcast %cst_294 : f32 to vector<32x2xf32>
    %533 = arith.addf %532, %531 : vector<32x2xf32>
    %534 = arith.mulf %523, %533 : vector<32x2xf32>
    %c0_295 = arith.constant 0 : index
    %c0_296 = arith.constant 0 : index
    %535 = vector.load %arg19[%c0_295, %c0_296] : memref<32x32xf32, #tpu.memory_space<vmem>>, vector<32x32xf32>
    %c0_297 = arith.constant 0 : index
    %c0_298 = arith.constant 0 : index
    %536 = vector.load %arg20[%c0_297, %c0_298] : memref<32x1xf32, #tpu.memory_space<vmem>>, vector<32x1xf32>
    %c0_299 = arith.constant 0 : index
    %c0_300 = arith.constant 0 : index
    %537 = vector.load %arg21[%c0_299, %c0_300] : memref<32x1xf32, #tpu.memory_space<vmem>>, vector<32x1xf32>
    %c0_301 = arith.constant 0 : index
    %c0_302 = arith.constant 0 : index
    %538 = vector.load %arg22[%c0_301, %c0_302] : memref<32x1xf32, #tpu.memory_space<vmem>>, vector<32x1xf32>
    %cst_303 = arith.constant dense<0.000000e+00> : vector<32x2xf32>
    %539 = tpu.matmul %535, %534, %cst_303 {dimension_numbers = #tpu.dot_dimension_numbers<[1], [0], [0], [1], [0, 0, 1, 1], [], []>} : vector<32x32xf32>, vector<32x2xf32>, vector<32x2xf32> -> vector<32x2xf32>
    %540 = vector.broadcast %536 : vector<32x1xf32> to vector<32x2xf32>
    %541 = arith.addf %539, %540 : vector<32x2xf32>
    %cst_304 = arith.constant dense<0.000000e+00> : vector<32xf32>
    %542 = vector.multi_reduction <add>, %541, %cst_304 [1] : vector<32x2xf32> to vector<32xf32>
    %543 = vector.shape_cast %542 : vector<32xf32> to vector<32x1xf32>
    %cst_305 = arith.constant 2.000000e+00 : f32
    %544 = vector.broadcast %cst_305 : f32 to vector<32x1xf32>
    %545 = arith.divf %543, %544 : vector<32x1xf32>
    %546 = vector.broadcast %545 : vector<32x1xf32> to vector<32x2xf32>
    %547 = arith.subf %541, %546 : vector<32x2xf32>
    %548 = arith.mulf %547, %547 : vector<32x2xf32>
    %cst_306 = arith.constant dense<0.000000e+00> : vector<32xf32>
    %549 = vector.multi_reduction <add>, %548, %cst_306 [1] : vector<32x2xf32> to vector<32xf32>
    %550 = vector.shape_cast %549 : vector<32xf32> to vector<32x1xf32>
    %cst_307 = arith.constant 2.000000e+00 : f32
    %551 = vector.broadcast %cst_307 : f32 to vector<32x1xf32>
    %552 = arith.divf %550, %551 : vector<32x1xf32>
    %553 = vector.broadcast %545 : vector<32x1xf32> to vector<32x2xf32>
    %554 = arith.subf %541, %553 : vector<32x2xf32>
    %cst_308 = arith.constant 9.99999974E-6 : f32
    %555 = vector.broadcast %cst_308 : f32 to vector<32x1xf32>
    %556 = arith.addf %552, %555 : vector<32x1xf32>
    %557 = math.rsqrt %556 : vector<32x1xf32>
    %558 = vector.broadcast %557 : vector<32x1xf32> to vector<32x2xf32>
    %559 = arith.mulf %554, %558 : vector<32x2xf32>
    %560 = vector.broadcast %537 : vector<32x1xf32> to vector<32x2xf32>
    %561 = arith.mulf %559, %560 : vector<32x2xf32>
    %562 = vector.broadcast %538 : vector<32x1xf32> to vector<32x2xf32>
    %563 = arith.addf %561, %562 : vector<32x2xf32>
    %cst_309 = arith.constant 5.000000e-01 : f32
    %564 = vector.broadcast %cst_309 : f32 to vector<32x2xf32>
    %565 = arith.mulf %564, %563 : vector<32x2xf32>
    %cst_310 = arith.constant 4.471500e-02 : f32
    %566 = vector.broadcast %cst_310 : f32 to vector<32x2xf32>
    %567 = arith.mulf %566, %563 : vector<32x2xf32>
    %568 = arith.mulf %567, %563 : vector<32x2xf32>
    %569 = arith.mulf %568, %563 : vector<32x2xf32>
    %570 = arith.addf %563, %569 : vector<32x2xf32>
    %cst_311 = arith.constant 0.797884583 : f32
    %571 = vector.broadcast %cst_311 : f32 to vector<32x2xf32>
    %572 = arith.mulf %571, %570 : vector<32x2xf32>
    %573 = math.tanh %572 : vector<32x2xf32>
    %cst_312 = arith.constant 1.000000e+00 : f32
    %574 = vector.broadcast %cst_312 : f32 to vector<32x2xf32>
    %575 = arith.addf %574, %573 : vector<32x2xf32>
    %576 = arith.mulf %565, %575 : vector<32x2xf32>
    %c0_313 = arith.constant 0 : index
    %c0_314 = arith.constant 0 : index
    %577 = vector.load %arg23[%c0_313, %c0_314] : memref<1x32xf32, #tpu.memory_space<vmem>>, vector<1x32xf32>
    %c0_315 = arith.constant 0 : index
    %c0_316 = arith.constant 0 : index
    %578 = vector.load %arg24[%c0_315, %c0_316] : memref<1x1xf32, #tpu.memory_space<vmem>>, vector<1x1xf32>
    %cst_317 = arith.constant dense<0.000000e+00> : vector<1x2xf32>
    %579 = tpu.matmul %577, %576, %cst_317 {dimension_numbers = #tpu.dot_dimension_numbers<[1], [0], [0], [1], [0, 0, 1, 1], [], []>} : vector<1x32xf32>, vector<32x2xf32>, vector<1x2xf32> -> vector<1x2xf32>
    %580 = vector.broadcast %578 : vector<1x1xf32> to vector<1x2xf32>
    %581 = arith.addf %579, %580 : vector<1x2xf32>
    %c0_318 = arith.constant 0 : index
    %c0_319 = arith.constant 0 : index
    %582 = vector.load %arg25[%c0_318, %c0_319] : memref<1x2xf32, #tpu.memory_space<vmem>>, vector<1x2xf32>
    tpu.vector_store %arg25[%c0_318, %c0_319], %581 {strides = array<i32>} : memref<1x2xf32, #tpu.memory_space<vmem>>, vector<1x2xf32>,
    return
  }
}

</mosaic_0001>

<bundles_post_ra>
// kernel: vgg_forward.1
= control target key start
LH: loop header
LB: loop body
LE: loop exit
PB: predicated region body
PF: predicated region fallthrough
CT: control target
= control target key end

     0   :  { %s6498_s0 = inlined_call_operand.vmem [shape: f32[4,512], index: 0, kind: input, shape index: {}]   ;;  %s6499_s1 = inlined_call_operand.vmem [shape: f32[16,36], index: 1, kind: input, shape index: {}]   ;;  %s6500_s2 = inlined_call_operand.vmem [shape: f32[16,1], index: 2, kind: input, shape index: {}]   ;;  %s6501_s3 = inlined_call_operand.vmem [shape: f32[512,128], index: 3, kind: input, shape index: {}]   ;;  %s6502_s4 = inlined_call_operand.vmem [shape: f32[32,144], index: 4, kind: input, shape index: {}]   ;;  %s6503_s5 = inlined_call_operand.vmem [shape: f32[32,1], index: 5, kind: input, shape index: {}]   ;;  %s6504_s6 = inlined_call_operand.vmem [shape: f32[32,288], index: 6, kind: input, shape index: {}]   ;;  %s6505_s7 = inlined_call_operand.vmem [shape: f32[32,1], index: 7, kind: input, shape index: {}]   ;;  %s6506_s8 = inlined_call_operand.vmem [shape: f32[128,32], index: 8, kind: input, shape index: {}]   ;;  %s6507_s9 = inlined_call_operand.vmem [shape: f32[32,288], index: 9, kind: input, shape index: {}]   ;;  %s6508_s10 = inlined_call_operand.vmem [shape: f32[32,1], index: 10, kind: input, shape index: {}]   ;;  %s6509_s11 = inlined_call_operand.vmem [shape: f32[32,288], index: 11, kind: input, shape index: {}]   ;;  %s6510_s12 = inlined_call_operand.vmem [shape: f32[32,1], index: 12, kind: input, shape index: {}]   ;;  %s6511_s13 = inlined_call_operand.vmem [shape: f32[32,8], index: 13, kind: input, shape index: {}]   ;;  %s6512_s14 = inlined_call_operand.vmem [shape: f32[8,2], index: 14, kind: input, shape index: {}]   ;;  %s6513_s15 = inlined_call_operand.vmem [shape: f32[32,32], index: 15, kind: input, shape index: {}]   ;;  %s6514_s16 = inlined_call_operand.vmem [shape: f32[32,1], index: 16, kind: input, shape index: {}]   ;;  %s6515_s17 = inlined_call_operand.vmem [shape: f32[32,1], index: 17, kind: input, shape index: {}]   ;;  %s6516_s18 = inlined_call_operand.vmem [shape: f32[32,1], index: 18, kind: input, shape index: {}]   ;;  %s6517_s19 = inlined_call_operand.vmem [shape: f32[32,32], index: 19, kind: input, shape index: {}]   ;;  %s6518_s20 = inlined_call_operand.vmem [shape: f32[32,1], index: 20, kind: input, shape index: {}]   ;;  %s6519_s21 = inlined_call_operand.vmem [shape: f32[32,1], index: 21, kind: input, shape index: {}]   ;;  %s6520_s22 = inlined_call_operand.vmem [shape: f32[32,1], index: 22, kind: input, shape index: {}]   ;;  %s6521_s23 = inlined_call_operand.vmem [shape: f32[1,32], index: 23, kind: input, shape index: {}]   ;;  %s6522_s24 = inlined_call_operand.<no memory space> [shape: f32[1,1], index: 24, kind: input, shape index: {}]   ;;  %s6523_s25 = inlined_call_operand.hbm [shape: f32[1,2], index: 25, kind: output, shape index: {}]  }
   0x1   :  { %6564 = sst [smem:[#allocation7_spill]] %s6498_s0  ;;  %v30_v0 = vstv %s6522_s24 }
   0x2   :  { %6565 = sst [smem:[#allocation8_spill]] %s6499_s1  ;;  %31 = vst [vmem:[#allocation3] sm:$0x1] %v30_v0 }
   0x3   :  { %6566 = sst [smem:[#allocation9_spill]] %s6500_s2 }
   0x4   :  { %6567 = sst [smem:[#allocation10_spill]] %s6501_s3 }
   0x5   :  { %6568 = sst [smem:[#allocation11_spill]] %s6502_s4 }
   0x6   :  { %6569 = sst [smem:[#allocation12_spill]] %s6503_s5 }
   0x7   :  { %6570 = sst [smem:[#allocation13_spill]] %s6504_s6 }
   0x8   :  { %6571 = sst [smem:[#allocation14_spill]] %s6505_s7 }
   0x9   :  { %6572 = sst [smem:[#allocation15_spill]] %s6506_s8 }
   0xa   :  { %6573 = sst [smem:[#allocation16_spill]] %s6507_s9 }
   0xb   :  { %s6574_s7 = sld [smem:[#allocation7_spill]]  ;;  %s4594_s1 = smov 16  }
  0x11   :  { %v84_v1 = vld [vmem:[%s6574_s7 + $0x8] sm:$0xff]  ;;  %v83_v2 = vld [vmem:[%s6574_s7] sm:$0xff] }
  0x12   :  { %151 = vrot.lane.b32.xlu1 %v84_v1, %s4594_s1  ;;  %258 = vst [vmem:[#allocation2 + $0x50] sm:$0xf] %v84_v1  ;;  %147 = vrot.lane.b32.xlu0 %v83_v2, %s4594_s1  ;;  %256 = vst [vmem:[#allocation2 + $0x40] sm:$0xf] %v83_v2  ;;  %v109_v3 = vcombine.high %v84_v1, %v84_v1  ;;  %v108_v4 = vcombine.high %v83_v2, %v83_v2 }
  0x13   :  { %32 = vsyncpa [#allocation5], 0  ;;  %s6539_s24 = smov 1   ;;  %s4596_s8 = smov 17   ;;  %v4602_v5 = vmov 0.0   ;;  %v4603_v8 = vmov 0   ;;  %v89_v9 = vlaneseq }
  0x14   :  { %259 = vst [vmem:[#allocation2 + $0x58] sm:$0xf] %v109_v3  ;;  %257 = vst [vmem:[#allocation2 + $0x48] sm:$0xf] %v108_v4  ;;  %s4597_s27 = smov 15   ;;  %s4598_s4 = smov 127   ;;  %510 = vmatprep.mubr.f32.mxu0 %v4602_v5  ;;  %587 = vmatprep.mubr.f32.mxu1 %v4602_v5 }
  0x15   :  { %s4599_s28 = smov 112   ;;  %s4600_s9 = smov 113   ;;  %4396 = vset.pattern.permute.xlu0 %v4603_v8  ;;  %4397 = vset.pattern.permute.xlu1 %v4603_v8  ;;  %v4779_v10 = vand.u32 127, %v89_v9  ;;  %vm6535_vm0 = vcmask 130048   ;;  %vm6534_vm6 = vcmask 7168   ;;  %vm118_vm10 = vcmask 138240  }
  0x16   :  { %153 = vrot.lane.b32.xlu1 %v109_v3, %s4594_s1  ;;  %149 = vrot.lane.b32.xlu0 %v108_v4, %s4594_s1  ;;  %s4601_s5 = smov 111   ;;  %s6575_s2 = sld [smem:[#allocation9_spill]] }
  0x17   :  { %v98_v11 = vand.u32 255, %v4779_v10  ;;  %v4783_v12 = vadd.s32 384, %v4779_v10  ;;  %v4786_v13 = vadd.s32 128, %v4779_v10  ;;  %v4789_v14 = vadd.s32 256, %v4779_v10  ;;  %s6595_s26 = sld [smem:[#allocation8_spill]]  ;;  %s4607_s3 = smov 7  }
  0x18   :  { %v4804_v24 = vand.u32 15, %v4779_v10  ;;  %s6541_s1 = smov 120   ;;  %s6613_s0 = sld [smem:[#allocation11_spill]] }
  0x19   :  { %v4791_v15 = vshra.s32 %v98_v11, 4  ;;  %v101_v16 = vand.u32 255, %v4783_v12  ;;  %v99_v17 = vand.u32 255, %v4786_v13  ;;  %v100_v18 = vand.u32 255, %v4789_v14  ;;  %s6614_s6 = sld [smem:[#allocation12_spill]]  ;;  %s6652_s30 = smov 1  }
  0x1a   :  { %219 = vrot.lane.b32.xlu1 %v108_v4, %s6539_s24  ;;  %217 = vrot.lane.b32.xlu0 %v83_v2, %s6539_s24  ;;  %v95_v27 = vand.u32 15, %v4786_v13  ;;  %vm6536_vm5 = vcmp.ge.s32.totalorder %v4804_v24, 1  ;;  %v96_v34 = vand.u32 15, %v4789_v14  ;;  %v97_v42 = vand.u32 15, %v4783_v12  ;;  %s6726_s29 = smov 124  }
  0x1b   :  { %vm131_vm1 = vcmp.ge.s32.totalorder %v4791_v15, 1  ;;  %v4797_v19 = vshra.s32 %v101_v16, 4  ;;  %v4799_v20 = vshra.s32 %v99_v17, 4  ;;  %v4801_v21 = vshra.s32 %v100_v18, 4 }
  0x1c   :  { %v87_v6 = vld [vmem:[%s6575_s2] sm:$0xff]  ;;  %v88_v7 = vld [vmem:[%s6575_s2 + $0x8] sm:$0xff]  ;;  %vm4824_vm7 = vcmp.ge.s32.totalorder %v95_v27, 1  ;;  %vm4835_vm8 = vcmp.ge.s32.totalorder %v96_v34, 1  ;;  %vm4839_vm9 = vcmp.ge.s32.totalorder %v97_v42, 1  ;;  %vm135_vm11 = vmand %vm6536_vm5, %vm131_vm1  ;;  %vm201_vm15 = vcmp.lt.s32.totalorder %v4804_v24, 15 }
  0x1d   :  { %vm134_vm2 = vcmp.ge.s32.totalorder %v4797_v19, 1  ;;  %vm132_vm3 = vcmp.ge.s32.totalorder %v4799_v20, 1  ;;  %vm133_vm4 = vcmp.ge.s32.totalorder %v4801_v21, 1  ;;  %s6705_s2 = sld [smem:[#allocation16_spill]] }
  0x1e   :  { %223 = vrot.lane.b32.xlu1 %v109_v3, %s6539_s24  ;;  %221 = vrot.lane.b32.xlu0 %v84_v1, %s6539_s24  ;;  %vm136_vm12 = vmand %vm4824_vm7, %vm132_vm3 }
  0x1f   :  { %vm137_vm13 = vmand %vm4835_vm8, %vm133_vm4 }
  0x20   :  { %vm138_vm14 = vmand %vm4839_vm9, %vm134_vm2 }
  0x22   :  { %112 = vrot.lane.b32.xlu1 %v108_v4, %s4596_s8  ;;  %110 = vrot.lane.b32.xlu0 %v83_v2, %s4596_s8 }
  0x26   :  { %116 = vrot.lane.b32.xlu1 %v109_v3, %s4596_s8  ;;  %114 = vrot.lane.b32.xlu0 %v84_v1, %s4596_s8  ;;  %s4610_s8 = smov 119  }
  0x2a   :  { %186 = vrot.lane.b32.xlu1 %v108_v4, %s4597_s27  ;;  %184 = vrot.lane.b32.xlu0 %v83_v2, %s4597_s27 }
  0x2e   :  { %190 = vrot.lane.b32.xlu1 %v109_v3, %s4597_s27  ;;  %188 = vrot.lane.b32.xlu0 %v84_v1, %s4597_s27  ;;  %s6653_s27 = sld [smem:[#allocation13_spill]] }
  0x32   :  { %264 = vrot.lane.b32.xlu1 %v84_v1, %s4598_s4  ;;  %262 = vrot.lane.b32.xlu0 %v108_v4, %s4598_s4 }
  0x36   :  { %332 = vrot.lane.b32.xlu1 %v108_v4, %s4599_s28  ;;  %266 = vrot.lane.b32.xlu0 %v109_v3, %s4598_s4 }
  0x3a   :  { %336 = vrot.lane.b32.xlu1 %v109_v3, %s4599_s28  ;;  %334 = vrot.lane.b32.xlu0 %v84_v1, %s4599_s28 }
  0x3e   :  { %330 = vrot.lane.b32.xlu1 %v83_v2, %s4599_s28  ;;  %260 = vrot.lane.b32.xlu0 %v83_v2, %s4598_s4 }
  0x42   :  { %301 = vrot.lane.b32.xlu1 %v84_v1, %s4600_s9  ;;  %299 = vrot.lane.b32.xlu0 %v108_v4, %s4600_s9 }
  0x46   :  { %297 = vrot.lane.b32.xlu1 %v83_v2, %s4600_s9  ;;  %303 = vrot.lane.b32.xlu0 %v109_v3, %s4600_s9  ;;  %s4613_s9 = smov 125  }
  0x4a   :  { %371 = vrot.lane.b32.xlu1 %v84_v1, %s4601_s5  ;;  %369 = vrot.lane.b32.xlu0 %v108_v4, %s4601_s5 }
  0x4e   :  { %367 = vrot.lane.b32.xlu1 %v83_v2, %s4601_s5  ;;  %373 = vrot.lane.b32.xlu0 %v109_v3, %s4601_s5  ;;  %s6596_s5 = sld [smem:[#allocation10_spill]] }
  0x52   :  { %418 = vperm.xlu0 %4396, %v87_v6   ;;  %423 = vperm.xlu1 %4397, %v88_v7  }
  0x84   :  { %v152_v22 = vpop.permute.xlu1 %151  ;;  %v148_v23 = vpop.permute.xlu0 %147 }
  0x85   :  { %v163_v25 = vsel %vm6535_vm0, 0.0, %v148_v23 }
  0x86   :  { %v164_v26 = vsel %vm131_vm1, %v163_v25, 0.0 }
  0x87   :  { %v172_v28 = vrot.slane %v164_v26, 4 }
  0x88   :  { %v154_v29 = vpop.permute.xlu1 %153  ;;  %v150_v30 = vpop.permute.xlu0 %149 }
  0x89   :  { %180 = vst [vmem:[#allocation2] sm:$0xf0] %v172_v28  ;;  %v158_v31 = vsel %vm6535_vm0, %v152_v22, %v154_v29  ;;  %v156_v32 = vsel %vm6535_vm0, %v148_v23, %v150_v30  ;;  %v157_v33 = vsel %vm6535_vm0, %v150_v30, %v152_v22 }
  0x8a   :  { %v167_v35 = vsel %vm134_vm2, %v158_v31, 0.0  ;;  %v165_v36 = vsel %vm132_vm3, %v156_v32, 0.0  ;;  %v166_v37 = vsel %vm133_vm4, %v157_v33, 0.0 }
  0x8b   :  { %v175_v39 = vrot.slane %v167_v35, 4  ;;  %v173_v40 = vrot.slane %v165_v36, 4  ;;  %v174_v41 = vrot.slane %v166_v37, 4 }
  0x8c   :  { %v220_v43 = vpop.permute.xlu1 %219  ;;  %v218_v44 = vpop.permute.xlu0 %217 }
  0x8d   :  { %183 = vst [vmem:[#allocation2 + $0x18] sm:$0xf0] %v175_v39  ;;  %181 = vst [vmem:[#allocation2 + $0x8] sm:$0xf0] %v173_v40  ;;  %v226_v45 = vsel %vm6534_vm6, %v218_v44, %v220_v43  ;;  %v233_v46 = vsel %vm6534_vm6, 0.0, %v218_v44 }
  0x8e   :  { %182 = vst [vmem:[#allocation2 + $0x10] sm:$0xf0] %v174_v41  ;;  %v234_v47 = vsel %vm6536_vm5, %v233_v46, 0.0  ;;  %v235_v48 = vsel %vm4824_vm7, %v226_v45, 0.0  ;;  %vm4882_vm5 = vcmp.lt.s32.totalorder %v96_v34, 15 }
  0x8f   :  { %v242_v49 = vrot.slane %v234_v47, 4  ;;  %v243_v50 = vrot.slane %v235_v48, 4 }
  0x90   :  { %v224_v53 = vpop.permute.xlu1 %223  ;;  %v222_v54 = vpop.permute.xlu0 %221 }
  0x91   :  { %250 = vst [vmem:[#allocation2 + $0x20] sm:$0xf0] %v242_v49  ;;  %251 = vst [vmem:[#allocation2 + $0x28] sm:$0xf0] %v243_v50  ;;  %v227_v55 = vsel %vm6534_vm6, %v220_v43, %v222_v54  ;;  %v228_v56 = vsel %vm6534_vm6, %v222_v54, %v224_v53  ;;  %vm4868_vm6 = vcmp.lt.s32.totalorder %v95_v27, 15 }
  0x92   :  { %v236_v57 = vsel %vm4835_vm8, %v227_v55, 0.0  ;;  %v237_v58 = vsel %vm4839_vm9, %v228_v56, 0.0  ;;  %vm206_vm0 = vmand %vm4868_vm6, %vm132_vm3 }
  0x93   :  { %v244_v59 = vrot.slane %v236_v57, 4  ;;  %v245_v60 = vrot.slane %v237_v58, 4 }
  0x94   :  { %v113_v61 = vpop.permute.xlu1 %112  ;;  %v111_v62 = vpop.permute.xlu0 %110 }
  0x95   :  { %252 = vst [vmem:[#allocation2 + $0x30] sm:$0xf0] %v244_v59  ;;  %253 = vst [vmem:[#allocation2 + $0x38] sm:$0xf0] %v245_v60  ;;  %v119_v63 = vsel %vm118_vm10, %v111_v62, %v113_v61  ;;  %v126_v0 = vsel %vm118_vm10, 0.0, %v111_v62 }
  0x96   :  { %v139_v1 = vsel %vm135_vm11, %v126_v0, 0.0  ;;  %v140_v2 = vsel %vm136_vm12, %v119_v63, 0.0  ;;  %vm192_vm11 = vcmask 121856   ;;  %vm205_vm12 = vmand %vm201_vm15, %vm131_vm1 }
  0x97   :  { %143 = vst [vmem:[#allocation2] sm:$0xf] %v139_v1  ;;  %144 = vst [vmem:[#allocation2 + $0x8] sm:$0xf] %v140_v2 }
  0x98   :  { %v117_v3 = vpop.permute.xlu1 %116  ;;  %v115_v4 = vpop.permute.xlu0 %114  ;;  %vm207_vm1 = vmand %vm4882_vm5, %vm133_vm4  ;;  %vm317_vm4 = vcmp.lt.s32.totalorder %v4797_v19, 15 }
  0x99   :  { %v120_v7 = vsel %vm118_vm10, %v113_v61, %v115_v4  ;;  %v121_v8 = vsel %vm118_vm10, %v115_v4, %v117_v3  ;;  %vm4886_vm10 = vcmp.lt.s32.totalorder %v97_v42, 15 }
  0x9a   :  { %v141_v11 = vsel %vm137_vm13, %v120_v7, 0.0  ;;  %v142_v12 = vsel %vm138_vm14, %v121_v8, 0.0  ;;  %vm208_vm3 = vmand %vm4886_vm10, %vm134_vm2  ;;  %vm6537_vm2 = vcmask 916480   ;;  %vm315_vm13 = vcmp.lt.s32.totalorder %v4799_v20, 15  ;;  %v657_v20 = vld [vmem:[%s6596_s5 + $0x188] sm:$0xff] }
  0x9b   :  { %145 = vst [vmem:[#allocation2 + $0x10] sm:$0xf] %v141_v11  ;;  %146 = vst [vmem:[#allocation2 + $0x18] sm:$0xf] %v142_v12  ;;  %vm316_vm14 = vcmp.lt.s32.totalorder %v4801_v21, 15 }
  0x9c   :  { %v187_v14 = vpop.permute.xlu1 %186  ;;  %v185_v16 = vpop.permute.xlu0 %184 }
  0x9d   :  { %v193_v18 = vsel %vm192_vm11, %v185_v16, %v187_v14  ;;  %v200_v22 = vsel %vm192_vm11, 0.0, %v185_v16 }
  0x9e   :  { %v209_v23 = vsel %vm205_vm12, %v200_v22, 0.0  ;;  %v210_v25 = vsel %vm206_vm0, %v193_v18, 0.0  ;;  %vm6538_vm0 = vcmask 1039360   ;;  %v397_v35 = vld [vmem:[#allocation2 + $0x8] sm:$0xff]  ;;  %v396_v39 = vld [vmem:[#allocation2] sm:$0xff]  ;;  %vm305_vm12 = vcmask 924672  }
  0x9f   :  { %213 = vst [vmem:[#allocation2 + $0x20] sm:$0xf] %v209_v23  ;;  %214 = vst [vmem:[#allocation2 + $0x28] sm:$0xf] %v210_v25 }
  0xa0   :  { %v191_v26 = vpop.permute.xlu1 %190  ;;  %v189_v27 = vpop.permute.xlu0 %188 }
  0xa1   :  { %v194_v28 = vsel %vm192_vm11, %v187_v14, %v189_v27  ;;  %v195_v29 = vsel %vm192_vm11, %v189_v27, %v191_v26  ;;  %vm314_vm11 = vcmp.lt.s32.totalorder %v4791_v15, 15 }
  0xa2   :  { %v211_v30 = vsel %vm207_vm1, %v194_v28, 0.0  ;;  %v212_v31 = vsel %vm208_vm3, %v195_v29, 0.0  ;;  %v399_v48 = vld [vmem:[#allocation2 + $0x18] sm:$0xff]  ;;  %v398_v54 = vld [vmem:[#allocation2 + $0x10] sm:$0xff]  ;;  %vm319_vm1 = vmand %vm4824_vm7, %vm315_vm13  ;;  %vm6588_vm3 = vcmp.ge.s32.totalorder %v4804_v24, 1 }
  0xa3   :  { %215 = vst [vmem:[#allocation2 + $0x30] sm:$0xf] %v211_v30  ;;  %216 = vst [vmem:[#allocation2 + $0x38] sm:$0xf] %v212_v31 }
  0xa4   :  { %v265_v32 = vpop.permute.xlu1 %264  ;;  %v263_v33 = vpop.permute.xlu0 %262  ;;  %vm321_vm7 = vmand %vm4839_vm9, %vm317_vm4 }
  0xa5   :  { %v270_v34 = vsel %vm6538_vm0, %v263_v33, %v265_v32  ;;  %vm4959_vm9 = vmand %vm201_vm15, %vm314_vm11 }
  0xa6   :  { %v278_v36 = vsel %vm4868_vm6, %v270_v34, 0.0  ;;  %v401_v37 = vld [vmem:[#allocation2 + $0x28] sm:$0xff]  ;;  %v400_v40 = vld [vmem:[#allocation2 + $0x20] sm:$0xff] }
  0xa7   :  { %v286_v41 = vrot.slane %v278_v36, 4  ;;  %v4082_v42 = vpack.c.bf16 %v401_v37, %v397_v35  ;;  %v4084_v43 = vpack.c.bf16 %v400_v40, %v396_v39 }
  0xa8   :  { %v333_v44 = vpop.permute.xlu1 %332  ;;  %v267_v45 = vpop.permute.xlu0 %266 }
  0xa9   :  { %294 = vst [vmem:[#allocation2 + $0x48] sm:$0xf0] %v286_v41  ;;  %v271_v46 = vsel %vm6538_vm0, %v265_v32, %v267_v45  ;;  %v276_v47 = vsel %vm6538_vm0, %v267_v45, 0.0  ;;  %4083 = vmatprep.subr.bf16.mxu0 %v4082_v42 }
  0xaa   :  { %v279_v49 = vsel %vm4882_vm5, %v271_v46, 0.0  ;;  %v280_v50 = vsel %vm4886_vm10, %v276_v47, 0.0  ;;  %4085 = vmatpush1.bf16.msra.mxu0 %v4084_v43  ;;  %v403_v53 = vld [vmem:[#allocation2 + $0x38] sm:$0xff]  ;;  %v402_v55 = vld [vmem:[#allocation2 + $0x30] sm:$0xff] }
  0xab   :  { %v287_v56 = vrot.slane %v279_v49, 4  ;;  %v288_v57 = vrot.slane %v280_v50, 4  ;;  %v4090_v58 = vpack.c.bf16 %v403_v53, %v399_v48  ;;  %v4092_v59 = vpack.c.bf16 %v402_v55, %v398_v54 }
  0xac   :  { %v337_v60 = vpop.permute.xlu1 %336  ;;  %v335_v61 = vpop.permute.xlu0 %334 }
  0xad   :  { %295 = vst [vmem:[#allocation2 + $0x50] sm:$0xf0] %v287_v56  ;;  %296 = vst [vmem:[#allocation2 + $0x58] sm:$0xf0] %v288_v57  ;;  %v346_v62 = vsel %vm6537_vm2, %v337_v60, 0.0  ;;  %v340_v63 = vsel %vm6537_vm2, %v333_v44, %v335_v61  ;;  %v341_v0 = vsel %vm6537_vm2, %v335_v61, %v337_v60  ;;  %4091 = vmatprep.subr.bf16.mxu1 %v4090_v58 }
  0xae   :  { %v350_v1 = vsel %vm317_vm4, %v346_v62, 0.0  ;;  %v348_v2 = vsel %vm315_vm13, %v340_v63, 0.0  ;;  %v349_v3 = vsel %vm316_vm14, %v341_v0, 0.0  ;;  %4093 = vmatpush1.bf16.msra.mxu1 %v4092_v59  ;;  %v85_v59 = vld [vmem:[%s6595_s26] sm:$0xff]  ;;  %v86_v63 = vld [vmem:[%s6595_s26 + $0x8] sm:$0xff]  ;;  %s4608_s26 = smov 121  }
  0xaf   :  { %v358_v4 = vrot.slane %v350_v1, 4  ;;  %v356_v7 = vrot.slane %v348_v2, 4  ;;  %v357_v8 = vrot.slane %v349_v3, 4 }
  0xb0   :  { %v331_v11 = vpop.permute.xlu1 %330  ;;  %v261_v12 = vpop.permute.xlu0 %260  ;;  %v405_v6 = vld [vmem:[#allocation2 + $0x48] sm:$0xff] }
  0xb1   :  { %366 = vst [vmem:[#allocation2 + $0x78] sm:$0xf0] %v358_v4  ;;  %364 = vst [vmem:[#allocation2 + $0x68] sm:$0xf0] %v356_v7  ;;  %v339_v14 = vsel %vm6537_vm2, %v331_v11, %v333_v44  ;;  %v269_v16 = vsel %vm6538_vm0, %v261_v12, %v263_v33 }
  0xb2   :  { %365 = vst [vmem:[#allocation2 + $0x70] sm:$0xf0] %v357_v8  ;;  %v347_v18 = vsel %vm314_vm11, %v339_v14, 0.0  ;;  %v277_v22 = vsel %vm201_vm15, %v269_v16, 0.0  ;;  %vm318_vm2 = vmand %vm6588_vm3, %vm314_vm11  ;;  %vm426_vm15 = vcmask 293888  }
  0xb3   :  { %v355_v23 = vrot.slane %v347_v18, 4  ;;  %v285_v25 = vrot.slane %v277_v22, 4  ;;  %vm320_vm0 = vmand %vm4835_vm8, %vm316_vm14 }
  0xb4   :  { %v302_v26 = vpop.permute.xlu1 %301  ;;  %v300_v27 = vpop.permute.xlu0 %299  ;;  %vm385_vm8 = vmand %vm4868_vm6, %vm315_vm13  ;;  %v407_v47 = vld [vmem:[#allocation2 + $0x58] sm:$0xff]  ;;  %v406_v48 = vld [vmem:[#allocation2 + $0x50] sm:$0xff] }
  0xb5   :  { %363 = vst [vmem:[#allocation2 + $0x60] sm:$0xf0] %v355_v23  ;;  %293 = vst [vmem:[#allocation2 + $0x40] sm:$0xf0] %v285_v25  ;;  %v307_v28 = vsel %vm305_vm12, %v300_v27, %v302_v26 }
  0xb6   :  { %v323_v29 = vsel %vm319_vm1, %v307_v28, 0.0  ;;  %vm375_vm1 = vcmask 908288   ;;  %vm4975_vm6 = vmand %vm4886_vm10, %vm317_vm4  ;;  %vm6597_vm10 = vcmask 1039360  }
  0xb7   :  { %327 = vst [vmem:[#allocation2 + $0x68] sm:$0xf] %v323_v29 }
  0xb8   :  { %v298_v38 = vpop.permute.xlu1 %297  ;;  %v304_v30 = vpop.permute.xlu0 %303 }
  0xb9   :  { %v306_v31 = vsel %vm305_vm12, %v298_v38, %v300_v27  ;;  %v308_v32 = vsel %vm305_vm12, %v302_v26, %v304_v30  ;;  %v313_v33 = vsel %vm305_vm12, %v304_v30, 0.0 }
  0xba   :  { %v322_v34 = vsel %vm318_vm2, %v306_v31, 0.0  ;;  %v324_v35 = vsel %vm320_vm0, %v308_v32, 0.0  ;;  %v325_v36 = vsel %vm321_vm7, %v313_v33, 0.0  ;;  %vm4967_vm0 = vmand %vm4882_vm5, %vm316_vm14  ;;  %vm433_vm5 = vcmask 1043456  }
  0xbb   :  { %326 = vst [vmem:[#allocation2 + $0x60] sm:$0xf] %v322_v34  ;;  %328 = vst [vmem:[#allocation2 + $0x70] sm:$0xf] %v324_v35  ;;  %vm6605_vm7 = vcmask 916480  }
  0xbc   :  { %329 = vst [vmem:[#allocation2 + $0x78] sm:$0xf] %v325_v36  ;;  %v372_v51 = vpop.permute.xlu1 %371  ;;  %v370_v52 = vpop.permute.xlu0 %369  ;;  %v404_v46 = vld [vmem:[#allocation2 + $0x40] sm:$0xff]  ;;  %vm6598_vm2 = vmmov %vm6597_vm10 }
  0xbd   :  { %v377_v37 = vsel %vm375_vm1, %v370_v52, %v372_v51  ;;  %vm6599_vm4 = vmmov %vm6598_vm2 }
  0xbe   :  { %v389_v40 = vsel %vm385_vm8, %v377_v37, 0.0  ;;  %v409_v41 = vld [vmem:[#allocation2 + $0x68] sm:$0xff]  ;;  %v656_v37 = vld [vmem:[%s6596_s5 + $0x180] sm:$0xff]  ;;  %vm6600_vm13 = vmmov %vm6598_vm2 }
  0xbf   :  { %393 = vst [vmem:[#allocation2 + $0x88] sm:$0xf] %v389_v40  ;;  %v4086_v42 = vpack.c.bf16 %v409_v41, %v405_v6  ;;  %v608_v6 = vld [vmem:[%s6596_s5] sm:$0xff]  ;;  %v609_v41 = vld [vmem:[%s6596_s5 + $0x8] sm:$0xff]  ;;  %vm6601_vm14 = vmmov %vm6598_vm2 }
  0xc0   :  { %v368_v43 = vpop.permute.xlu1 %367  ;;  %v374_v21 = vpop.permute.xlu0 %373  ;;  %vm6602_vm11 = vmmov %vm6598_vm2 }
  0xc1   :  { %v376_v13 = vsel %vm375_vm1, %v368_v43, %v370_v52  ;;  %v378_v44 = vsel %vm375_vm1, %v372_v51, %v374_v21  ;;  %v383_v45 = vsel %vm375_vm1, %v374_v21, 0.0  ;;  %4087 = vmatprep.subr.bf16.mxu0 %v4086_v42  ;;  %v624_v51 = vld [vmem:[%s6596_s5 + $0x80] sm:$0xff]  ;;  %v625_v52 = vld [vmem:[%s6596_s5 + $0x88] sm:$0xff]  ;;  %v4130_v42 = vpack.c.bf16 %v657_v20, %v656_v37  ;;  %vm6603_vm12 = vmmov %vm6598_vm2 }
  0xc2   :  { %v388_v19 = vsel %vm4959_vm9, %v376_v13, 0.0  ;;  %v390_v17 = vsel %vm4967_vm0, %v378_v44, 0.0  ;;  %v391_v49 = vsel %vm4975_vm6, %v383_v45, 0.0  ;;  %v408_v50 = vld [vmem:[#allocation2 + $0x60] sm:$0xff]  ;;  %v410_v54 = vld [vmem:[#allocation2 + $0x70] sm:$0xff]  ;;  %v4098_v40 = vpack.c.bf16 %v625_v52, %v624_v51  ;;  %v641_v13 = vld [vmem:[%s6596_s5 + $0x108] sm:$0xff] }
  0xc3   :  { %v411_v53 = vld [vmem:[#allocation2 + $0x78] sm:$0xff]  ;;  %392 = vst [vmem:[#allocation2 + $0x80] sm:$0xf] %v388_v19  ;;  %394 = vst [vmem:[#allocation2 + $0x90] sm:$0xf] %v390_v17  ;;  %v4088_v55 = vpack.c.bf16 %v408_v50, %v404_v46  ;;  %v4096_v57 = vpack.c.bf16 %v410_v54, %v406_v48  ;;  %v4100_v43 = vpack.c.bf16 %v609_v41, %v608_v6  ;;  %v640_v21 = vld [vmem:[%s6596_s5 + $0x100] sm:$0xff] }
  0xc4   :  { %395 = vst [vmem:[#allocation2 + $0x98] sm:$0xf] %v391_v49  ;;  %v4094_v56 = vpack.c.bf16 %v411_v53, %v407_v47  ;;  %v626_v44 = vld [vmem:[%s6596_s5 + $0x90] sm:$0xff]  ;;  %v4132_v46 = vpack.c.bf16 %v641_v13, %v640_v21  ;;  %v627_v47 = vld [vmem:[%s6596_s5 + $0x98] sm:$0xff]  ;;  %v632_v20 = vld [vmem:[%s6596_s5 + $0xc0] sm:$0xff] }
  0xc5   :  { %4089 = vmatpush1.bf16.msra.mxu0 %v4088_v55  ;;  %v658_v48 = vld [vmem:[%s6596_s5 + $0x190] sm:$0xff]  ;;  %v659_v19 = vld [vmem:[%s6596_s5 + $0x198] sm:$0xff]  ;;  %v4102_v17 = vpack.c.bf16 %v627_v47, %v626_v44  ;;  %v633_v6 = vld [vmem:[%s6596_s5 + $0xc8] sm:$0xff] }
  0xc6   :  { %4095 = vmatprep.subr.bf16.mxu1 %v4094_v56  ;;  %v413_v58 = vld [vmem:[#allocation2 + $0x88] sm:$0xf]  ;;  %v4134_v49 = vpack.c.bf16 %v659_v19, %v658_v48  ;;  %v610_v50 = vld [vmem:[%s6596_s5 + $0x10] sm:$0xff]  ;;  %v611_v53 = vld [vmem:[%s6596_s5 + $0x18] sm:$0xff]  ;;  %v4114_v21 = vpack.c.bf16 %v633_v6, %v632_v20 }
  0xc7   :  { %4097 = vmatpush1.bf16.msra.mxu1 %v4096_v57  ;;  %3614 = vmatprep.subr.msk.mxu0 %vm433_vm5, %v413_v58  ;;  %v642_v54 = vld [vmem:[%s6596_s5 + $0x110] sm:$0xff]  ;;  %v4104_v55 = vpack.c.bf16 %v611_v53, %v610_v50  ;;  %v643_v56 = vld [vmem:[%s6596_s5 + $0x118] sm:$0xff]  ;;  %v628_v57 = vld [vmem:[%s6596_s5 + $0xa0] sm:$0xff] }
  0xc8   :  { %v629_v58 = vld [vmem:[%s6596_s5 + $0xa8] sm:$0xff]  ;;  %v615_v51 = vld [vmem:[%s6596_s5 + $0x38] sm:$0xff]  ;;  %v646_v52 = vld [vmem:[%s6596_s5 + $0x130] sm:$0xff] }
  0xc9   :  { %v664_v41 = vld [vmem:[%s6596_s5 + $0x1c0] sm:$0xff]  ;;  %v617_v44 = vld [vmem:[%s6596_s5 + $0x48] sm:$0xff]  ;;  %v634_v48 = vld [vmem:[%s6596_s5 + $0xd0] sm:$0xff] }
  0xca   :  { %v412_v60 = vld [vmem:[#allocation2 + $0x80] sm:$0xf]  ;;  %v414_v62 = vld [vmem:[#allocation2 + $0x90] sm:$0xf]  ;;  %v649_v47 = vld [vmem:[%s6596_s5 + $0x148] sm:$0xff] }
  0xcb   :  { %v415_v61 = vld [vmem:[#allocation2 + $0x98] sm:$0xf]  ;;  %3615 = vmatpush1.msk.msra.mxu0 %vm433_vm5, %v412_v60  ;;  %v4106_v60 = vpack.c.bf16 %v629_v58, %v628_v57  ;;  %v616_v13 = vld [vmem:[%s6596_s5 + $0x40] sm:$0xff]  ;;  %v650_v57 = vld [vmem:[%s6596_s5 + $0x150] sm:$0xff] }
  0xcc   :  { %3618 = vmatprep.subr.msk.mxu1 %vm433_vm5, %v415_v61  ;;  %3616 = vmatmul.mubr.msk.f32.vlgmr.msra.gmra.mrb[0].mxu0 %vm426_vm15, %v85_v59  ;;  %v660_v61 = vld [vmem:[%s6596_s5 + $0x1a0] sm:$0xff]  ;;  %v635_v19 = vld [vmem:[%s6596_s5 + $0xd8] sm:$0xff]  ;;  %v4116_v50 = vpack.c.bf16 %v617_v44, %v616_v13  ;;  %vm6604_vm3 = vmmov %vm6598_vm2 }
  0xcd   :  { %3619 = vmatpush1.msk.msra.mxu1 %vm433_vm5, %v414_v62  ;;  %516 = vmatprep.mubr.f32.mxu0 %v4602_v5  ;;  %v661_v62 = vld [vmem:[%s6596_s5 + $0x1a8] sm:$0xff]  ;;  %v623_v20 = vld [vmem:[%s6596_s5 + $0x78] sm:$0xff]  ;;  %vm6606_vm1 = vmmov %vm6605_vm7 }
  0xce   :  { %3620 = vmatmul.mubr.msk.f32.vlgmr.msra.gmra.mrb[0].mxu1 %vm426_vm15, %v85_v59  ;;  %4099 = vmatprep.subr.bf16.mxu0 %v4098_v40  ;;  %v4136_v59 = vpack.c.bf16 %v643_v56, %v642_v54  ;;  %v647_v40 = vld [vmem:[%s6596_s5 + $0x138] sm:$0xff]  ;;  %v4118_v54 = vpack.c.bf16 %v635_v19, %v634_v48  ;;  %vm6607_vm8 = vmmov %vm6606_vm1 }
  0xcf   :  { %593 = vmatprep.mubr.f32.mxu1 %v4602_v5  ;;  %4131 = vmatprep.subr.bf16.mxu1 %v4130_v42  ;;  %v619_v56 = vld [vmem:[%s6596_s5 + $0x58] sm:$0xff]  ;;  %vm6608_vm9 = vmmov %vm6606_vm1 }
  0xd0   :  { %3617 = vmatmul.mubr.msk.f32.gmra.mrb[2].mxu0 %vm426_vm15, %v86_v63  ;;  %4133 = vmatpush3.bf16.msra.mxu1 %v4132_v46  ;;  %vm6609_vm0 = vmmov %vm6606_vm1 }
  0xd1   :  { %v419_v0 = vpop.permute.xlu0 %418  ;;  %v424_v12 = vpop.permute.xlu1 %423  ;;  %4101 = vmatpush3.bf16.msra.mxu0 %v4100_v43  ;;  %4135 = vmatprep.subr.bf16.mxu1 %v4134_v49  ;;  %v4144_v43 = vpack.c.bf16 %v647_v40, %v646_v52  ;;  %v667_v49 = vld [vmem:[%s6596_s5 + $0x1d8] sm:$0xff]  ;;  %v622_v40 = vld [vmem:[%s6596_s5 + $0x70] sm:$0xff]  ;;  %vm6610_vm6 = vmmov %vm6609_vm0 }
  0xd2   :  { %3621 = vmatmul.mubr.msk.f32.gmra.mrb[2].mxu1 %vm426_vm15, %v86_v63  ;;  %4103 = vmatprep.subr.bf16.mxu0 %v4102_v17  ;;  %v612_v63 = vld [vmem:[%s6596_s5 + $0x20] sm:$0xff]  ;;  %v666_v17 = vld [vmem:[%s6596_s5 + $0x1d0] sm:$0xff]  ;;  %vm6611_vm5 = vmmov %vm6609_vm0 }
  0xd3   :  { %v4150_v58 = vpack.c.bf16 %v667_v49, %v666_v17  ;;  %vm6612_vm15 = vmmov %vm6609_vm0 }
  0xd4   :  { %4137 = vmatpush3.bf16.msra.mxu1 %v4136_v59  ;;  %v651_v59 = vld [vmem:[%s6596_s5 + $0x158] sm:$0xff] }
  0xd5   :  { %4105 = vmatpush3.bf16.msra.mxu0 %v4104_v55  ;;  %v618_v55 = vld [vmem:[%s6596_s5 + $0x50] sm:$0xff] }
  0xd6   :  { %4107 = vmatprep.subr.bf16.mxu0 %v4106_v60  ;;  %v636_v60 = vld [vmem:[%s6596_s5 + $0xe0] sm:$0xff] }
 0x19f   :  { %v512_v1 = vpop.f32.mrb[0].mxu0 }
 0x1a0   :  { %v514_v3 = vpop.f32.mrb[1].mxu0  ;;  %v4996_v4 = vadd.f32 %v512_v1, %v419_v0  ;;  %v613_v1 = vld [vmem:[%s6596_s5 + $0x28] sm:$0xff] }
 0x1a1   :  { %v589_v2 = vpop.f32.mrb[0].mxu1  ;;  %v4998_v7 = vadd.f32 %v514_v3, %v419_v0  ;;  %v645_v3 = vld [vmem:[%s6596_s5 + $0x128] sm:$0xff] }
 0x1a2   :  { %v5000_v8 = vadd.f32 %v589_v2, %v419_v0  ;;  %v591_v11 = vpop.f32.mrb[1].mxu1  ;;  %v600_v16 = vmax.f32 %v4996_v4, 0.0  ;;  %v644_v2 = vld [vmem:[%s6596_s5 + $0x120] sm:$0xff] }
 0x1a3   :  { %v5002_v14 = vadd.f32 %v591_v11, %v419_v0  ;;  %v601_v18 = vmax.f32 %v4998_v7, 0.0  ;;  %v518_v23 = vpop.f32.mrb[2].mxu0  ;;  %v4138_v0 = vpack.c.bf16 %v661_v62, %v660_v61  ;;  %v630_v11 = vld [vmem:[%s6596_s5 + $0xb0] sm:$0xff]  ;;  %v637_v61 = vld [vmem:[%s6596_s5 + $0xe8] sm:$0xff]  ;;  %v668_v62 = vld [vmem:[%s6596_s5 + $0x1e0] sm:$0xff] }
 0x1a4   :  { %v602_v22 = vmax.f32 %v5000_v8, 0.0  ;;  %v520_v26 = vpop.f32.mrb[3].mxu0  ;;  %v5008_v28 = vadd.f32 %v518_v23, %v424_v12  ;;  %v662_v23 = vld [vmem:[%s6596_s5 + $0x1b0] sm:$0xff] }
 0x1a5   :  { %v603_v25 = vmax.f32 %v5002_v14, 0.0  ;;  %v595_v27 = vpop.f32.mrb[2].mxu1  ;;  %v5014_v38 = vadd.f32 %v520_v26, %v424_v12  ;;  %v4108_v26 = vpack.c.bf16 %v613_v1, %v612_v63  ;;  %4139 = vmatprep.subr.bf16.mxu1 %v4138_v0  ;;  %v669_v63 = vld [vmem:[%s6596_s5 + $0x1e8] sm:$0xff]  ;;  %v4120_v0 = vpack.c.bf16 %v619_v56, %v618_v55 }
 0x1a6   :  { %v4398_v29 = vpack.i.bf16 %v602_v22, %v601_v18  ;;  %v5016_v30 = vadd.f32 %v595_v27, %v424_v12  ;;  %v597_v31 = vpop.f32.mrb[3].mxu1  ;;  %v604_v34 = vmax.f32 %v5008_v28, 0.0  ;;  %v663_v27 = vld [vmem:[%s6596_s5 + $0x1b8] sm:$0xff]  ;;  %v4152_v1 = vpack.c.bf16 %v651_v59, %v650_v57 }
 0x1a7   :  { %v4403_v32 = vpack.i.bf16 %v600_v16, %v603_v25  ;;  %v5022_v33 = vadd.f32 %v597_v31, %v424_v12  ;;  %v605_v35 = vmax.f32 %v5014_v38, 0.0  ;;  %v631_v12 = vld [vmem:[%s6596_s5 + $0xb8] sm:$0xff]  ;;  %v4142_v37 = vpack.c.bf16 %v663_v27, %v662_v23  ;;  %4109 = vmatpush3.bf16.msra.mxu0 %v4108_v26  ;;  %v652_v23 = vld [vmem:[%s6596_s5 + $0x160] sm:$0xff]  ;;  %v653_v26 = vld [vmem:[%s6596_s5 + $0x168] sm:$0xff] }
 0x1a8   :  { %v606_v36 = vmax.f32 %v5016_v30, 0.0  ;;  %4399 = vrot.lane.b32.xlu1 %v4398_v29, %s4598_s4  ;;  %v4140_v29 = vpack.c.bf16 %v645_v3, %v644_v2  ;;  %v4110_v31 = vpack.c.bf16 %v631_v12, %v630_v11  ;;  %v4122_v2 = vpack.c.bf16 %v637_v61, %v636_v60  ;;  %v620_v3 = vld [vmem:[%s6596_s5 + $0x60] sm:$0xff]  ;;  %v621_v11 = vld [vmem:[%s6596_s5 + $0x68] sm:$0xff] }
 0x1a9   :  { %v607_v39 = vmax.f32 %v5022_v33, 0.0  ;;  %4404 = vrot.lane.b32.xlu0 %v4403_v32, %s4598_s4  ;;  %v614_v32 = vld [vmem:[%s6596_s5 + $0x30] sm:$0xff]  ;;  %v4154_v12 = vpack.c.bf16 %v669_v63, %v668_v62  ;;  %v4124_v27 = vpack.c.bf16 %v621_v11, %v620_v3 }
 0x1aa   :  { %v4408_v15 = vpack.i.bf16 %v606_v36, %v605_v35  ;;  %v4112_v42 = vpack.c.bf16 %v615_v51, %v614_v32  ;;  %4141 = vmatpush3.bf16.msra.mxu1 %v4140_v29  ;;  %4111 = vmatprep.subr.bf16.mxu0 %v4110_v31  ;;  %v4156_v29 = vpack.c.bf16 %v653_v26, %v652_v23  ;;  %v638_v31 = vld [vmem:[%s6596_s5 + $0xf0] sm:$0xff]  ;;  %v639_v32 = vld [vmem:[%s6596_s5 + $0xf8] sm:$0xff] }
 0x1ab   :  { %v4413_v45 = vpack.i.bf16 %v604_v34, %v607_v39  ;;  %4143 = vmatprep.subr.bf16.mxu1 %v4142_v37  ;;  %v670_v51 = vld [vmem:[%s6596_s5 + $0x1f0] sm:$0xff]  ;;  %v4126_v52 = vpack.c.bf16 %v639_v32, %v638_v31  ;;  %v671_v37 = vld [vmem:[%s6596_s5 + $0x1f8] sm:$0xff] }
 0x1ac   :  { %4409 = vrot.lane.b32.xlu1 %v4408_v15, %s4598_s4  ;;  %v665_v15 = vld [vmem:[%s6596_s5 + $0x1c8] sm:$0xff]  ;;  %4113 = vmatpush3.bf16.msra.mxu0 %v4112_v42  ;;  %v4158_v6 = vpack.c.bf16 %v671_v37, %v670_v51  ;;  %v655_v42 = vld [vmem:[%s6596_s5 + $0x178] sm:$0xff] }
 0x1ad   :  { %4414 = vrot.lane.b32.xlu0 %v4413_v45, %s4598_s4  ;;  %v648_v45 = vld [vmem:[%s6596_s5 + $0x140] sm:$0xff]  ;;  %v4146_v46 = vpack.c.bf16 %v665_v15, %v664_v41  ;;  %4115 = vmatprep.subr.bf16.mxu0 %v4114_v21  ;;  %v4128_v41 = vpack.c.bf16 %v623_v20, %v622_v40  ;;  %v654_v15 = vld [vmem:[%s6596_s5 + $0x170] sm:$0xff]  ;;  %s4606_s5 = smov 8  }
 0x1ae   :  { %4145 = vmatpush3.bf16.msra.mxu1 %v4144_v43  ;;  %v4148_v53 = vpack.c.bf16 %v649_v47, %v648_v45  ;;  %v4160_v43 = vpack.c.bf16 %v655_v42, %v654_v15 }
 0x1af   :  { %4147 = vmatprep.subr.bf16.mxu1 %v4146_v46 }
 0x1b0   :  { %4117 = vmatpush3.bf16.msra.mxu0 %v4116_v50 }
 0x1b1   :  { %4119 = vmatprep.subr.bf16.mxu0 %v4118_v54 }
 0x1b2   :  { %4149 = vmatpush3.bf16.msra.mxu1 %v4148_v53 }
 0x1b3   :  { %4151 = vmatprep.subr.bf16.mxu1 %v4150_v58 }
 0x1b4   :  { %4121 = vmatpush3.bf16.msra.mxu0 %v4120_v0 }
 0x1b5   :  { %4123 = vmatprep.subr.bf16.mxu0 %v4122_v2 }
 0x1b6   :  { %4153 = vmatpush3.bf16.msra.mxu1 %v4152_v1 }
 0x1b7   :  { %4155 = vmatprep.subr.bf16.mxu1 %v4154_v12 }
 0x1b8   :  { %4125 = vmatpush3.bf16.msra.mxu0 %v4124_v27 }
 0x1b9   :  { %4127 = vmatprep.subr.bf16.mxu0 %v4126_v52 }
 0x1ba   :  { %4157 = vmatpush3.bf16.msra.mxu1 %v4156_v29 }
 0x1bb   :  { %4159 = vmatprep.subr.bf16.mxu1 %v4158_v6 }
 0x1bc   :  { %4129 = vmatpush3.bf16.msra.mxu0 %v4128_v41 }
 0x1be   :  { %4161 = vmatpush3.bf16.msra.mxu1 %v4160_v43 }
 0x21a   :  { %v4400_v21 = vpop.permute.xlu1 %4399 }
 0x21b   :  { %v4402_v13 = vunpack.i.h.bf16 %v4400_v21  ;;  %v4401_v44 = vunpack.i.l.bf16 %v4400_v21  ;;  %v4405_v45 = vpop.permute.xlu0 %4404 }
 0x21c   :  { %v4407_v46 = vunpack.i.h.bf16 %v4405_v45  ;;  %v4406_v47 = vunpack.i.l.bf16 %v4405_v45 }
 0x21d   :  { %v697_v48 = vsel %vm6597_vm10, %v4401_v44, %v4402_v13  ;;  %vm6615_vm10 = vcmask 130048  }
 0x21e   :  { %v710_v19 = vsel %vm6598_vm2, %v4406_v47, 0.0  ;;  %v4410_v17 = vpop.permute.xlu1 %4409  ;;  %v696_v49 = vsel %vm6599_vm4, %v4407_v46, %v4401_v44  ;;  %v698_v50 = vsel %vm6600_vm13, %v4402_v13, %v4406_v47  ;;  %v713_v53 = vmax.f32 %v601_v18, %v697_v48 }
 0x21f   :  { %v4412_v54 = vunpack.i.h.bf16 %v4410_v17  ;;  %v4411_v55 = vunpack.i.l.bf16 %v4410_v17  ;;  %v4415_v56 = vpop.permute.xlu0 %4414  ;;  %v712_v57 = vmax.f32 %v600_v16, %v696_v49  ;;  %v715_v58 = vmax.f32 %v603_v25, %v710_v19 }
 0x220   :  { %v4417_v59 = vunpack.i.h.bf16 %v4415_v56  ;;  %v4416_v60 = vunpack.i.l.bf16 %v4415_v56  ;;  %v714_v61 = vmax.f32 %v602_v22, %v698_v50  ;;  %v4604_v46 = vmov 0.0|0.0  }
 0x221   :  { %v4423_v62 = vpack.i.bf16 %v712_v57, %v715_v58  ;;  %v700_v63 = vsel %vm6601_vm14, %v4411_v55, %v4412_v54  ;;  %4162 = vmatprep.subr.bf16.mxu0 %v4604_v46  ;;  %vm6548_vm2 = vcmask 72704  }
 0x222   :  { %v711_v7 = vsel %vm6602_vm11, %v4416_v60, 0.0  ;;  %v4418_v18 = vpack.i.bf16 %v714_v61, %v713_v53  ;;  %v699_v0 = vsel %vm6603_vm12, %v4417_v59, %v4411_v55  ;;  %v701_v1 = vsel %vm6604_vm3, %v4412_v54, %v4416_v60  ;;  %v926_v59 = vld [vmem:[%s6614_s6] sm:$0xff]  ;;  %v927_v60 = vld [vmem:[%s6614_s6 + $0x8] sm:$0xff] }
 0x223   :  { %4424 = vrot.lane.b32.xlu0 %v4423_v62, %s4599_s28  ;;  %v716_v4 = vmax.f32 %v604_v34, %v699_v0  ;;  %v719_v14 = vmax.f32 %v607_v39, %v711_v7  ;;  %v717_v8 = vmax.f32 %v605_v35, %v700_v63  ;;  %v718_v16 = vmax.f32 %v606_v36, %v701_v1  ;;  %v929_v62 = vld [vmem:[%s6614_s6 + $0x18] sm:$0xff]  ;;  %v1186_v0 = vld [vmem:[%s6653_s27] sm:$0xff] }
 0x224   :  { %4419 = vrot.lane.b32.xlu1 %v4418_v18, %s4599_s28  ;;  %v931_v63 = vand.u32 63, %v4779_v10  ;;  %v930_v7 = vand.u32 7, %v4779_v10  ;;  %vm6547_vm11 = vcmask 64512   ;;  %vm6543_vm12 = vcmask 56320  }
 0x225   :  { %v4433_v22 = vpack.i.bf16 %v716_v4, %v719_v14  ;;  %v4428_v25 = vpack.i.bf16 %v718_v16, %v717_v8 }
 0x226   :  { %v5325_v18 = vshra.s32 %v931_v63, 3  ;;  %vm5327_vm4 = vcmp.ge.s32.totalorder %v930_v7, 1  ;;  %vm5343_vm3 = vcmp.lt.s32.totalorder %v930_v7, 7  ;;  %v920_v63 = vld [vmem:[%s6613_s0 + $0x10] sm:$0xff]  ;;  %v923_v7 = vld [vmem:[%s6613_s0 + $0x28] sm:$0xff] }
 0x227   :  { %4434 = vrot.lane.b32.xlu0 %v4433_v22, %s4599_s28 }
 0x228   :  { %4429 = vrot.lane.b32.xlu1 %v4428_v25, %s4599_s28  ;;  %s4605_s28 = smov 9   ;;  %vm6545_vm13 = vcmp.ge.s32.totalorder %v5325_v18, 1 }
 0x229   :  { %vm5336_vm14 = vmand %vm5327_vm4, %vm6545_vm13 }
 0x295   :  { %v4425_v2 = vpop.permute.xlu0 %4424 }
 0x296   :  { %v4427_v28 = vunpack.i.h.bf16 %v4425_v2  ;;  %v4426_v34 = vunpack.i.l.bf16 %v4425_v2  ;;  %v4420_v3 = vpop.permute.xlu1 %4419 }
 0x297   :  { %v4422_v33 = vunpack.i.h.bf16 %v4420_v3  ;;  %v4421_v39 = vunpack.i.l.bf16 %v4420_v3 }
 0x298   :  { %v758_v38 = vsel %vm6605_vm7, %v4426_v34, 0.0  ;;  %vm5351_vm7 = vmpackc.low %vm5336_vm14, %vm5336_vm14 }
 0x299   :  { %v746_v35 = vsel %vm6606_vm1, %v4422_v33, %v4426_v34  ;;  %v744_v30 = vsel %vm6607_vm8, %v4427_v28, %v4421_v39  ;;  %v4435_v36 = vpop.permute.xlu0 %4434  ;;  %v745_v11 = vsel %vm6608_vm9, %v4421_v39, %v4422_v33  ;;  %v763_v12 = vmax.f32 %v715_v58, %v758_v38  ;;  %v919_v58 = vld [vmem:[%s6613_s0 + $0x8] sm:$0xff]  ;;  %vm5362_vm1 = vmand %vm5343_vm3, %vm6545_vm13 }
 0x29a   :  { %v762_v23 = vmax.f32 %v714_v61, %v746_v35  ;;  %v760_v26 = vmax.f32 %v712_v57, %v744_v30  ;;  %v4437_v27 = vunpack.i.h.bf16 %v4435_v36  ;;  %v4436_v29 = vunpack.i.l.bf16 %v4435_v36  ;;  %v4430_v31 = vpop.permute.xlu1 %4429  ;;  %v928_v61 = vld [vmem:[%s6614_s6 + $0x10] sm:$0xff]  ;;  %vm5371_vm8 = vmpackc.low %vm6545_vm13, %vm6545_vm13  ;;  %s6697_s6 = sld [smem:[#allocation15_spill]] }
 0x29b   :  { %v4432_v32 = vunpack.i.h.bf16 %v4430_v31  ;;  %v4431_v51 = vunpack.i.l.bf16 %v4430_v31  ;;  %v761_v52 = vmax.f32 %v713_v53, %v745_v11  ;;  %907 = vmatprep.mubr.f32.mxu1 %v763_v12  ;;  %vm6628_vm9 = vcmask 7168  }
 0x29c   :  { %908 = vmatmul.mubr.f32.vlgmr.msra.gmra.mrb[4].mxu1 %v762_v23  ;;  %v759_v37 = vsel %vm6609_vm0, %v4436_v29, 0.0  ;;  %vm6629_vm0 = vmmov %vm6628_vm9 }
 0x29d   :  { %832 = vmatprep.mubr.f32.mxu0 %v761_v52  ;;  %v748_v40 = vsel %vm6610_vm6, %v4431_v51, %v4432_v32  ;;  %v767_v20 = vmax.f32 %v719_v14, %v759_v37  ;;  %v747_v6 = vsel %vm6611_vm5, %v4437_v27, %v4431_v51  ;;  %v749_v41 = vsel %vm6612_vm15, %v4432_v32, %v4436_v29  ;;  %vm5383_vm6 = vmpackc.low %vm5362_vm1, %vm5362_vm1 }
 0x29e   :  { %833 = vmatmul.mubr.f32.vlgmr.msra.gmra.mrb[4].mxu0 %v760_v26  ;;  %v765_v15 = vmax.f32 %v717_v8, %v748_v40  ;;  %v764_v42 = vmax.f32 %v716_v4, %v747_v6  ;;  %v766_v43 = vmax.f32 %v718_v16, %v749_v41  ;;  %vm6632_vm5 = vcmask 1039360   ;;  %vm5394_vm15 = vmpackc.low %vm5327_vm4, %vm5327_vm4 }
 0x29f   :  { %912 = vmatprep.mubr.f32.mxu1 %v767_v20 }
 0x2a0   :  { %837 = vmatprep.mubr.f32.mxu0 %v765_v15  ;;  %913 = vmatmul.mubr.f32.gmra.mrb[6].mxu1 %v766_v43 }
 0x2a2   :  { %838 = vmatmul.mubr.f32.gmra.mrb[6].mxu0 %v764_v42 }
 0x2a3   :  { %3622 = vmatprep.mubr.msk.f32.mxu0 %vm6615_vm10, %v919_v58  ;;  %vm6635_vm10 = vmmov %vm6632_vm5 }
 0x36f   :  { %v3725_v21 = vpop.f32.mrb[4].mxu1 }
 0x370   :  { %v3726_v13 = vpop.f32.mrb[5].mxu1 }
 0x371   :  { %v3687_v44 = vpop.f32.mrb[4].mxu0  ;;  %v3727_v45 = vadd.f32 %v3726_v13, %v3725_v21 }
 0x372   :  { %v3688_v47 = vpop.f32.mrb[5].mxu0 }
 0x373   :  { %v3689_v48 = vadd.f32 %v3688_v47, %v3687_v44  ;;  %v3728_v19 = vpop.f32.mrb[6].mxu1 }
 0x374   :  { %v3729_v17 = vpop.f32.mrb[7].mxu1 }
 0x375   :  { %v5269_v49 = vadd.f32 %v3727_v45, %v3689_v48  ;;  %v3690_v50 = vpop.f32.mrb[6].mxu0  ;;  %v3730_v53 = vadd.f32 %v3729_v17, %v3728_v19 }
 0x376   :  { %v3691_v54 = vpop.f32.mrb[7].mxu0 }
 0x377   :  { %v3692_v55 = vadd.f32 %v3691_v54, %v3690_v50  ;;  %935 = vrot.lane.b32.xlu1 %v5269_v49, %s4605_s28 }
 0x379   :  { %v5273_v56 = vadd.f32 %v3730_v53, %v3692_v55  ;;  %v6642_v55 = vmov 0 }
 0x37b   :  { %937 = vrot.lane.b32.xlu0 %v5273_v56, %s4605_s28  ;;  %951 = vrot.lane.b32.xlu1 %v5269_v49, %s4606_s5  ;;  %v4175_v57 = vpack.c.bf16 %v5273_v56, %v5269_v49 }
 0x37f   :  { %953 = vrot.lane.b32.xlu0 %v5273_v56, %s4606_s5  ;;  %964 = vrot.lane.b32.xlu1 %v5269_v49, %s4607_s3 }
 0x383   :  { %966 = vrot.lane.b32.xlu0 %v5273_v56, %s4607_s3  ;;  %979 = vrot.lane.b32.xlu1 %v5269_v49, %s6539_s24 }
 0x387   :  { %981 = vrot.lane.b32.xlu0 %v5273_v56, %s6539_s24  ;;  %993 = vrot.lane.b32.xlu1 %v5269_v49, %s4598_s4  ;;  %s6559_s24 = smov 3  }
 0x38b   :  { %995 = vrot.lane.b32.xlu0 %v5273_v56, %s4598_s4  ;;  %1005 = vrot.lane.b32.xlu1 %v5269_v49, %s4608_s26 }
 0x38f   :  { %1007 = vrot.lane.b32.xlu0 %v5273_v56, %s4608_s26  ;;  %1020 = vrot.lane.b32.xlu1 %v5269_v49, %s6541_s1 }
 0x393   :  { %1022 = vrot.lane.b32.xlu0 %v5273_v56, %s6541_s1  ;;  %1033 = vrot.lane.b32.xlu1 %v5269_v49, %s4610_s8  ;;  %s6555_s1 = smov 124  }
 0x397   :  { %1035 = vrot.lane.b32.xlu0 %v5273_v56, %s4610_s8  ;;  %1067 = vperm.xlu1 %4397, %v926_v59   ;;  %v6646_v59 = vmov 0 }
 0x39b   :  { %1072 = vperm.xlu0 %4396, %v927_v60   ;;  %1077 = vperm.xlu1 %4397, %v928_v61   ;;  %v918_v61 = vld [vmem:[%s6613_s0] sm:$0xff] }
 0x39f   :  { %1082 = vperm.xlu0 %4396, %v929_v62   ;;  %v921_v62 = vld [vmem:[%s6613_s0 + $0x18] sm:$0xff] }
 0x3e9   :  { %v936_v1 = vpop.permute.xlu1 %935 }
 0x3ea   :  { %v942_v14 = vsel %vm6548_vm2, 0.0, %v936_v1  ;;  %v922_v1 = vld [vmem:[%s6613_s0 + $0x20] sm:$0xff] }
 0x3ed   :  { %v938_v8 = vpop.permute.xlu0 %937  ;;  %v952_v16 = vpop.permute.xlu1 %951 }
 0x3ee   :  { %v943_v22 = vsel %vm6548_vm2, 0.0, %v938_v8  ;;  %v958_v25 = vsel %vm6547_vm11, 0.0, %v952_v16  ;;  %v924_v8 = vld [vmem:[%s6613_s0 + $0x30] sm:$0xff] }
 0x3ef   :  { %v4493_v39 = vpack.c.bf16 %v943_v22, %v942_v14  ;;  %v925_v14 = vld [vmem:[%s6613_s0 + $0x38] sm:$0xff]  ;;  %s6651_s0 = smov 120  }
 0x3f1   :  { %v954_v2 = vpop.permute.xlu0 %953  ;;  %v965_v34 = vpop.permute.xlu1 %964  ;;  %4494 = vmatpush1.bf16.msk.msra.mxu0 %vm5351_vm7, %v4493_v39 }
 0x3f2   :  { %v959_v3 = vsel %vm6547_vm11, 0.0, %v954_v2  ;;  %4165 = vmatprep.subr.bf16.mxu0 %v4604_v46  ;;  %v971_v35 = vsel %vm6543_vm12, 0.0, %v965_v34 }
 0x3f3   :  { %v4496_v23 = vpack.c.bf16 %v959_v3, %v958_v25 }
 0x3f5   :  { %v967_v30 = vpop.permute.xlu0 %966  ;;  %v980_v36 = vpop.permute.xlu1 %979  ;;  %4497 = vmatpush1.bf16.msk.msra.mxu0 %vm5371_vm8, %v4496_v23 }
 0x3f6   :  { %v972_v11 = vsel %vm6543_vm12, 0.0, %v967_v30  ;;  %4168 = vmatprep.subr.bf16.mxu0 %v4604_v46  ;;  %v985_v26 = vsel %vm6628_vm9, 0.0, %v980_v36  ;;  %vm6544_vm9 = vcmask 990208   ;;  %vm5421_vm12 = vmpackc.low %vm5343_vm3, %vm5343_vm3 }
 0x3f7   :  { %v4499_v51 = vpack.c.bf16 %v972_v11, %v971_v35 }
 0x3f9   :  { %v982_v27 = vpop.permute.xlu0 %981  ;;  %v994_v29 = vpop.permute.xlu1 %993  ;;  %4500 = vmatpush1.bf16.msk.msra.mxu0 %vm5383_vm6, %v4499_v51 }
 0x3fa   :  { %v986_v31 = vsel %vm6629_vm0, 0.0, %v982_v27  ;;  %4171 = vmatprep.subr.bf16.mxu0 %v4604_v46  ;;  %v999_v41 = vsel %vm6635_vm10, %v994_v29, 0.0  ;;  %vm6550_vm0 = vcmp.lt.s32.totalorder %v5325_v18, 7  ;;  %vm6546_vm10 = vcmask 982016  }
 0x3fb   :  { %v4502_v6 = vpack.c.bf16 %v986_v31, %v985_v26  ;;  %vm5452_vm11 = vmpackc.low %vm6550_vm0, %vm6550_vm0 }
 0x3fd   :  { %v996_v52 = vpop.permute.xlu0 %995  ;;  %v1006_v37 = vpop.permute.xlu1 %1005  ;;  %4503 = vmatpush1.bf16.msk.msra.mxu0 %vm5394_vm15, %v4502_v6 }
 0x3fe   :  { %v1000_v40 = vsel %vm6632_vm5, %v996_v52, 0.0  ;;  %4174 = vmatprep.subr.bf16.mxu0 %v4604_v46  ;;  %vm5412_vm5 = vmand %vm5327_vm4, %vm6550_vm0  ;;  %v1012_v13 = vsel %vm6544_vm9, %v1006_v37, 0.0 }
 0x3ff   :  { %v4505_v48 = vpack.c.bf16 %v1000_v40, %v999_v41  ;;  %vm5433_vm13 = vmpackc.low %vm5412_vm5, %vm5412_vm5 }
 0x401   :  { %v1008_v15 = vpop.permute.xlu0 %1007  ;;  %4176 = vmatpush1.bf16.msra.mxu0 %v4175_v57  ;;  %v1021_v43 = vpop.permute.xlu1 %1020 }
 0x402   :  { %v1013_v42 = vsel %vm6544_vm9, %v1008_v15, 0.0  ;;  %4177 = vmatprep.subr.bf16.mxu0 %v4604_v46  ;;  %v1027_v19 = vsel %vm6546_vm10, %v1021_v43, 0.0  ;;  %vm6549_vm9 = vcmask 973824   ;;  %v1187_v15 = vld [vmem:[%s6653_s27 + $0x8] sm:$0xff] }
 0x403   :  { %v4508_v54 = vpack.c.bf16 %v1013_v42, %v1012_v13  ;;  %1535 = vmatprep.mubr.f32.mxu1 %v1187_v15 }
 0x405   :  { %v1023_v44 = vpop.permute.xlu0 %1022  ;;  %4506 = vmatpush1.bf16.msk.msra.mxu0 %vm5421_vm12, %v4505_v48  ;;  %v1034_v17 = vpop.permute.xlu1 %1033 }
 0x406   :  { %v1028_v45 = vsel %vm6546_vm10, %v1023_v44, 0.0  ;;  %4180 = vmatprep.subr.bf16.mxu0 %v4604_v46  ;;  %vm5444_vm10 = vmand %vm5343_vm3, %vm6550_vm0  ;;  %v1040_v56 = vsel %vm6549_vm9, %v1034_v17, 0.0 }
 0x407   :  { %v6643_v55 = vsel %vm5444_vm10, 4294967295, %v6642_v55  ;;  %v4511_v58 = vpack.c.bf16 %v1028_v45, %v1027_v19  ;;  %vm5462_vm2 = vmpackc.low %vm5444_vm10, %vm5444_vm10  ;;  %vm6659_vm10 = vcmask 64512  }
 0x408   :  { %v6647_v59 = vsel %vm5462_vm2, 4294967295, %v6646_v59 }
 0x409   :  { %v1036_v49 = vpop.permute.xlu0 %1035  ;;  %4509 = vmatpush1.bf16.msk.msra.mxu0 %vm5433_vm13, %v4508_v54 }
 0x40a   :  { %v1041_v50 = vsel %vm6549_vm9, %v1036_v49, 0.0  ;;  %4183 = vmatprep.subr.bf16.mxu0 %v4604_v46  ;;  %vm6648_vm9 = vcmask 130048  }
 0x40b   :  { %v4514_v60 = vpack.c.bf16 %v1041_v50, %v1040_v56  ;;  %vm6649_vm0 = vmmov %vm6648_vm9 }
 0x40d   :  { %4512 = vmatpush1.bf16.msk.msra.mxu0 %vm5452_vm11, %v4511_v58 }
 0x40e   :  { %4186 = vmatprep.subr.bf16.mxu0 %v4604_v46 }
 0x411   :  { %4515 = vmatpush1.bf16.msk.msra.mxu0 %vm5462_vm2, %v4514_v60  ;;  %vm6657_vm2 = vcmask 1039360  }
 0x414   :  { %1162 = vmatmul.mubr.f32.vlgmr.msra.gmra.mrb[8].mxu0 %v918_v61 }
 0x415   :  { %3623 = vmatprep.mubr.msk.f32.mxu0 %vm6648_vm9, %v921_v62  ;;  %vm6650_vm9 = vmmov %vm6649_vm0 }
 0x416   :  { %v1068_v16 = vpop.permute.xlu1 %1067 }
 0x418   :  { %1167 = vmatmul.mubr.f32.gmra.mrb[10].mxu0 %v920_v63 }
 0x419   :  { %3624 = vmatprep.mubr.msk.f32.mxu0 %vm6649_vm0, %v923_v7  ;;  %vm6655_vm0 = vcmask 72704  }
 0x41a   :  { %v1073_v3 = vpop.permute.xlu0 %1072  ;;  %v1078_v11 = vpop.permute.xlu1 %1077 }
 0x41c   :  { %1172 = vmatmul.mubr.f32.gmra.mrb[12].mxu0 %v922_v1 }
 0x41d   :  { %3625 = vmatprep.mubr.msk.f32.mxu0 %vm6650_vm9, %v925_v14  ;;  %vm6656_vm9 = vmmov %vm6655_vm0 }
 0x41e   :  { %v1083_v51 = vpop.permute.xlu0 %1082 }
 0x420   :  { %1177 = vmatmul.mubr.f32.gmra.mrb[14].mxu0 %v924_v8 }
 0x4e7   :  { %v1163_v22 = vpop.f32.mrb[8].mxu0 }
 0x4e8   :  { %v1164_v25 = vadd.f32 %v1163_v22, %v1068_v16  ;;  %v1165_v2 = vpop.f32.mrb[9].mxu0 }
 0x4ea   :  { %v1182_v34 = vmax.f32 %v1164_v25, 0.0 }
 0x4eb   :  { %v1168_v39 = vpop.f32.mrb[10].mxu0 }
 0x4ec   :  { %1302 = vst [vmem:[#allocation2 + $0x200] sm:$0xff] %v1182_v34  ;;  %v1169_v35 = vadd.f32 %v1168_v39, %v1073_v3  ;;  %v1170_v30 = vpop.f32.mrb[11].mxu0  ;;  %1206 = vrot.lane.b32.xlu1 %v1182_v34, %s4605_s28 }
 0x4ee   :  { %v1183_v36 = vmax.f32 %v1169_v35, 0.0 }
 0x4ef   :  { %v1173_v23 = vpop.f32.mrb[12].mxu0 }
 0x4f0   :  { %1303 = vst [vmem:[#allocation2 + $0x220] sm:$0xff] %v1183_v36  ;;  %v1174_v26 = vadd.f32 %v1173_v23, %v1078_v11  ;;  %1208 = vrot.lane.b32.xlu0 %v1183_v36, %s4605_s28  ;;  %1306 = vrot.lane.b32.xlu1 %v1182_v34, %s4598_s4  ;;  %v1175_v27 = vpop.f32.mrb[13].mxu0  ;;  %v4189_v29 = vpack.c.bf16 %v1183_v36, %v1182_v34 }
 0x4f2   :  { %v5495_v31 = vmax.f32 %v1174_v26, 0.0  ;;  %4190 = vmatprep.subr.bf16.mxu1 %v4189_v29 }
 0x4f3   :  { %v1178_v52 = vpop.f32.mrb[14].mxu0 }
 0x4f4   :  { %1304 = vst [vmem:[#allocation2 + $0x240] sm:$0xff] %v5495_v31  ;;  %v1179_v37 = vadd.f32 %v1178_v52, %v1083_v51  ;;  %1308 = vrot.lane.b32.xlu0 %v1183_v36, %s4598_s4  ;;  %1230 = vrot.lane.b32.xlu1 %v1182_v34, %s4606_s5  ;;  %v1180_v40 = vpop.f32.mrb[15].mxu0 }
 0x4f6   :  { %v1185_v6 = vmax.f32 %v1179_v37, 0.0 }
 0x4f8   :  { %1305 = vst [vmem:[#allocation2 + $0x260] sm:$0xff] %v1185_v6  ;;  %1232 = vrot.lane.b32.xlu0 %v1183_v36, %s4606_s5  ;;  %1330 = vrot.lane.b32.xlu1 %v1182_v34, %s4608_s26  ;;  %v4193_v41 = vpack.c.bf16 %v1185_v6, %v5495_v31 }
 0x4fc   :  { %1332 = vrot.lane.b32.xlu0 %v1183_v36, %s4608_s26  ;;  %1254 = vrot.lane.b32.xlu1 %v1182_v34, %s4607_s3 }
 0x500   :  { %1256 = vrot.lane.b32.xlu0 %v1183_v36, %s4607_s3  ;;  %1354 = vrot.lane.b32.xlu1 %v1182_v34, %s6651_s0 }
 0x504   :  { %1356 = vrot.lane.b32.xlu0 %v1183_v36, %s6651_s0  ;;  %1278 = vrot.lane.b32.xlu1 %v1182_v34, %s6652_s30 }
 0x508   :  { %1280 = vrot.lane.b32.xlu0 %v1183_v36, %s6652_s30  ;;  %1210 = vrot.lane.b32.xlu1 %v5495_v31, %s4605_s28 }
 0x50c   :  { %1212 = vrot.lane.b32.xlu0 %v1185_v6, %s4605_s28  ;;  %1310 = vrot.lane.b32.xlu1 %v5495_v31, %s4598_s4 }
 0x510   :  { %1312 = vrot.lane.b32.xlu0 %v1185_v6, %s4598_s4  ;;  %1234 = vrot.lane.b32.xlu1 %v5495_v31, %s4606_s5 }
 0x514   :  { %1236 = vrot.lane.b32.xlu0 %v1185_v6, %s4606_s5  ;;  %1334 = vrot.lane.b32.xlu1 %v5495_v31, %s4608_s26 }
 0x518   :  { %1336 = vrot.lane.b32.xlu0 %v1185_v6, %s4608_s26  ;;  %1258 = vrot.lane.b32.xlu1 %v5495_v31, %s4607_s3  ;;  %s6654_s26 = sld [smem:[#allocation14_spill]] }
 0x51c   :  { %1260 = vrot.lane.b32.xlu0 %v1185_v6, %s4607_s3  ;;  %1358 = vrot.lane.b32.xlu1 %v5495_v31, %s6651_s0 }
 0x51e   :  { %v1198_v42 = vld [vmem:[%s6654_s26] sm:$0xff]  ;;  %v1199_v43 = vld [vmem:[%s6654_s26 + $0x8] sm:$0xff]  ;;  %v1200_v13 = vld [vmem:[%s6654_s26 + $0x10] sm:$0xff] }
 0x51f   :  { %v1201_v44 = vld [vmem:[%s6654_s26 + $0x18] sm:$0xff] }
 0x520   :  { %1360 = vrot.lane.b32.xlu0 %v1185_v6, %s6651_s0  ;;  %1282 = vrot.lane.b32.xlu1 %v5495_v31, %s6652_s30 }
 0x524   :  { %1284 = vrot.lane.b32.xlu0 %v1185_v6, %s6652_s30  ;;  %1378 = vrot.lane.b32.xlu1 %v1182_v34, %s4610_s8 }
 0x528   :  { %1380 = vrot.lane.b32.xlu0 %v1183_v36, %s4610_s8  ;;  %1382 = vrot.lane.b32.xlu1 %v5495_v31, %s4610_s8 }
 0x52c   :  { %1384 = vrot.lane.b32.xlu0 %v1185_v6, %s4610_s8  ;;  %1440 = vperm.xlu1 %4397, %v1198_v42   ;;  %s6557_s8 = smov 123  }
 0x530   :  { %1445 = vperm.xlu0 %4396, %v1199_v43   ;;  %1450 = vperm.xlu1 %4397, %v1200_v13  }
 0x534   :  { %1455 = vperm.xlu0 %4396, %v1201_v44  }
 0x55e   :  { %v1207_v45 = vpop.permute.xlu1 %1206 }
 0x55f   :  { %v1218_v48 = vsel %vm6655_vm0, 0.0, %v1207_v45  ;;  %vm6658_vm0 = vmmov %vm6657_vm2 }
 0x560   :  { %v1222_v19 = vsel %vm5336_vm14, %v1218_v48, 0.0 }
 0x561   :  { %1226 = vst [vmem:[#allocation2] sm:$0xff] %v1222_v19 }
 0x562   :  { %v1209_v17 = vpop.permute.xlu0 %1208  ;;  %v1307_v49 = vpop.permute.xlu1 %1306 }
 0x563   :  { %v1219_v50 = vsel %vm6656_vm9, 0.0, %v1209_v17  ;;  %v5556_v54 = vsel %vm6657_vm2, %v1307_v49, 0.0  ;;  %vm6660_vm2 = vcmp.ge.s32.totalorder %v5325_v18, 1  ;;  %vm6661_vm9 = vmmov %vm6659_vm10 }
 0x564   :  { %v1223_v56 = vsel %vm5336_vm14, %v1219_v50, 0.0  ;;  %v1322_v58 = vsel %vm5343_vm3, %v5556_v54, 0.0  ;;  %v4517_v7 = vpack.c.bf16 %v1219_v50, %v1218_v48 }
 0x565   :  { %1227 = vst [vmem:[#allocation2 + $0x20] sm:$0xff] %v1223_v56  ;;  %1326 = vst [vmem:[#allocation2 + $0x280] sm:$0xff] %v1322_v58 }
 0x566   :  { %v1309_v60 = vpop.permute.xlu0 %1308  ;;  %v1231_v61 = vpop.permute.xlu1 %1230  ;;  %4518 = vmatpush3.bf16.msk.msra.mxu1 %vm5351_vm7, %v4517_v7 }
 0x567   :  { %v5564_v62 = vsel %vm6658_vm0, %v1309_v60, 0.0  ;;  %v5567_v63 = vsel %vm6659_vm10, 0.0, %v1231_v61  ;;  %4194 = vmatprep.subr.bf16.mxu1 %v4193_v41  ;;  %vm6662_vm10 = vcmask 990208   ;;  %vm6663_vm0 = vmmov %vm6660_vm2 }
 0x568   :  { %v1323_v1 = vsel %vm5343_vm3, %v5564_v62, 0.0  ;;  %v1246_v14 = vsel %vm6660_vm2, %v5567_v63, 0.0  ;;  %vm6664_vm2 = vmmov %vm6662_vm10 }
 0x569   :  { %1327 = vst [vmem:[#allocation2 + $0x2a0] sm:$0xff] %v1323_v1  ;;  %1250 = vst [vmem:[#allocation2 + $0x80] sm:$0xff] %v1246_v14 }
 0x56a   :  { %v1233_v8 = vpop.permute.xlu0 %1232  ;;  %v1331_v16 = vpop.permute.xlu1 %1330 }
 0x56b   :  { %v5578_v22 = vsel %vm6661_vm9, 0.0, %v1233_v8  ;;  %v5581_v25 = vsel %vm6662_vm10, %v1331_v16, 0.0  ;;  %vm6665_vm9 = vcmask 56320   ;;  %v4523_v16 = vpack.c.bf16 %v5564_v62, %v5556_v54 }
 0x56c   :  { %v1247_v2 = vsel %vm6663_vm0, %v5578_v22, 0.0  ;;  %v1346_v34 = vsel %vm5412_vm5, %v5581_v25, 0.0  ;;  %vm6666_vm10 = vmmov %vm6665_vm9  ;;  %vm6667_vm0 = vcmask 982016   ;;  %v4526_v28 = vpack.c.bf16 %v5578_v22, %v5567_v63 }
 0x56d   :  { %1251 = vst [vmem:[#allocation2 + $0xa0] sm:$0xff] %v1247_v2  ;;  %1350 = vst [vmem:[#allocation2 + $0x300] sm:$0xff] %v1346_v34 }
 0x56e   :  { %v1333_v3 = vpop.permute.xlu0 %1332  ;;  %v1255_v39 = vpop.permute.xlu1 %1254 }
 0x56f   :  { %v5590_v35 = vsel %vm6664_vm2, %v1333_v3, 0.0  ;;  %v5593_v30 = vsel %vm6665_vm9, 0.0, %v1255_v39  ;;  %vm6668_vm2 = vcmp.lt.s32.totalorder %v5325_v18, 7  ;;  %vm6669_vm9 = vmmov %vm6667_vm0 }
 0x570   :  { %v1347_v36 = vsel %vm5412_vm5, %v5590_v35, 0.0  ;;  %v1270_v11 = vsel %vm5362_vm1, %v5593_v30, 0.0  ;;  %v4535_v47 = vpack.c.bf16 %v5590_v35, %v5581_v25 }
 0x571   :  { %1351 = vst [vmem:[#allocation2 + $0x320] sm:$0xff] %v1347_v36  ;;  %1274 = vst [vmem:[#allocation2 + $0x100] sm:$0xff] %v1270_v11 }
 0x572   :  { %v1257_v23 = vpop.permute.xlu0 %1256  ;;  %v1355_v26 = vpop.permute.xlu1 %1354 }
 0x573   :  { %v5602_v27 = vsel %vm6666_vm10, 0.0, %v1257_v23  ;;  %v5605_v29 = vsel %vm6667_vm0, %v1355_v26, 0.0  ;;  %vm6670_vm10 = vcmask 7168   ;;  %vm6671_vm0 = vmmov %vm6668_vm2 }
 0x574   :  { %v1271_v31 = vsel %vm5362_vm1, %v5602_v27, 0.0  ;;  %v1370_v51 = vsel %vm6668_vm2, %v5605_v29, 0.0  ;;  %vm6672_vm2 = vmmov %vm6670_vm10  ;;  %v4538_v21 = vpack.c.bf16 %v5602_v27, %v5593_v30 }
 0x575   :  { %1275 = vst [vmem:[#allocation2 + $0x120] sm:$0xff] %v1271_v31  ;;  %1374 = vst [vmem:[#allocation2 + $0x380] sm:$0xff] %v1370_v51 }
 0x576   :  { %v1357_v52 = vpop.permute.xlu0 %1356  ;;  %v1279_v37 = vpop.permute.xlu1 %1278 }
 0x577   :  { %v5614_v40 = vsel %vm6669_vm9, %v1357_v52, 0.0  ;;  %v5617_v6 = vsel %vm6670_vm10, 0.0, %v1279_v37  ;;  %vm6673_vm9 = vcmask 72704  }
 0x578   :  { %v1371_v41 = vsel %vm6671_vm0, %v5614_v40, 0.0  ;;  %v1294_v15 = vsel %vm5327_vm4, %v5617_v6, 0.0  ;;  %vm6674_vm10 = vmmov %vm6673_vm9  ;;  %vm6675_vm0 = vcmask 1039360   ;;  %v4547_v53 = vpack.c.bf16 %v5614_v40, %v5605_v29 }
 0x579   :  { %1375 = vst [vmem:[#allocation2 + $0x3a0] sm:$0xff] %v1371_v41  ;;  %1298 = vst [vmem:[#allocation2 + $0x180] sm:$0xff] %v1294_v15 }
 0x57a   :  { %v1281_v42 = vpop.permute.xlu0 %1280  ;;  %v1211_v43 = vpop.permute.xlu1 %1210 }
 0x57b   :  { %v5626_v13 = vsel %vm6672_vm2, 0.0, %v1281_v42  ;;  %v1220_v44 = vsel %vm6673_vm9, 0.0, %v1211_v43  ;;  %vm6676_vm2 = vmmov %vm6675_vm0  ;;  %vm6677_vm9 = vcmask 64512  }
 0x57c   :  { %v1295_v45 = vsel %vm5327_vm4, %v5626_v13, 0.0  ;;  %v1224_v48 = vsel %vm5336_vm14, %v1220_v44, 0.0 }
 0x57d   :  { %1299 = vst [vmem:[#allocation2 + $0x1a0] sm:$0xff] %v1295_v45  ;;  %1228 = vst [vmem:[#allocation2 + $0x40] sm:$0xff] %v1224_v48 }
 0x57e   :  { %v1213_v19 = vpop.permute.xlu0 %1212  ;;  %v1311_v17 = vpop.permute.xlu1 %1310 }
 0x57f   :  { %v1221_v49 = vsel %vm6674_vm10, 0.0, %v1213_v19  ;;  %v1320_v50 = vsel %vm6675_vm0, %v1311_v17, 0.0  ;;  %vm6679_vm10 = vmmov %vm6677_vm9  ;;  %vm6680_vm0 = vcmask 990208  }
 0x580   :  { %v1225_v56 = vsel %vm5336_vm14, %v1221_v49, 0.0  ;;  %v1324_v58 = vsel %vm5343_vm3, %v1320_v50, 0.0  ;;  %v4520_v14 = vpack.c.bf16 %v1221_v49, %v1220_v44  ;;  %vm6678_vm14 = vcmp.ge.s32.totalorder %v5325_v18, 1 }
 0x581   :  { %1229 = vst [vmem:[#allocation2 + $0x60] sm:$0xff] %v1225_v56  ;;  %1328 = vst [vmem:[#allocation2 + $0x2c0] sm:$0xff] %v1324_v58 }
 0x582   :  { %v1313_v60 = vpop.permute.xlu0 %1312  ;;  %v1235_v61 = vpop.permute.xlu1 %1234  ;;  %4521 = vmatpush3.bf16.msk.msra.mxu1 %vm5351_vm7, %v4520_v14  ;;  %vm6682_vm7 = vmmov %vm6680_vm0 }
 0x583   :  { %v1321_v7 = vsel %vm6676_vm2, %v1313_v60, 0.0  ;;  %v1244_v1 = vsel %vm6677_vm9, 0.0, %v1235_v61  ;;  %4524 = vmatprep.subr.msk.bf16.mxu1 %vm5421_vm12, %v4523_v16  ;;  %vm6683_vm2 = vcmask 56320   ;;  %vm6685_vm9 = vcmask 982016   ;;  %v1190_v60 = vld [vmem:[%s6653_s27 + $0x20] sm:$0xff]  ;;  %v1192_v16 = vld [vmem:[%s6653_s27 + $0x30] sm:$0xff] }
 0x584   :  { %v1325_v8 = vsel %vm5343_vm3, %v1321_v7, 0.0  ;;  %v1248_v4 = vsel %vm6678_vm14, %v1244_v1, 0.0  ;;  %vm6681_vm3 = vmmov %vm6678_vm14  ;;  %v4529_v39 = vpack.c.bf16 %v1321_v7, %v1320_v50  ;;  %vm6688_vm14 = vcmask 7168  }
 0x585   :  { %1329 = vst [vmem:[#allocation2 + $0x2e0] sm:$0xff] %v1325_v8  ;;  %1252 = vst [vmem:[#allocation2 + $0xc0] sm:$0xff] %v1248_v4  ;;  %v1193_v8 = vld [vmem:[%s6653_s27 + $0x38] sm:$0xff] }
 0x586   :  { %v1237_v2 = vpop.permute.xlu0 %1236  ;;  %v1335_v34 = vpop.permute.xlu1 %1334  ;;  %4527 = vmatpush3.bf16.msk.msra.mxu1 %vm5371_vm8, %v4526_v28 }
 0x587   :  { %v1245_v3 = vsel %vm6679_vm10, 0.0, %v1237_v2  ;;  %v1344_v33 = vsel %vm6680_vm0, %v1335_v34, 0.0  ;;  %4530 = vmatprep.subr.msk.bf16.mxu1 %vm5421_vm12, %v4529_v39  ;;  %vm6684_vm12 = vmmov %vm6683_vm2  ;;  %vm6691_vm10 = vcmask 973824   ;;  %v1195_v2 = vld [vmem:[%s6653_s27 + $0x48] sm:$0xff]  ;;  %v1188_v34 = vld [vmem:[%s6653_s27 + $0x10] sm:$0xff] }
 0x588   :  { %v1249_v54 = vsel %vm6681_vm3, %v1245_v3, 0.0  ;;  %v1348_v62 = vsel %vm5412_vm5, %v1344_v33, 0.0  ;;  %v4532_v22 = vpack.c.bf16 %v1245_v3, %v1244_v1  ;;  %vm6693_vm0 = vmmov %vm6691_vm10  ;;  %v1189_v1 = vld [vmem:[%s6653_s27 + $0x18] sm:$0xff]  ;;  %v1194_v3 = vld [vmem:[%s6653_s27 + $0x40] sm:$0xff] }
 0x589   :  { %1253 = vst [vmem:[#allocation2 + $0xe0] sm:$0xff] %v1249_v54  ;;  %1352 = vst [vmem:[#allocation2 + $0x340] sm:$0xff] %v1348_v62 }
 0x58a   :  { %v1337_v36 = vpop.permute.xlu0 %1336  ;;  %v1259_v11 = vpop.permute.xlu1 %1258  ;;  %4533 = vmatpush3.bf16.msk.msra.mxu1 %vm5371_vm8, %v4532_v22  ;;  %vm6686_vm8 = vcmp.lt.s32.totalorder %v5325_v18, 7  ;;  %v4550_v18 = vpack.c.bf16 %v5626_v13, %v5617_v6  ;;  %vm6694_vm3 = vmmov %vm6693_vm0 }
 0x58b   :  { %v1345_v23 = vsel %vm6682_vm7, %v1337_v36, 0.0  ;;  %v1268_v63 = vsel %vm6683_vm2, 0.0, %v1259_v11  ;;  %4536 = vmatprep.subr.msk.bf16.mxu1 %vm5433_vm13, %v4535_v47  ;;  %vm6698_vm7 = vcmask 1039360  }
 0x58c   :  { %v1349_v26 = vsel %vm5412_vm5, %v1345_v23, 0.0  ;;  %v1272_v31 = vsel %vm5362_vm1, %v1268_v63, 0.0  ;;  %v4541_v41 = vpack.c.bf16 %v1345_v23, %v1344_v33  ;;  %vm6687_vm5 = vmmov %vm6685_vm9  ;;  %v1197_v33 = vld [vmem:[%s6653_s27 + $0x58] sm:$0xff] }
 0x58d   :  { %1353 = vst [vmem:[#allocation2 + $0x360] sm:$0xff] %v1349_v26  ;;  %1276 = vst [vmem:[#allocation2 + $0x140] sm:$0xff] %v1272_v31 }
 0x58e   :  { %v1261_v51 = vpop.permute.xlu0 %1260  ;;  %v1359_v52 = vpop.permute.xlu1 %1358  ;;  %4539 = vmatpush3.bf16.msk.msra.mxu1 %vm5383_vm6, %v4538_v21  ;;  %vm6699_vm2 = vmmov %vm6698_vm7 }
 0x58f   :  { %v1269_v37 = vsel %vm6684_vm12, 0.0, %v1261_v51  ;;  %v1368_v12 = vsel %vm6685_vm9, %v1359_v52, 0.0  ;;  %4542 = vmatprep.subr.msk.bf16.mxu1 %vm5433_vm13, %v4541_v41  ;;  %vm6690_vm13 = vmmov %vm6688_vm14 }
 0x590   :  { %v1273_v25 = vsel %vm5362_vm1, %v1269_v37, 0.0  ;;  %v1372_v35 = vsel %vm6686_vm8, %v1368_v12, 0.0  ;;  %v4544_v27 = vpack.c.bf16 %v1269_v37, %v1268_v63  ;;  %vm6689_vm1 = vmmov %vm6686_vm8 }
 0x591   :  { %1277 = vst [vmem:[#allocation2 + $0x160] sm:$0xff] %v1273_v25  ;;  %1376 = vst [vmem:[#allocation2 + $0x3c0] sm:$0xff] %v1372_v35 }
 0x592   :  { %v1361_v15 = vpop.permute.xlu0 %1360  ;;  %v1283_v42 = vpop.permute.xlu1 %1282  ;;  %4545 = vmatpush3.bf16.msk.msra.mxu1 %vm5383_vm6, %v4544_v27  ;;  %vm6692_vm6 = vnez %v6643_v55  ;;  %v1196_v55 = vld [vmem:[%s6653_s27 + $0x50] sm:$0xff]  ;;  %vm6700_vm12 = vmmov %vm6699_vm2 }
 0x593   :  { %v1369_v43 = vsel %vm6687_vm5, %v1361_v15, 0.0  ;;  %v1292_v30 = vsel %vm6688_vm14, 0.0, %v1283_v42  ;;  %4548 = vmatprep.subr.msk.bf16.mxu1 %vm5452_vm11, %v4547_v53  ;;  %vm6701_vm9 = vmmov %vm6699_vm2 }
 0x594   :  { %v1373_v38 = vsel %vm6689_vm1, %v1369_v43, 0.0  ;;  %v1296_v44 = vsel %vm5327_vm4, %v1292_v30, 0.0  ;;  %v4553_v17 = vpack.c.bf16 %v1369_v43, %v1368_v12  ;;  %vm6702_vm8 = vmmov %vm6687_vm5 }
 0x595   :  { %1377 = vst [vmem:[#allocation2 + $0x3e0] sm:$0xff] %v1373_v38  ;;  %1300 = vst [vmem:[#allocation2 + $0x1c0] sm:$0xff] %v1296_v44 }
 0x596   :  { %v1285_v45 = vpop.permute.xlu0 %1284  ;;  %v1379_v48 = vpop.permute.xlu1 %1378  ;;  %4551 = vmatpush3.bf16.msk.msra.mxu1 %vm5394_vm15, %v4550_v18  ;;  %v1646_v18 = vld [vmem:[%s6697_s6 + $0x8] sm:$0xff]  ;;  %vm6703_vm14 = vmmov %vm6687_vm5 }
 0x597   :  { %v1293_v19 = vsel %vm6690_vm13, 0.0, %v1285_v45  ;;  %v1390_v32 = vsel %vm6691_vm10, %v1379_v48, 0.0  ;;  %4554 = vmatprep.subr.msk.bf16.mxu1 %vm5452_vm11, %v4553_v17  ;;  %vm6696_vm11 = vnez %v6647_v59  ;;  %v1191_v59 = vld [vmem:[%s6653_s27 + $0x28] sm:$0xff]  ;;  %vm6704_vm1 = vmmov %vm6687_vm5  ;;  %s4618_s27 = smov [#allocation4]  }
 0x598   :  { %v1297_v29 = vsel %vm5327_vm4, %v1293_v19, 0.0  ;;  %v1394_v40 = vsel %vm6692_vm6, %v1390_v32, 0.0  ;;  %v4556_v13 = vpack.c.bf16 %v1293_v19, %v1292_v30  ;;  %vm6695_vm4 = vmmov %vm6693_vm0 }
 0x599   :  { %1301 = vst [vmem:[#allocation2 + $0x1e0] sm:$0xff] %v1297_v29  ;;  %1398 = vst [vmem:[#allocation2 + $0x400] sm:$0xff] %v1394_v40  ;;  %v1647_v29 = vld [vmem:[%s6697_s6 + $0x10] sm:$0xff] }
 0x59a   :  { %v1381_v49 = vpop.permute.xlu0 %1380  ;;  %v1383_v50 = vpop.permute.xlu1 %1382  ;;  %4557 = vmatpush3.bf16.msk.msra.mxu1 %vm5394_vm15, %v4556_v13  ;;  %vm1458_vm15 = vcmask 261120   ;;  %v1650_v13 = vld [vmem:[%s6697_s6 + $0x28] sm:$0xff] }
 0x59b   :  { %v1391_v56 = vsel %vm6693_vm0, %v1381_v49, 0.0  ;;  %v1392_v6 = vsel %vm6694_vm3, %v1383_v50, 0.0  ;;  %v1648_v49 = vld [vmem:[%s6697_s6 + $0x18] sm:$0xff]  ;;  %vm1936_vm3 = vcmask 252928  }
 0x59c   :  { %v1395_v57 = vsel %vm6692_vm6, %v1391_v56, 0.0  ;;  %v1396_v58 = vsel %vm6692_vm6, %v1392_v6, 0.0  ;;  %v4559_v7 = vpack.c.bf16 %v1391_v56, %v1390_v32  ;;  %v1645_v32 = vld [vmem:[%s6697_s6] sm:$0xff]  ;;  %v4233_v56 = vpack.c.bf16 %v1648_v49, %v1647_v29  ;;  %v1795_v49 = vld [vmem:[%s6705_s2 + $0x8] sm:$0xff] }
 0x59d   :  { %1399 = vst [vmem:[#allocation2 + $0x420] sm:$0xff] %v1395_v57  ;;  %1400 = vst [vmem:[#allocation2 + $0x440] sm:$0xff] %v1396_v58  ;;  %1536 = vmatmul.mubr.f32.vlgmr.msra.gmra.mrb[8].mxu1 %v1186_v0  ;;  %v4229_v17 = vpack.c.bf16 %v1646_v18, %v1645_v32  ;;  %v1651_v58 = vld [vmem:[%s6697_s6 + $0x30] sm:$0xff] }
 0x59e   :  { %v1385_v61 = vpop.permute.xlu0 %1384  ;;  %4560 = vmatprep.subr.msk.bf16.mxu1 %vm6696_vm11, %v4559_v7  ;;  %1540 = vmatprep.mubr.f32.mxu1 %v1190_v60  ;;  %v1652_v60 = vld [vmem:[%s6697_s6 + $0x38] sm:$0xff] }
 0x59f   :  { %v1393_v20 = vsel %vm6695_vm4, %v1385_v61, 0.0  ;;  %4563 = vmatpush3.bf16.msk.msra.mxu1 %vm6696_vm11, %v4559_v7  ;;  %4230 = vmatprep.subr.bf16.mxu0 %v4229_v17  ;;  %v4241_v61 = vpack.c.bf16 %v1652_v60, %v1651_v58  ;;  %v1654_v7 = vld [vmem:[%s6697_s6 + $0x48] sm:$0xff]  ;;  %v1810_v58 = vand.u32 3, %v4779_v10 }
 0x5a0   :  { %v1397_v14 = vsel %vm6692_vm6, %v1393_v20, 0.0  ;;  %v4565_v4 = vpack.c.bf16 %v1393_v20, %v1392_v6  ;;  %v1649_v6 = vld [vmem:[%s6697_s6 + $0x20] sm:$0xff]  ;;  %4232 = vmatpush3.bf16.msra.mxu0 %v4229_v17  ;;  %vm1828_vm6 = vcmask 39936  }
 0x5a1   :  { %1401 = vst [vmem:[#allocation2 + $0x460] sm:$0xff] %v1397_v14  ;;  %1541 = vmatmul.mubr.f32.gmra.mrb[10].mxu1 %v1189_v1  ;;  %4234 = vmatprep.subr.bf16.mxu0 %v4233_v56  ;;  %v4237_v57 = vpack.c.bf16 %v1650_v13, %v1649_v6  ;;  %v1653_v20 = vld [vmem:[%s6697_s6 + $0x40] sm:$0xff]  ;;  %v1655_v14 = vld [vmem:[%s6697_s6 + $0x50] sm:$0xff]  ;;  %v1809_v13 = vld [vmem:[%s6508_s10 + $0x18] sm:$0xff]  ;;  %vm5898_vm10 = vcmp.ge.s32.totalorder %v1810_v58, 1  ;;  %vm5917_vm4 = vcmp.lt.s32.totalorder %v1810_v58, 3 }
 0x5a2   :  { %4566 = vmatprep.subr.msk.bf16.mxu1 %vm6696_vm11, %v4565_v4  ;;  %1545 = vmatprep.mubr.f32.mxu1 %v1193_v8  ;;  %v4245_v1 = vpack.c.bf16 %v1654_v7, %v1653_v20  ;;  %v1656_v8 = vld [vmem:[%s6697_s6 + $0x58] sm:$0xff]  ;;  %v1806_v6 = vld [vmem:[%s6508_s10] sm:$0xff] }
 0x5a3   :  { %4569 = vmatpush3.bf16.msk.msra.mxu1 %vm6696_vm11, %v4565_v4  ;;  %v4249_v4 = vpack.c.bf16 %v1656_v8, %v1655_v14  ;;  %vm1856_vm11 = vcmask 31744  }
 0x5a4   :  { %4236 = vmatpush3.bf16.msra.mxu0 %v4233_v56  ;;  %v1796_v56 = vld [vmem:[%s6705_s2 + $0x10] sm:$0xff] }
 0x5a5   :  { %1546 = vmatmul.mubr.f32.gmra.mrb[12].mxu1 %v1192_v16  ;;  %4238 = vmatprep.subr.bf16.mxu0 %v4237_v57  ;;  %v1657_v16 = vld [vmem:[%s6697_s6 + $0x60] sm:$0xff] }
 0x5a6   :  { %1550 = vmatprep.mubr.f32.mxu1 %v1196_v55  ;;  %v1658_v55 = vld [vmem:[%s6697_s6 + $0x68] sm:$0xff] }
 0x5a8   :  { %4240 = vmatpush3.bf16.msra.mxu0 %v4237_v57  ;;  %v1811_v57 = vshra.s32 %v4804_v24, 2 }
 0x5a9   :  { %1551 = vmatmul.mubr.f32.gmra.mrb[14].mxu1 %v1195_v2  ;;  %4242 = vmatprep.subr.bf16.mxu0 %v4241_v61  ;;  %v4253_v2 = vpack.c.bf16 %v1658_v55, %v1657_v16 }
 0x5aa   :  { %3949 = vmatprep.mubr.msk.f32.mxu1 %vm1458_vm15, %v1188_v34  ;;  %v1659_v34 = vld [vmem:[%s6697_s6 + $0x70] sm:$0xff]  ;;  %vm5894_vm13 = vcmp.ge.s32.totalorder %v1811_v57, 1 }
 0x5ab   :  { %v1441_v47 = vpop.permute.xlu1 %1440  ;;  %vm5906_vm0 = vmand %vm5898_vm10, %vm5894_vm13 }
 0x5ac   :  { %4244 = vmatpush3.bf16.msra.mxu0 %v4241_v61 }
 0x5ad   :  { %3950 = vmatmul.mubr.msk.f32.vlgmr.msra.gmra.mrb[16].mxu1 %vm1458_vm15, %v1191_v59  ;;  %4246 = vmatprep.subr.bf16.mxu0 %v4245_v1  ;;  %v1660_v59 = vld [vmem:[%s6697_s6 + $0x78] sm:$0xff]  ;;  %s4612_s6 = smov 4  }
 0x5ae   :  { %3952 = vmatprep.mubr.msk.f32.mxu1 %vm1458_vm15, %v1194_v3  ;;  %v4257_v3 = vpack.c.bf16 %v1660_v59, %v1659_v34 }
 0x5af   :  { %v1446_v26 = vpop.permute.xlu0 %1445  ;;  %v1451_v42 = vpop.permute.xlu1 %1450 }
 0x5b0   :  { %4248 = vmatpush3.bf16.msra.mxu0 %v4245_v1 }
 0x5b1   :  { %3953 = vmatmul.mubr.msk.f32.gmra.mrb[18].mxu1 %vm1458_vm15, %v1197_v33  ;;  %4250 = vmatprep.subr.bf16.mxu0 %v4249_v4 }
 0x5b2   :  { %2159 = vmatprep.mubr.f32.mxu1 %v1795_v49 }
 0x5b3   :  { %v1456_v41 = vpop.permute.xlu0 %1455 }
 0x5b4   :  { %4252 = vmatpush3.bf16.msra.mxu0 %v4249_v4 }
 0x5b5   :  { %4254 = vmatprep.subr.bf16.mxu0 %v4253_v2 }
 0x5b8   :  { %4256 = vmatpush3.bf16.msra.mxu0 %v4253_v2 }
 0x5b9   :  { %4258 = vmatprep.subr.bf16.mxu0 %v4257_v3 }
 0x5bc   :  { %4260 = vmatpush3.bf16.msra.mxu0 %v4257_v3 }
 0x670   :  { %v3763_v28 = vpop.f32.mrb[8].mxu1 }
 0x671   :  { %v3764_v54 = vpop.f32.mrb[9].mxu1 }
 0x672   :  { %v3765_v62 = vadd.f32 %v3764_v54, %v3763_v28 }
 0x674   :  { %v3766_v39 = vpop.f32.mrb[10].mxu1  ;;  %v1538_v21 = vadd.f32 %v3765_v62, %v1441_v47 }
 0x675   :  { %v3767_v36 = vpop.f32.mrb[11].mxu1 }
 0x676   :  { %v3768_v11 = vadd.f32 %v3767_v36, %v3766_v39 }
 0x678   :  { %v3769_v23 = vpop.f32.mrb[12].mxu1  ;;  %v1543_v37 = vadd.f32 %v3768_v11, %v1446_v26 }
 0x679   :  { %v3770_v63 = vpop.f32.mrb[13].mxu1 }
 0x67a   :  { %v3771_v22 = vadd.f32 %v3770_v63, %v3769_v23 }
 0x67c   :  { %v3772_v31 = vpop.f32.mrb[14].mxu1  ;;  %v1548_v44 = vadd.f32 %v3771_v22, %v1451_v42 }
 0x67d   :  { %v3773_v51 = vpop.f32.mrb[15].mxu1 }
 0x67e   :  { %v3774_v52 = vadd.f32 %v3773_v51, %v3772_v31 }
 0x680   :  { %v3951_v12 = vpop.f32.mrb[16].mxu1  ;;  %v1553_v30 = vadd.f32 %v3774_v52, %v1456_v41 }
 0x681   :  { %v5768_v25 = vadd.f32 %v3951_v12, %v1543_v37  ;;  %v1622_v35 = vpop.f32.mrb[17].mxu1 }
 0x682   :  { %v5770_v15 = vadd.f32 %v1622_v35, %v1538_v21 }
 0x683   :  { %v1642_v43 = vmax.f32 %v5768_v25, 0.0 }
 0x684   :  { %v1641_v27 = vmax.f32 %v5770_v15, 0.0  ;;  %v3954_v38 = vpop.f32.mrb[18].mxu1 }
 0x685   :  { %v5774_v53 = vadd.f32 %v3954_v38, %v1553_v30  ;;  %v1632_v45 = vpop.f32.mrb[19].mxu1 }
 0x686   :  { %v4438_v48 = vpack.i.bf16 %v1642_v43, %v1641_v27  ;;  %v1633_v19 = vadd.f32 %v1632_v45, %v1548_v44 }
 0x687   :  { %v1644_v40 = vmax.f32 %v5774_v53, 0.0 }
 0x688   :  { %v1643_v50 = vmax.f32 %v1633_v19, 0.0  ;;  %4439 = vrot.lane.b32.xlu1 %v4438_v48, %s4598_s4 }
 0x68a   :  { %v4443_v0 = vpack.i.bf16 %v1644_v40, %v1643_v50 }
 0x68c   :  { %4444 = vrot.lane.b32.xlu0 %v4443_v0, %s4598_s4  ;;  %v1808_v0 = vld [vmem:[%s6508_s10 + $0x10] sm:$0xff] }
 0x6fa   :  { %v4440_v33 = vpop.permute.xlu1 %4439 }
 0x6fb   :  { %v4442_v28 = vunpack.i.h.bf16 %v4440_v33  ;;  %v4441_v54 = vunpack.i.l.bf16 %v4440_v33 }
 0x6fd   :  { %v1678_v62 = vsel %vm6698_vm7, %v4442_v28, 0.0  ;;  %v1677_v39 = vsel %vm6699_vm2, %v4441_v54, 0.0  ;;  %vm5929_vm7 = vcmp.lt.s32.totalorder %v1811_v57, 3  ;;  %vm1961_vm2 = vcmask 236544  }
 0x6fe   :  { %v1682_v36 = vmax.f32 %v1642_v43, %v1678_v62  ;;  %v1681_v11 = vmax.f32 %v1641_v27, %v1677_v39  ;;  %v4445_v23 = vpop.permute.xlu0 %4444 }
 0x6ff   :  { %v4447_v63 = vunpack.i.h.bf16 %v4445_v23  ;;  %v4446_v22 = vunpack.i.l.bf16 %v4445_v23 }
 0x700   :  { %v4448_v26 = vpack.i.bf16 %v1682_v36, %v1681_v11 }
 0x701   :  { %v1680_v31 = vsel %vm6700_vm12, %v4447_v63, 0.0  ;;  %v1679_v47 = vsel %vm6701_vm9, %v4446_v22, 0.0  ;;  %vm5945_vm12 = vmand %vm5898_vm10, %vm5929_vm7  ;;  %vm6563_vm9 = vcmask 23552  }
 0x702   :  { %v1684_v51 = vmax.f32 %v1644_v40, %v1680_v31  ;;  %v1683_v52 = vmax.f32 %v1643_v50, %v1679_v47  ;;  %4449 = vrot.lane.b32.xlu1 %v4448_v26, %s6651_s0  ;;  %v1807_v50 = vld [vmem:[%s6508_s10 + $0x8] sm:$0xff] }
 0x704   :  { %v4453_v37 = vpack.i.bf16 %v1684_v51, %v1683_v52 }
 0x706   :  { %4454 = vrot.lane.b32.xlu0 %v4453_v37, %s6651_s0  ;;  %s4611_s0 = smov 5  }
 0x774   :  { %v4450_v12 = vpop.permute.xlu1 %4449 }
 0x775   :  { %v4452_v21 = vunpack.i.h.bf16 %v4450_v12  ;;  %v4451_v25 = vunpack.i.l.bf16 %v4450_v12 }
 0x777   :  { %v1702_v35 = vsel %vm6702_vm8, %v4452_v21, 0.0  ;;  %v1701_v41 = vsel %vm6687_vm5, %v4451_v25, 0.0  ;;  %vm5961_vm8 = vmand %vm5917_vm4, %vm5894_vm13  ;;  %vm6561_vm5 = vcmask 228352  }
 0x778   :  { %v1706_v15 = vmax.f32 %v1682_v36, %v1702_v35  ;;  %v4455_v42 = vpop.permute.xlu0 %4454  ;;  %v1705_v43 = vmax.f32 %v1681_v11, %v1701_v41 }
 0x779   :  { %v4457_v30 = vunpack.i.h.bf16 %v4455_v42  ;;  %v4456_v27 = vunpack.i.l.bf16 %v4455_v42 }
 0x77a   :  { %3987 = vmatprep.mubr.f32.mxu0 %v1705_v43 }
 0x77b   :  { %3988 = vmatmul.mubr.f32.vlgmr.msra.gmra.mrb[16].mxu0 %v1706_v15  ;;  %v1703_v38 = vsel %vm6703_vm14, %v4456_v27, 0.0  ;;  %v1704_v44 = vsel %vm6704_vm1, %v4457_v30, 0.0  ;;  %vm6720_vm14 = vcmask 7168  }
 0x77c   :  { %v1707_v53 = vmax.f32 %v1683_v52, %v1703_v38  ;;  %v1708_v45 = vmax.f32 %v1684_v51, %v1704_v44  ;;  %vm6721_vm1 = vmmov %vm6720_vm14 }
 0x77e   :  { %3990 = vmatprep.mubr.f32.mxu0 %v1707_v53 }
 0x77f   :  { %3991 = vmatmul.mubr.f32.gmra.mrb[18].mxu0 %v1708_v45 }
 0x780   :  { %4001 = vmatprep.mubr.msk.f32.mxu0 %vm1458_vm15, %v1796_v56 }
 0x84e   :  { %v3989_v48 = vpop.f32.mrb[16].mxu0 }
 0x84f   :  { %1921 = vst.msk [vmem:[#allocation2 + $0x220] sm:$0xff] %vm1458_vm15, %v3989_v48  ;;  %1818 = vrot.lane.b32.xlu0 %v3989_v48, %s4611_s0  ;;  %v1775_v19 = vpop.f32.mrb[17].mxu0 }
 0x850   :  { %1920 = vst.msk [vmem:[#allocation2 + $0x200] sm:$0xff] %vm1458_vm15, %v1775_v19  ;;  %1816 = vrot.lane.b32.xlu1 %v1775_v19, %s4611_s0 }
 0x852   :  { %v3992_v32 = vpop.f32.mrb[18].mxu0 }
 0x853   :  { %1923 = vst.msk [vmem:[#allocation2 + $0x260] sm:$0xff] %vm1458_vm15, %v3992_v32  ;;  %1926 = vrot.lane.b32.xlu0 %v3989_v48, %s4598_s4  ;;  %v1785_v18 = vpop.f32.mrb[19].mxu0 }
 0x854   :  { %1922 = vst.msk [vmem:[#allocation2 + $0x240] sm:$0xff] %vm1458_vm15, %v1785_v18  ;;  %1924 = vrot.lane.b32.xlu1 %v1775_v19, %s4598_s4 }
 0x856   :  { %v2044_v29 = vld [vmem:[#allocation2 + $0x220] sm:$0xff] }
 0x857   :  { %1846 = vrot.lane.b32.xlu0 %v3989_v48, %s4612_s6  ;;  %v2043_v40 = vld [vmem:[#allocation2 + $0x200] sm:$0xff] }
 0x858   :  { %1844 = vrot.lane.b32.xlu1 %v1775_v19, %s4612_s6  ;;  %v4261_v17 = vpack.c.bf16 %v2044_v29, %v2043_v40 }
 0x85a   :  { %4262 = vmatprep.subr.bf16.mxu1 %v4261_v17  ;;  %v2046_v63 = vld [vmem:[#allocation2 + $0x260] sm:$0xff] }
 0x85b   :  { %1951 = vrot.lane.b32.xlu0 %v3989_v48, %s4613_s9  ;;  %v2045_v23 = vld [vmem:[#allocation2 + $0x240] sm:$0xff] }
 0x85c   :  { %1949 = vrot.lane.b32.xlu1 %v1775_v19, %s4613_s9  ;;  %v4265_v12 = vpack.c.bf16 %v2046_v63, %v2045_v23 }
 0x85f   :  { %1871 = vrot.lane.b32.xlu0 %v3989_v48, %s6559_s24 }
 0x860   :  { %1869 = vrot.lane.b32.xlu1 %v1775_v19, %s6559_s24 }
 0x863   :  { %1978 = vrot.lane.b32.xlu0 %v3989_v48, %s6555_s1 }
 0x864   :  { %1976 = vrot.lane.b32.xlu1 %v1775_v19, %s6555_s1 }
 0x867   :  { %1898 = vrot.lane.b32.xlu0 %v3989_v48, %s6652_s30 }
 0x868   :  { %1896 = vrot.lane.b32.xlu1 %v1775_v19, %s6652_s30 }
 0x86b   :  { %1822 = vrot.lane.b32.xlu0 %v3992_v32, %s4611_s0 }
 0x86c   :  { %1820 = vrot.lane.b32.xlu1 %v1785_v18, %s4611_s0 }
 0x86f   :  { %1930 = vrot.lane.b32.xlu0 %v3992_v32, %s4598_s4 }
 0x870   :  { %1928 = vrot.lane.b32.xlu1 %v1785_v18, %s4598_s4 }
 0x873   :  { %1850 = vrot.lane.b32.xlu0 %v3992_v32, %s4612_s6 }
 0x874   :  { %1848 = vrot.lane.b32.xlu1 %v1785_v18, %s4612_s6 }
 0x877   :  { %1955 = vrot.lane.b32.xlu0 %v3992_v32, %s4613_s9 }
 0x878   :  { %1953 = vrot.lane.b32.xlu1 %v1785_v18, %s4613_s9 }
 0x87b   :  { %1875 = vrot.lane.b32.xlu0 %v3992_v32, %s6559_s24 }
 0x87c   :  { %1873 = vrot.lane.b32.xlu1 %v1785_v18, %s6559_s24 }
 0x87f   :  { %1982 = vrot.lane.b32.xlu0 %v3992_v32, %s6555_s1 }
 0x880   :  { %1980 = vrot.lane.b32.xlu1 %v1785_v18, %s6555_s1 }
 0x883   :  { %1902 = vrot.lane.b32.xlu0 %v3992_v32, %s6652_s30 }
 0x884   :  { %1900 = vrot.lane.b32.xlu1 %v1785_v18, %s6652_s30 }
 0x887   :  { %2003 = vrot.lane.b32.xlu0 %v3989_v48, %s6557_s8 }
 0x888   :  { %2001 = vrot.lane.b32.xlu1 %v1775_v19, %s6557_s8 }
 0x88b   :  { %2007 = vrot.lane.b32.xlu0 %v3992_v32, %s6557_s8 }
 0x88c   :  { %2005 = vrot.lane.b32.xlu1 %v1785_v18, %s6557_s8 }
 0x88f   :  { %2070 = vperm.xlu0 %4396, %v1807_v50  }
 0x890   :  { %2065 = vperm.xlu1 %4397, %v1806_v6  }
 0x893   :  { %2080 = vperm.xlu0 %4396, %v1809_v13  }
 0x894   :  { %2075 = vperm.xlu1 %4397, %v1808_v0  }
 0x8c1   :  { %v1819_v24 = vpop.permute.xlu0 %1818 }
 0x8c2   :  { %v1830_v10 = vsel %vm1828_vm6, 0.0, %v1819_v24  ;;  %v1817_v7 = vpop.permute.xlu1 %1816 }
 0x8c3   :  { %v1837_v1 = vsel %vm5906_vm0, %v1830_v10, 0.0  ;;  %v1829_v14 = vsel %vm1828_vm6, 0.0, %v1817_v7 }
 0x8c4   :  { %1841 = vst.msk [vmem:[#allocation2 + $0x20] sm:$0xff] %vm1458_vm15, %v1837_v1  ;;  %v1836_v8 = vsel %vm5906_vm0, %v1829_v14, 0.0 }
 0x8c5   :  { %1840 = vst.msk [vmem:[#allocation2] sm:$0xff] %vm1458_vm15, %v1836_v8  ;;  %v1927_v16 = vpop.permute.xlu0 %1926 }
 0x8c6   :  { %v1938_v55 = vsel %vm1936_vm3, %v1927_v16, 0.0  ;;  %v1925_v2 = vpop.permute.xlu1 %1924 }
 0x8c7   :  { %v1942_v34 = vsel %vm5917_vm4, %v1938_v55, 0.0  ;;  %v1937_v59 = vsel %vm1936_vm3, %v1925_v2, 0.0 }
 0x8c8   :  { %1946 = vst.msk [vmem:[#allocation2 + $0x2a0] sm:$0xff] %vm1458_vm15, %v1942_v34  ;;  %v1941_v3 = vsel %vm5917_vm4, %v1937_v59, 0.0 }
 0x8c9   :  { %1945 = vst.msk [vmem:[#allocation2 + $0x280] sm:$0xff] %vm1458_vm15, %v1941_v3  ;;  %v1847_v28 = vpop.permute.xlu0 %1846 }
 0x8ca   :  { %v1858_v54 = vsel %vm1856_vm11, 0.0, %v1847_v28  ;;  %v1845_v62 = vpop.permute.xlu1 %1844 }
 0x8cb   :  { %v1862_v39 = vsel %vm5894_vm13, %v1858_v54, 0.0  ;;  %v1857_v36 = vsel %vm1856_vm11, 0.0, %v1845_v62  ;;  %v2028_v11 = vld [vmem:[#allocation2 + $0x20] sm:$0xff] }
 0x8cc   :  { %1866 = vst.msk [vmem:[#allocation2 + $0xa0] sm:$0xff] %vm1458_vm15, %v1862_v39  ;;  %v1861_v22 = vsel %vm5894_vm13, %v1857_v36, 0.0  ;;  %v2027_v31 = vld [vmem:[#allocation2] sm:$0xff] }
 0x8cd   :  { %1865 = vst.msk [vmem:[#allocation2 + $0x80] sm:$0xff] %vm1458_vm15, %v1861_v22  ;;  %v1952_v47 = vpop.permute.xlu0 %1951  ;;  %v4263_v51 = vpack.c.bf16 %v2028_v11, %v2027_v31 }
 0x8ce   :  { %v1963_v52 = vsel %vm1961_vm2, %v1952_v47, 0.0  ;;  %v1950_v37 = vpop.permute.xlu1 %1949 }
 0x8cf   :  { %v1969_v21 = vsel %vm5945_vm12, %v1963_v52, 0.0  ;;  %v1962_v25 = vsel %vm1961_vm2, %v1950_v37, 0.0  ;;  %4264 = vmatpush3.bf16.msra.mxu1 %v4263_v51  ;;  %v2048_v54 = vld [vmem:[#allocation2 + $0x2a0] sm:$0xff] }
 0x8d0   :  { %1973 = vst.msk [vmem:[#allocation2 + $0x320] sm:$0xff] %vm1458_vm15, %v1969_v21  ;;  %v1968_v35 = vsel %vm5945_vm12, %v1962_v25, 0.0  ;;  %4266 = vmatprep.subr.bf16.mxu1 %v4265_v12  ;;  %v2047_v28 = vld [vmem:[#allocation2 + $0x280] sm:$0xff] }
 0x8d1   :  { %1972 = vst.msk [vmem:[#allocation2 + $0x300] sm:$0xff] %vm1458_vm15, %v1968_v35  ;;  %v1872_v15 = vpop.permute.xlu0 %1871  ;;  %v4269_v22 = vpack.c.bf16 %v2048_v54, %v2047_v28 }
 0x8d2   :  { %v1883_v42 = vsel %vm6563_vm9, 0.0, %v1872_v15  ;;  %v1870_v43 = vpop.permute.xlu1 %1869 }
 0x8d3   :  { %v1889_v30 = vsel %vm5961_vm8, %v1883_v42, 0.0  ;;  %v1882_v27 = vsel %vm6563_vm9, 0.0, %v1870_v43  ;;  %v2032_v47 = vld [vmem:[#allocation2 + $0xa0] sm:$0xff] }
 0x8d4   :  { %1893 = vst.msk [vmem:[#allocation2 + $0x120] sm:$0xff] %vm1458_vm15, %v1889_v30  ;;  %v1888_v38 = vsel %vm5961_vm8, %v1882_v27, 0.0  ;;  %v2031_v31 = vld [vmem:[#allocation2 + $0x80] sm:$0xff] }
 0x8d5   :  { %1892 = vst.msk [vmem:[#allocation2 + $0x100] sm:$0xff] %vm1458_vm15, %v1888_v38  ;;  %v1979_v44 = vpop.permute.xlu0 %1978  ;;  %v4271_v35 = vpack.c.bf16 %v2032_v47, %v2031_v31 }
 0x8d6   :  { %v1990_v53 = vsel %vm6561_vm5, %v1979_v44, 0.0  ;;  %v1977_v45 = vpop.permute.xlu1 %1976 }
 0x8d7   :  { %v1994_v48 = vsel %vm5929_vm7, %v1990_v53, 0.0  ;;  %v1989_v19 = vsel %vm6561_vm5, %v1977_v45, 0.0  ;;  %v2052_v53 = vld [vmem:[#allocation2 + $0x320] sm:$0xff] }
 0x8d8   :  { %1998 = vst.msk [vmem:[#allocation2 + $0x3a0] sm:$0xff] %vm1458_vm15, %v1994_v48  ;;  %v1993_v32 = vsel %vm5929_vm7, %v1989_v19, 0.0  ;;  %v2051_v44 = vld [vmem:[#allocation2 + $0x300] sm:$0xff] }
 0x8d9   :  { %1997 = vst.msk [vmem:[#allocation2 + $0x380] sm:$0xff] %vm1458_vm15, %v1993_v32  ;;  %v1899_v18 = vpop.permute.xlu0 %1898 }
 0x8da   :  { %v1909_v29 = vsel %vm6720_vm14, 0.0, %v1899_v18  ;;  %v1897_v40 = vpop.permute.xlu1 %1896  ;;  %vm6722_vm14 = vmmov %vm6721_vm1 }
 0x8db   :  { %v1913_v17 = vsel %vm5898_vm10, %v1909_v29, 0.0  ;;  %v1908_v49 = vsel %vm6721_vm1, 0.0, %v1897_v40  ;;  %v4277_v40 = vpack.c.bf16 %v2052_v53, %v2051_v44  ;;  %v1798_v53 = vld [vmem:[%s6705_s2 + $0x20] sm:$0xff] }
 0x8dc   :  { %1917 = vst.msk [vmem:[#allocation2 + $0x1a0] sm:$0xff] %vm1458_vm15, %v1913_v17  ;;  %v1912_v50 = vsel %vm5898_vm10, %v1908_v49, 0.0  ;;  %v2035_v17 = vld [vmem:[#allocation2 + $0x100] sm:$0xff] }
 0x8dd   :  { %1916 = vst.msk [vmem:[#allocation2 + $0x180] sm:$0xff] %vm1458_vm15, %v1912_v50  ;;  %v1823_v56 = vpop.permute.xlu0 %1822  ;;  %v2036_v49 = vld [vmem:[#allocation2 + $0x120] sm:$0xff] }
 0x8de   :  { %v1832_v6 = vsel %vm1828_vm6, 0.0, %v1823_v56  ;;  %v1821_v13 = vpop.permute.xlu1 %1820 }
 0x8df   :  { %v1839_v0 = vsel %vm5906_vm0, %v1832_v6, 0.0  ;;  %v1831_v57 = vsel %vm1828_vm6, 0.0, %v1821_v13 }
 0x8e0   :  { %1843 = vst.msk [vmem:[#allocation2 + $0x60] sm:$0xff] %vm1458_vm15, %v1839_v0  ;;  %v1838_v58 = vsel %vm5906_vm0, %v1831_v57, 0.0 }
 0x8e1   :  { %1842 = vst.msk [vmem:[#allocation2 + $0x40] sm:$0xff] %vm1458_vm15, %v1838_v58  ;;  %v1931_v24 = vpop.permute.xlu0 %1930  ;;  %v4279_v58 = vpack.c.bf16 %v2036_v49, %v2035_v17  ;;  %v1799_v17 = vld [vmem:[%s6705_s2 + $0x28] sm:$0xff]  ;;  %v1804_v49 = vld [vmem:[%s6705_s2 + $0x50] sm:$0xff] }
 0x8e2   :  { %v1940_v10 = vsel %vm1936_vm3, %v1931_v24, 0.0  ;;  %v1929_v7 = vpop.permute.xlu1 %1928 }
 0x8e3   :  { %v1944_v1 = vsel %vm5917_vm4, %v1940_v10, 0.0  ;;  %v1939_v14 = vsel %vm1936_vm3, %v1929_v7, 0.0 }
 0x8e4   :  { %1948 = vst.msk [vmem:[#allocation2 + $0x2e0] sm:$0xff] %vm1458_vm15, %v1944_v1  ;;  %v1943_v8 = vsel %vm5917_vm4, %v1939_v14, 0.0 }
 0x8e5   :  { %1947 = vst.msk [vmem:[#allocation2 + $0x2c0] sm:$0xff] %vm1458_vm15, %v1943_v8  ;;  %v1851_v16 = vpop.permute.xlu0 %1850 }
 0x8e6   :  { %v1860_v55 = vsel %vm1856_vm11, 0.0, %v1851_v16  ;;  %v1849_v2 = vpop.permute.xlu1 %1848  ;;  %v2055_v16 = vld [vmem:[#allocation2 + $0x380] sm:$0xff] }
 0x8e7   :  { %v1864_v34 = vsel %vm5894_vm13, %v1860_v55, 0.0  ;;  %v1859_v59 = vsel %vm1856_vm11, 0.0, %v1849_v2  ;;  %v2030_v3 = vld [vmem:[#allocation2 + $0x60] sm:$0xff] }
 0x8e8   :  { %1868 = vst.msk [vmem:[#allocation2 + $0xe0] sm:$0xff] %vm1458_vm15, %v1864_v34  ;;  %v1863_v62 = vsel %vm5894_vm13, %v1859_v59, 0.0  ;;  %v2029_v39 = vld [vmem:[#allocation2 + $0x40] sm:$0xff]  ;;  %v2272_v34 = vld [vmem:[%s6509_s11 + $0x18] sm:$0xff] }
 0x8e9   :  { %1867 = vst.msk [vmem:[#allocation2 + $0xc0] sm:$0xff] %vm1458_vm15, %v1863_v62  ;;  %v1956_v36 = vpop.permute.xlu0 %1955  ;;  %v4267_v11 = vpack.c.bf16 %v2030_v3, %v2029_v39  ;;  %v2056_v55 = vld [vmem:[#allocation2 + $0x3a0] sm:$0xff] }
 0x8ea   :  { %v1965_v23 = vsel %vm1961_vm2, %v1956_v36, 0.0  ;;  %v1954_v63 = vpop.permute.xlu1 %1953  ;;  %v4285_v39 = vpack.c.bf16 %v2056_v55, %v2055_v16  ;;  %v2039_v36 = vld [vmem:[#allocation2 + $0x180] sm:$0xff] }
 0x8eb   :  { %v1971_v51 = vsel %vm5945_vm12, %v1965_v23, 0.0  ;;  %v1964_v52 = vsel %vm1961_vm2, %v1954_v63, 0.0  ;;  %4268 = vmatpush3.bf16.msra.mxu1 %v4267_v11  ;;  %v2050_v37 = vld [vmem:[#allocation2 + $0x2e0] sm:$0xff] }
 0x8ec   :  { %1975 = vst.msk [vmem:[#allocation2 + $0x360] sm:$0xff] %vm1458_vm15, %v1971_v51  ;;  %v1970_v12 = vsel %vm5945_vm12, %v1964_v52, 0.0  ;;  %4270 = vmatprep.subr.bf16.mxu1 %v4269_v22  ;;  %v2049_v21 = vld [vmem:[#allocation2 + $0x2c0] sm:$0xff] }
 0x8ed   :  { %1974 = vst.msk [vmem:[#allocation2 + $0x340] sm:$0xff] %vm1458_vm15, %v1970_v12  ;;  %v1876_v25 = vpop.permute.xlu0 %1875  ;;  %v4273_v15 = vpack.c.bf16 %v2050_v37, %v2049_v21  ;;  %v2040_v11 = vld [vmem:[#allocation2 + $0x1a0] sm:$0xff] }
 0x8ee   :  { %v1885_v42 = vsel %vm6563_vm9, 0.0, %v1876_v25  ;;  %v1874_v43 = vpop.permute.xlu1 %1873  ;;  %v4287_v52 = vpack.c.bf16 %v2040_v11, %v2039_v36 }
 0x8ef   :  { %v1891_v30 = vsel %vm5961_vm8, %v1885_v42, 0.0  ;;  %v1884_v27 = vsel %vm6563_vm9, 0.0, %v1874_v43  ;;  %4272 = vmatpush3.bf16.msra.mxu1 %v4271_v35  ;;  %v2034_v38 = vld [vmem:[#allocation2 + $0xe0] sm:$0xff] }
 0x8f0   :  { %1895 = vst.msk [vmem:[#allocation2 + $0x160] sm:$0xff] %vm1458_vm15, %v1891_v30  ;;  %v1890_v45 = vsel %vm5961_vm8, %v1884_v27, 0.0  ;;  %4274 = vmatprep.subr.bf16.mxu1 %v4273_v15  ;;  %v2033_v48 = vld [vmem:[#allocation2 + $0xc0] sm:$0xff] }
 0x8f1   :  { %1894 = vst.msk [vmem:[#allocation2 + $0x140] sm:$0xff] %vm1458_vm15, %v1890_v45  ;;  %v1983_v19 = vpop.permute.xlu0 %1982  ;;  %v4275_v32 = vpack.c.bf16 %v2034_v38, %v2033_v48  ;;  %v1794_v27 = vld [vmem:[%s6705_s2] sm:$0xff]  ;;  %v1797_v48 = vld [vmem:[%s6705_s2 + $0x18] sm:$0xff] }
 0x8f2   :  { %v1992_v18 = vsel %vm6561_vm5, %v1983_v19, 0.0  ;;  %v1981_v29 = vpop.permute.xlu1 %1980 }
 0x8f3   :  { %v1996_v50 = vsel %vm5929_vm7, %v1992_v18, 0.0  ;;  %v1991_v56 = vsel %vm6561_vm5, %v1981_v29, 0.0  ;;  %4276 = vmatpush3.bf16.msra.mxu1 %v4275_v32  ;;  %v2054_v6 = vld [vmem:[#allocation2 + $0x360] sm:$0xff]  ;;  %vm6562_vm5 = vcmask 220160   ;;  %v1801_v18 = vld [vmem:[%s6705_s2 + $0x38] sm:$0xff] }
 0x8f4   :  { %2000 = vst.msk [vmem:[#allocation2 + $0x3e0] sm:$0xff] %vm1458_vm15, %v1996_v50  ;;  %v1995_v13 = vsel %vm5929_vm7, %v1991_v56, 0.0  ;;  %4278 = vmatprep.subr.bf16.mxu1 %v4277_v40  ;;  %v2053_v0 = vld [vmem:[#allocation2 + $0x340] sm:$0xff]  ;;  %v1800_v40 = vld [vmem:[%s6705_s2 + $0x30] sm:$0xff]  ;;  %v1803_v56 = vld [vmem:[%s6705_s2 + $0x48] sm:$0xff] }
 0x8f5   :  { %1999 = vst.msk [vmem:[#allocation2 + $0x3c0] sm:$0xff] %vm1458_vm15, %v1995_v13  ;;  %v1903_v57 = vpop.permute.xlu0 %1902  ;;  %v4281_v24 = vpack.c.bf16 %v2054_v6, %v2053_v0  ;;  %v1802_v50 = vld [vmem:[%s6705_s2 + $0x40] sm:$0xff]  ;;  %v1805_v6 = vld [vmem:[%s6705_s2 + $0x58] sm:$0xff]  ;;  %s6725_s2 = smov 3  }
 0x8f6   :  { %v1911_v10 = vsel %vm6722_vm14, 0.0, %v1903_v57  ;;  %v1901_v7 = vpop.permute.xlu1 %1900  ;;  %vm6049_vm14 = vmand %vm5917_vm4, %vm5929_vm7 }
 0x8f7   :  { %v1915_v1 = vsel %vm5898_vm10, %v1911_v10, 0.0  ;;  %v1910_v14 = vsel %vm6721_vm1, 0.0, %v1901_v7  ;;  %4280 = vmatpush3.bf16.msra.mxu1 %v4279_v58  ;;  %v2038_v8 = vld [vmem:[#allocation2 + $0x160] sm:$0xff]  ;;  %vm6728_vm1 = vcmask 228352  }
 0x8f8   :  { %1919 = vst.msk [vmem:[#allocation2 + $0x1e0] sm:$0xff] %vm1458_vm15, %v1915_v1  ;;  %v1914_v2 = vsel %vm5898_vm10, %v1910_v14, 0.0  ;;  %4282 = vmatprep.subr.bf16.mxu1 %v4281_v24  ;;  %v2037_v59 = vld [vmem:[#allocation2 + $0x140] sm:$0xff] }
 0x8f9   :  { %1918 = vst.msk [vmem:[#allocation2 + $0x1c0] sm:$0xff] %vm1458_vm15, %v1914_v2  ;;  %v2004_v3 = vpop.permute.xlu0 %2003  ;;  %v4283_v28 = vpack.c.bf16 %v2038_v8, %v2037_v59 }
 0x8fa   :  { %v2015_v54 = vsel %vm6562_vm5, %v2004_v3, 0.0  ;;  %v2002_v62 = vpop.permute.xlu1 %2001 }
 0x8fb   :  { %v2020_v23 = vsel %vm6049_vm14, %v2015_v54, 0.0  ;;  %v2014_v63 = vsel %vm6562_vm5, %v2002_v62, 0.0  ;;  %4284 = vmatpush3.bf16.msra.mxu1 %v4283_v28  ;;  %v2058_v22 = vld [vmem:[#allocation2 + $0x3e0] sm:$0xff] }
 0x8fc   :  { %2024 = vst.msk [vmem:[#allocation2 + $0x420] sm:$0xff] %vm1458_vm15, %v2020_v23  ;;  %v2019_v31 = vsel %vm6049_vm14, %v2014_v63, 0.0  ;;  %4286 = vmatprep.subr.bf16.mxu1 %v4285_v39  ;;  %v2057_v47 = vld [vmem:[#allocation2 + $0x3c0] sm:$0xff] }
 0x8fd   :  { %2023 = vst.msk [vmem:[#allocation2 + $0x400] sm:$0xff] %vm1458_vm15, %v2019_v31  ;;  %v2008_v51 = vpop.permute.xlu0 %2007  ;;  %v4289_v37 = vpack.c.bf16 %v2058_v22, %v2057_v47 }
 0x8fe   :  { %v2017_v12 = vsel %vm6562_vm5, %v2008_v51, 0.0  ;;  %v2006_v21 = vpop.permute.xlu1 %2005 }
 0x8ff   :  { %v2022_v25 = vsel %vm6049_vm14, %v2017_v12, 0.0  ;;  %v2016_v35 = vsel %vm6562_vm5, %v2006_v21, 0.0  ;;  %4288 = vmatpush3.bf16.msra.mxu1 %v4287_v52  ;;  %v2042_v15 = vld [vmem:[#allocation2 + $0x1e0] sm:$0xff]  ;;  %vm6729_vm5 = vmmov %vm6728_vm1 }
 0x900   :  { %2026 = vst.msk [vmem:[#allocation2 + $0x460] sm:$0xff] %vm1458_vm15, %v2022_v25  ;;  %v2021_v42 = vsel %vm6049_vm14, %v2016_v35, 0.0  ;;  %4290 = vmatprep.subr.bf16.mxu1 %v4289_v37  ;;  %v2041_v43 = vld [vmem:[#allocation2 + $0x1c0] sm:$0xff] }
 0x901   :  { %2025 = vst.msk [vmem:[#allocation2 + $0x440] sm:$0xff] %vm1458_vm15, %v2021_v42  ;;  %v4291_v30 = vpack.c.bf16 %v2042_v15, %v2041_v43  ;;  %v2270_v43 = vld [vmem:[%s6509_s11 + $0x8] sm:$0xff] }
 0x903   :  { %4292 = vmatpush3.bf16.msra.mxu1 %v4291_v30  ;;  %v2060_v38 = vld [vmem:[#allocation2 + $0x420] sm:$0xff]  ;;  %v2282_v30 = vld [vmem:[%s6510_s12 + $0x8] sm:$0xff] }
 0x904   :  { %v2059_v44 = vld [vmem:[#allocation2 + $0x400] sm:$0xff] }
 0x905   :  { %v4293_v45 = vpack.c.bf16 %v2060_v38, %v2059_v44  ;;  %v2281_v38 = vld [vmem:[%s6510_s12] sm:$0xff]  ;;  %v2284_v44 = vld [vmem:[%s6510_s12 + $0x18] sm:$0xff] }
 0x906   :  { %2160 = vmatmul.mubr.f32.vlgmr.msra.gmra.mrb[20].mxu1 %v1794_v27  ;;  %v2271_v27 = vld [vmem:[%s6509_s11 + $0x10] sm:$0xff] }
 0x907   :  { %4294 = vmatprep.subr.bf16.mxu0 %v4293_v45  ;;  %2164 = vmatprep.mubr.f32.mxu1 %v1798_v53  ;;  %v2062_v19 = vld [vmem:[#allocation2 + $0x460] sm:$0xff]  ;;  %v2283_v53 = vld [vmem:[%s6510_s12 + $0x10] sm:$0xff] }
 0x908   :  { %4296 = vmatpush3.bf16.msra.mxu0 %v4293_v45  ;;  %v2061_v32 = vld [vmem:[#allocation2 + $0x440] sm:$0xff] }
 0x909   :  { %v4297_v29 = vpack.c.bf16 %v2062_v19, %v2061_v32 }
 0x90a   :  { %2165 = vmatmul.mubr.f32.gmra.mrb[22].mxu1 %v1797_v48 }
 0x90b   :  { %4298 = vmatprep.subr.bf16.mxu0 %v4297_v29  ;;  %2169 = vmatprep.mubr.f32.mxu1 %v1801_v18 }
 0x90c   :  { %4300 = vmatpush3.bf16.msra.mxu0 %v4297_v29 }
 0x90e   :  { %2170 = vmatmul.mubr.f32.gmra.mrb[24].mxu1 %v1800_v40  ;;  %v2071_v1 = vpop.permute.xlu0 %2070 }
 0x90f   :  { %4002 = vmatmul.mubr.msk.f32.vlgmr.msra.gmra.mrb[20].mxu0 %vm1458_vm15, %v1799_v17  ;;  %2174 = vmatprep.mubr.f32.mxu1 %v1804_v49  ;;  %v2066_v24 = vpop.permute.xlu1 %2065 }
 0x910   :  { %4004 = vmatprep.mubr.msk.f32.mxu0 %vm1458_vm15, %v1802_v50 }
 0x912   :  { %2175 = vmatmul.mubr.f32.gmra.mrb[26].mxu1 %v1803_v56  ;;  %v2081_v51 = vpop.permute.xlu0 %2080 }
 0x913   :  { %4005 = vmatmul.mubr.msk.f32.gmra.mrb[22].mxu0 %vm1458_vm15, %v1805_v6  ;;  %v2076_v54 = vpop.permute.xlu1 %2075  ;;  %4015 = vmatprep.mubr.msk.f32.mxu1 %vm1458_vm15, %v2271_v27 }
 0x914   :  { %2617 = vmatprep.mubr.f32.mxu0 %v2270_v43 }
 0x9d9   :  { %v3835_v13 = vpop.f32.mrb[20].mxu1 }
 0x9da   :  { %v3836_v0 = vpop.f32.mrb[21].mxu1 }
 0x9db   :  { %v3837_v57 = vadd.f32 %v3836_v0, %v3835_v13 }
 0x9dd   :  { %v3838_v58 = vpop.f32.mrb[22].mxu1  ;;  %v2162_v2 = vadd.f32 %v3837_v57, %v2066_v24 }
 0x9de   :  { %v3839_v10 = vpop.f32.mrb[23].mxu1 }
 0x9df   :  { %v3840_v7 = vadd.f32 %v3839_v10, %v3838_v58 }
 0x9e1   :  { %v3841_v14 = vpop.f32.mrb[24].mxu1  ;;  %v2167_v8 = vadd.f32 %v3840_v7, %v2071_v1 }
 0x9e2   :  { %v3842_v16 = vpop.f32.mrb[25].mxu1  ;;  %v4003_v55 = vpop.f32.mrb[20].mxu0 }
 0x9e3   :  { %v3843_v59 = vadd.f32 %v3842_v16, %v3841_v14  ;;  %v2252_v3 = vadd.f32 %v4003_v55, %v2167_v8  ;;  %v2246_v28 = vpop.f32.mrb[21].mxu0 }
 0x9e4   :  { %v2247_v62 = vadd.f32 %v2246_v28, %v2162_v2 }
 0x9e5   :  { %v2266_v39 = vmax.f32 %v2252_v3, 0.0  ;;  %v3844_v36 = vpop.f32.mrb[26].mxu1  ;;  %v2172_v11 = vadd.f32 %v3843_v59, %v2076_v54 }
 0x9e6   :  { %v2265_v23 = vmax.f32 %v2247_v62, 0.0  ;;  %v3845_v63 = vpop.f32.mrb[27].mxu1  ;;  %v4006_v22 = vpop.f32.mrb[22].mxu0 }
 0x9e7   :  { %2386 = vst.msk [vmem:[#allocation2 + $0x220] sm:$0xff] %vm1458_vm15, %v2266_v39  ;;  %v3846_v31 = vadd.f32 %v3845_v63, %v3844_v36  ;;  %v2256_v47 = vpop.f32.mrb[23].mxu0  ;;  %2291 = vrot.lane.b32.xlu0 %v2266_v39, %s4611_s0 }
 0x9e8   :  { %2385 = vst.msk [vmem:[#allocation2 + $0x200] sm:$0xff] %vm1458_vm15, %v2265_v23  ;;  %v2257_v52 = vadd.f32 %v2256_v47, %v2172_v11  ;;  %2289 = vrot.lane.b32.xlu1 %v2265_v23, %s4611_s0 }
 0x9e9   :  { %v2177_v37 = vadd.f32 %v3846_v31, %v2081_v51 }
 0x9ea   :  { %v2267_v12 = vmax.f32 %v2257_v52, 0.0 }
 0x9eb   :  { %v2262_v21 = vadd.f32 %v4006_v22, %v2177_v37  ;;  %2391 = vrot.lane.b32.xlu0 %v2266_v39, %s4598_s4 }
 0x9ec   :  { %2387 = vst.msk [vmem:[#allocation2 + $0x240] sm:$0xff] %vm1458_vm15, %v2267_v12  ;;  %2389 = vrot.lane.b32.xlu1 %v2265_v23, %s4598_s4 }
 0x9ed   :  { %v2268_v25 = vmax.f32 %v2262_v21, 0.0 }
 0x9ee   :  { %v2502_v35 = vld [vmem:[#allocation2 + $0x220] sm:$0xff] }
 0x9ef   :  { %2388 = vst.msk [vmem:[#allocation2 + $0x260] sm:$0xff] %vm1458_vm15, %v2268_v25  ;;  %2315 = vrot.lane.b32.xlu0 %v2266_v39, %s4612_s6  ;;  %v2501_v15 = vld [vmem:[#allocation2 + $0x200] sm:$0xff] }
 0x9f0   :  { %2313 = vrot.lane.b32.xlu1 %v2265_v23, %s4612_s6  ;;  %v4301_v42 = vpack.c.bf16 %v2502_v35, %v2501_v15 }
 0x9f2   :  { %4302 = vmatprep.subr.bf16.mxu0 %v4301_v42 }
 0x9f3   :  { %2415 = vrot.lane.b32.xlu0 %v2266_v39, %s4613_s9  ;;  %v2503_v55 = vld [vmem:[#allocation2 + $0x240] sm:$0xff] }
 0x9f4   :  { %2413 = vrot.lane.b32.xlu1 %v2265_v23, %s4613_s9 }
 0x9f6   :  { %v2504_v7 = vld [vmem:[#allocation2 + $0x260] sm:$0xff] }
 0x9f7   :  { %2339 = vrot.lane.b32.xlu0 %v2266_v39, %s6725_s2  ;;  %v4305_v3 = vpack.c.bf16 %v2504_v7, %v2503_v55 }
 0x9f8   :  { %2337 = vrot.lane.b32.xlu1 %v2265_v23, %s6725_s2 }
 0x9fb   :  { %2439 = vrot.lane.b32.xlu0 %v2266_v39, %s6726_s29 }
 0x9fc   :  { %2437 = vrot.lane.b32.xlu1 %v2265_v23, %s6726_s29 }
 0x9ff   :  { %2363 = vrot.lane.b32.xlu0 %v2266_v39, %s6652_s30 }
 0xa00   :  { %2361 = vrot.lane.b32.xlu1 %v2265_v23, %s6652_s30 }
 0xa03   :  { %2295 = vrot.lane.b32.xlu0 %v2268_v25, %s4611_s0 }
 0xa04   :  { %2293 = vrot.lane.b32.xlu1 %v2267_v12, %s4611_s0 }
 0xa07   :  { %2395 = vrot.lane.b32.xlu0 %v2268_v25, %s4598_s4 }
 0xa08   :  { %2393 = vrot.lane.b32.xlu1 %v2267_v12, %s4598_s4 }
 0xa0b   :  { %2319 = vrot.lane.b32.xlu0 %v2268_v25, %s4612_s6 }
 0xa0c   :  { %2317 = vrot.lane.b32.xlu1 %v2267_v12, %s4612_s6  ;;  %s6727_s6 = smov 123  }
 0xa0f   :  { %2419 = vrot.lane.b32.xlu0 %v2268_v25, %s4613_s9 }
 0xa10   :  { %2417 = vrot.lane.b32.xlu1 %v2267_v12, %s4613_s9 }
 0xa13   :  { %2343 = vrot.lane.b32.xlu0 %v2268_v25, %s6725_s2 }
 0xa14   :  { %2341 = vrot.lane.b32.xlu1 %v2267_v12, %s6725_s2 }
 0xa17   :  { %2443 = vrot.lane.b32.xlu0 %v2268_v25, %s6726_s29 }
 0xa18   :  { %2441 = vrot.lane.b32.xlu1 %v2267_v12, %s6726_s29 }
 0xa1b   :  { %2367 = vrot.lane.b32.xlu0 %v2268_v25, %s6652_s30 }
 0xa1c   :  { %2365 = vrot.lane.b32.xlu1 %v2267_v12, %s6652_s30 }
 0xa1f   :  { %2463 = vrot.lane.b32.xlu0 %v2266_v39, %s6727_s6 }
 0xa20   :  { %2461 = vrot.lane.b32.xlu1 %v2265_v23, %s6727_s6 }
 0xa23   :  { %2467 = vrot.lane.b32.xlu0 %v2268_v25, %s6727_s6 }
 0xa24   :  { %2465 = vrot.lane.b32.xlu1 %v2267_v12, %s6727_s6  ;;  %s3606_s6 = sshll.u32 %s4618_s27, 4  ;;  %s3607_s6 = int_to_ptr.vmem [resolvable:$true] %s3606_s6 }
 0xa25   :  { %s4570_s9 = scalar_lea.vmem %s3607_s6, 16  ;;  %p4575_p1 = scmp.lt.s32.totalorder %s3607_s6, %s3607_s6 }
 0xa26   :  { %p4571_p0 = scmp.ne.s32.totalorder %s3607_s6, %s4570_s9 }
 0xa27   :  { %2528 = vperm.xlu0 %4396, %v2282_v30  }
 0xa28   :  { %2523 = vperm.xlu1 %4397, %v2281_v38  }
 0xa2b   :  { %2538 = vperm.xlu0 %4396, %v2284_v44  }
 0xa2c   :  { %2533 = vperm.xlu1 %4397, %v2283_v53  }
 0xa59   :  { %v2292_v45 = vpop.permute.xlu0 %2291 }
 0xa5a   :  { %v2302_v48 = vsel %vm1828_vm6, 0.0, %v2292_v45  ;;  %v2290_v19 = vpop.permute.xlu1 %2289 }
 0xa5b   :  { %v2306_v32 = vsel %vm5906_vm0, %v2302_v48, 0.0  ;;  %v2301_v18 = vsel %vm1828_vm6, 0.0, %v2290_v19 }
 0xa5c   :  { %2310 = vst.msk [vmem:[#allocation2 + $0x20] sm:$0xff] %vm1458_vm15, %v2306_v32  ;;  %v2305_v29 = vsel %vm5906_vm0, %v2301_v18, 0.0 }
 0xa5d   :  { %2309 = vst.msk [vmem:[#allocation2] sm:$0xff] %vm1458_vm15, %v2305_v29  ;;  %v2392_v40 = vpop.permute.xlu0 %2391 }
 0xa5e   :  { %v2402_v17 = vsel %vm1936_vm3, %v2392_v40, 0.0  ;;  %v2390_v49 = vpop.permute.xlu1 %2389 }
 0xa5f   :  { %v2406_v50 = vsel %vm5917_vm4, %v2402_v17, 0.0  ;;  %v2401_v56 = vsel %vm1936_vm3, %v2390_v49, 0.0 }
 0xa60   :  { %2410 = vst.msk [vmem:[#allocation2 + $0x2a0] sm:$0xff] %vm1458_vm15, %v2406_v50  ;;  %v2405_v6 = vsel %vm5917_vm4, %v2401_v56, 0.0 }
 0xa61   :  { %2409 = vst.msk [vmem:[#allocation2 + $0x280] sm:$0xff] %vm1458_vm15, %v2405_v6  ;;  %v2316_v13 = vpop.permute.xlu0 %2315 }
 0xa62   :  { %v2326_v0 = vsel %vm1856_vm11, 0.0, %v2316_v13  ;;  %v2314_v57 = vpop.permute.xlu1 %2313 }
 0xa63   :  { %v2330_v58 = vsel %vm5894_vm13, %v2326_v0, 0.0  ;;  %v2325_v24 = vsel %vm1856_vm11, 0.0, %v2314_v57  ;;  %v2486_v10 = vld [vmem:[#allocation2 + $0x20] sm:$0xff] }
 0xa64   :  { %2334 = vst.msk [vmem:[#allocation2 + $0xa0] sm:$0xff] %vm1458_vm15, %v2330_v58  ;;  %v2329_v1 = vsel %vm5894_vm13, %v2325_v24, 0.0  ;;  %v2485_v14 = vld [vmem:[#allocation2] sm:$0xff] }
 0xa65   :  { %2333 = vst.msk [vmem:[#allocation2 + $0x80] sm:$0xff] %vm1458_vm15, %v2329_v1  ;;  %v2416_v8 = vpop.permute.xlu0 %2415  ;;  %v4303_v16 = vpack.c.bf16 %v2486_v10, %v2485_v14 }
 0xa66   :  { %v2426_v2 = vsel %vm1961_vm2, %v2416_v8, 0.0  ;;  %v2414_v59 = vpop.permute.xlu1 %2413 }
 0xa67   :  { %v2430_v28 = vsel %vm5945_vm12, %v2426_v2, 0.0  ;;  %v2425_v54 = vsel %vm1961_vm2, %v2414_v59, 0.0  ;;  %4304 = vmatpush3.bf16.msra.mxu0 %v4303_v16  ;;  %v2506_v0 = vld [vmem:[#allocation2 + $0x2a0] sm:$0xff] }
 0xa68   :  { %2434 = vst.msk [vmem:[#allocation2 + $0x320] sm:$0xff] %vm1458_vm15, %v2430_v28  ;;  %v2429_v62 = vsel %vm5945_vm12, %v2425_v54, 0.0  ;;  %4306 = vmatprep.subr.bf16.mxu0 %v4305_v3  ;;  %v2505_v13 = vld [vmem:[#allocation2 + $0x280] sm:$0xff] }
 0xa69   :  { %2433 = vst.msk [vmem:[#allocation2 + $0x300] sm:$0xff] %vm1458_vm15, %v2429_v62  ;;  %v2340_v39 = vpop.permute.xlu0 %2339  ;;  %v4309_v1 = vpack.c.bf16 %v2506_v0, %v2505_v13 }
 0xa6a   :  { %v2350_v36 = vsel %vm6563_vm9, 0.0, %v2340_v39  ;;  %v2338_v11 = vpop.permute.xlu1 %2337 }
 0xa6b   :  { %v2354_v23 = vsel %vm5961_vm8, %v2350_v36, 0.0  ;;  %v2349_v63 = vsel %vm6563_vm9, 0.0, %v2338_v11  ;;  %vm6730_vm9 = vcmask 7168   ;;  %v2490_v8 = vld [vmem:[#allocation2 + $0xa0] sm:$0xff] }
 0xa6c   :  { %2358 = vst.msk [vmem:[#allocation2 + $0x120] sm:$0xff] %vm1458_vm15, %v2354_v23  ;;  %v2353_v22 = vsel %vm5961_vm8, %v2349_v63, 0.0  ;;  %v2489_v14 = vld [vmem:[#allocation2 + $0x80] sm:$0xff] }
 0xa6d   :  { %2357 = vst.msk [vmem:[#allocation2 + $0x100] sm:$0xff] %vm1458_vm15, %v2353_v22  ;;  %v2440_v31 = vpop.permute.xlu0 %2439  ;;  %v4311_v28 = vpack.c.bf16 %v2490_v8, %v2489_v14 }
 0xa6e   :  { %v2450_v47 = vsel %vm6728_vm1, %v2440_v31, 0.0  ;;  %v2438_v51 = vpop.permute.xlu1 %2437  ;;  %vm6731_vm1 = vmmov %vm6730_vm9 }
 0xa6f   :  { %v2454_v52 = vsel %vm5929_vm7, %v2450_v47, 0.0  ;;  %v2449_v37 = vsel %vm6729_vm5, %v2438_v51, 0.0  ;;  %v2510_v26 = vld [vmem:[#allocation2 + $0x320] sm:$0xff] }
 0xa70   :  { %2458 = vst.msk [vmem:[#allocation2 + $0x3a0] sm:$0xff] %vm1458_vm15, %v2454_v52  ;;  %v2453_v12 = vsel %vm5929_vm7, %v2449_v37, 0.0  ;;  %v2509_v63 = vld [vmem:[#allocation2 + $0x300] sm:$0xff] }
 0xa71   :  { %2457 = vst.msk [vmem:[#allocation2 + $0x380] sm:$0xff] %vm1458_vm15, %v2453_v12  ;;  %v2364_v21 = vpop.permute.xlu0 %2363  ;;  %v4317_v12 = vpack.c.bf16 %v2510_v26, %v2509_v63  ;;  %v2275_v63 = vld [vmem:[%s6509_s11 + $0x30] sm:$0xff]  ;;  %v2274_v26 = vld [vmem:[%s6509_s11 + $0x28] sm:$0xff] }
 0xa72   :  { %v2374_v25 = vsel %vm6730_vm9, 0.0, %v2364_v21  ;;  %v2362_v35 = vpop.permute.xlu1 %2361 }
 0xa73   :  { %v2378_v15 = vsel %vm5898_vm10, %v2374_v25, 0.0  ;;  %v2373_v42 = vsel %vm6731_vm1, 0.0, %v2362_v35  ;;  %v2494_v25 = vld [vmem:[#allocation2 + $0x120] sm:$0xff] }
 0xa74   :  { %2382 = vst.msk [vmem:[#allocation2 + $0x1a0] sm:$0xff] %vm1458_vm15, %v2378_v15  ;;  %v2377_v43 = vsel %vm5898_vm10, %v2373_v42, 0.0  ;;  %v2493_v21 = vld [vmem:[#allocation2 + $0x100] sm:$0xff] }
 0xa75   :  { %2381 = vst.msk [vmem:[#allocation2 + $0x180] sm:$0xff] %vm1458_vm15, %v2377_v43  ;;  %v2296_v30 = vpop.permute.xlu0 %2295 }
 0xa76   :  { %v2304_v27 = vsel %vm1828_vm6, 0.0, %v2296_v30  ;;  %v2294_v38 = vpop.permute.xlu1 %2293 }
 0xa77   :  { %v2308_v44 = vsel %vm5906_vm0, %v2304_v27, 0.0  ;;  %v2303_v53 = vsel %vm1828_vm6, 0.0, %v2294_v38  ;;  %v4319_v27 = vpack.c.bf16 %v2494_v25, %v2493_v21  ;;  %v2514_v33 = vld [vmem:[#allocation2 + $0x3a0] sm:$0xff] }
 0xa78   :  { %2312 = vst.msk [vmem:[#allocation2 + $0x60] sm:$0xff] %vm1458_vm15, %v2308_v44  ;;  %v2307_v45 = vsel %vm5906_vm0, %v2303_v53, 0.0  ;;  %vm6734_vm0 = vmmov %vm6729_vm5 }
 0xa79   :  { %2311 = vst.msk [vmem:[#allocation2 + $0x40] sm:$0xff] %vm1458_vm15, %v2307_v45  ;;  %v2396_v48 = vpop.permute.xlu0 %2395  ;;  %vm6744_vm5 = vmmov %vm6734_vm0 }
 0xa7a   :  { %v2404_v19 = vsel %vm1936_vm3, %v2396_v48, 0.0  ;;  %v2394_v32 = vpop.permute.xlu1 %2393 }
 0xa7b   :  { %v2408_v18 = vsel %vm5917_vm4, %v2404_v19, 0.0  ;;  %v2403_v29 = vsel %vm1936_vm3, %v2394_v32, 0.0  ;;  %v2513_v32 = vld [vmem:[#allocation2 + $0x380] sm:$0xff] }
 0xa7c   :  { %2412 = vst.msk [vmem:[#allocation2 + $0x2e0] sm:$0xff] %vm1458_vm15, %v2408_v18  ;;  %v2407_v40 = vsel %vm5917_vm4, %v2403_v29, 0.0  ;;  %vm6735_vm4 = vmmov %vm6734_vm0 }
 0xa7d   :  { %2411 = vst.msk [vmem:[#allocation2 + $0x2c0] sm:$0xff] %vm1458_vm15, %v2407_v40  ;;  %v2320_v20 = vpop.permute.xlu0 %2319 }
 0xa7e   :  { %v2328_v17 = vsel %vm1856_vm11, 0.0, %v2320_v20  ;;  %v2318_v49 = vpop.permute.xlu1 %2317 }
 0xa7f   :  { %v2332_v50 = vsel %vm5894_vm13, %v2328_v17, 0.0  ;;  %v2327_v56 = vsel %vm1856_vm11, 0.0, %v2318_v49  ;;  %v2488_v6 = vld [vmem:[#allocation2 + $0x60] sm:$0xff]  ;;  %vm6736_vm11 = vmmov %vm6731_vm1 }
 0xa80   :  { %2336 = vst.msk [vmem:[#allocation2 + $0xe0] sm:$0xff] %vm1458_vm15, %v2332_v50  ;;  %v2331_v4 = vsel %vm5894_vm13, %v2327_v56, 0.0  ;;  %v2487_v57 = vld [vmem:[#allocation2 + $0x40] sm:$0xff]  ;;  %vm6732_vm13 = vcmask 23552   ;;  %v4325_v50 = vpack.c.bf16 %v2514_v33, %v2513_v32 }
 0xa81   :  { %2335 = vst.msk [vmem:[#allocation2 + $0xc0] sm:$0xff] %vm1458_vm15, %v2331_v4  ;;  %v2420_v58 = vpop.permute.xlu0 %2419  ;;  %v4307_v24 = vpack.c.bf16 %v2488_v6, %v2487_v57  ;;  %vm6733_vm6 = vmmov %vm6732_vm13  ;;  %v2497_v56 = vld [vmem:[#allocation2 + $0x180] sm:$0xff] }
 0xa82   :  { %v2428_v10 = vsel %vm1961_vm2, %v2420_v58, 0.0  ;;  %v2418_v7 = vpop.permute.xlu1 %2417  ;;  %v2498_v6 = vld [vmem:[#allocation2 + $0x1a0] sm:$0xff] }
 0xa83   :  { %v2432_v16 = vsel %vm5945_vm12, %v2428_v10, 0.0  ;;  %v2427_v55 = vsel %vm1961_vm2, %v2418_v7, 0.0  ;;  %4308 = vmatpush3.bf16.msra.mxu0 %v4307_v24  ;;  %v2508_v2 = vld [vmem:[#allocation2 + $0x2e0] sm:$0xff]  ;;  %vm6737_vm2 = vmmov %vm6731_vm1  ;;  %v4327_v24 = vpack.c.bf16 %v2498_v6, %v2497_v56  ;;  %vm6746_vm1 = vcmask 64512  }
 0xa84   :  { %2436 = vst.msk [vmem:[#allocation2 + $0x360] sm:$0xff] %vm1458_vm15, %v2432_v16  ;;  %v2431_v60 = vsel %vm5945_vm12, %v2427_v55, 0.0  ;;  %4310 = vmatprep.subr.bf16.mxu0 %v4309_v1  ;;  %v2507_v59 = vld [vmem:[#allocation2 + $0x2c0] sm:$0xff] }
 0xa85   :  { %2435 = vst.msk [vmem:[#allocation2 + $0x340] sm:$0xff] %vm1458_vm15, %v2431_v60  ;;  %v2344_v3 = vpop.permute.xlu0 %2343  ;;  %v4313_v54 = vpack.c.bf16 %v2508_v2, %v2507_v59  ;;  %v2269_v59 = vld [vmem:[%s6509_s11] sm:$0xff] }
 0xa86   :  { %v2352_v62 = vsel %vm6732_vm13, 0.0, %v2344_v3  ;;  %v2342_v39 = vpop.permute.xlu1 %2341  ;;  %vm6747_vm13 = vmmov %vm6746_vm1 }
 0xa87   :  { %v2356_v36 = vsel %vm5961_vm8, %v2352_v62, 0.0  ;;  %v2351_v11 = vsel %vm6733_vm6, 0.0, %v2342_v39  ;;  %4312 = vmatpush3.bf16.msra.mxu0 %v4311_v28  ;;  %v2492_v23 = vld [vmem:[#allocation2 + $0xe0] sm:$0xff]  ;;  %vm6748_vm6 = vmmov %vm6746_vm1 }
 0xa88   :  { %2360 = vst.msk [vmem:[#allocation2 + $0x160] sm:$0xff] %vm1458_vm15, %v2356_v36  ;;  %v2355_v22 = vsel %vm5961_vm8, %v2351_v11, 0.0  ;;  %4314 = vmatprep.subr.bf16.mxu0 %v4313_v54  ;;  %v2491_v31 = vld [vmem:[#allocation2 + $0xc0] sm:$0xff]  ;;  %v2276_v11 = vld [vmem:[%s6509_s11 + $0x38] sm:$0xff]  ;;  %vm6743_vm8 = vmmov %vm6734_vm0 }
 0xa89   :  { %2359 = vst.msk [vmem:[#allocation2 + $0x140] sm:$0xff] %vm1458_vm15, %v2355_v22  ;;  %v2444_v47 = vpop.permute.xlu0 %2443  ;;  %v4315_v51 = vpack.c.bf16 %v2492_v23, %v2491_v31  ;;  %v2273_v54 = vld [vmem:[%s6509_s11 + $0x20] sm:$0xff]  ;;  %v2279_v22 = vld [vmem:[%s6509_s11 + $0x50] sm:$0xff] }
 0xa8a   :  { %v2452_v52 = vsel %vm6734_vm0, %v2444_v47, 0.0  ;;  %v2442_v37 = vpop.permute.xlu1 %2441  ;;  %v2277_v31 = vld [vmem:[%s6509_s11 + $0x40] sm:$0xff]  ;;  %v2278_v47 = vld [vmem:[%s6509_s11 + $0x48] sm:$0xff] }
 0xa8b   :  { %v2456_v35 = vsel %vm5929_vm7, %v2452_v52, 0.0  ;;  %v2451_v15 = vsel %vm6735_vm4, %v2442_v37, 0.0  ;;  %4316 = vmatpush3.bf16.msra.mxu0 %v4315_v51  ;;  %v2512_v41 = vld [vmem:[#allocation2 + $0x360] sm:$0xff]  ;;  %v2280_v51 = vld [vmem:[%s6509_s11 + $0x58] sm:$0xff]  ;;  %vm3107_vm4 = vcmask 15360  }
 0xa8c   :  { %2460 = vst.msk [vmem:[#allocation2 + $0x3e0] sm:$0xff] %vm1458_vm15, %v2456_v35  ;;  %v2455_v42 = vsel %vm5929_vm7, %v2451_v15, 0.0  ;;  %4318 = vmatprep.subr.bf16.mxu0 %v4317_v12  ;;  %v2511_v43 = vld [vmem:[#allocation2 + $0x340] sm:$0xff]  ;;  %vm6738_vm7 = vcmask 220160  }
 0xa8d   :  { %2459 = vst.msk [vmem:[#allocation2 + $0x3c0] sm:$0xff] %vm1458_vm15, %v2455_v42  ;;  %v2368_v30 = vpop.permute.xlu0 %2367  ;;  %v4321_v38 = vpack.c.bf16 %v2512_v41, %v2511_v43  ;;  %vm6739_vm12 = vmmov %vm6738_vm7 }
 0xa8e   :  { %v2376_v44 = vsel %vm6736_vm11, 0.0, %v2368_v30  ;;  %v2366_v53 = vpop.permute.xlu1 %2365  ;;  %vm6741_vm9 = vmmov %vm6738_vm7  ;;  %vm4617_vm11 = vmmov 0  }
 0xa8f   :  { %v2380_v45 = vsel %vm5898_vm10, %v2376_v44, 0.0  ;;  %v2375_v48 = vsel %vm6737_vm2, 0.0, %v2366_v53  ;;  %4320 = vmatpush3.bf16.msra.mxu0 %v4319_v27  ;;  %v2496_v19 = vld [vmem:[#allocation2 + $0x160] sm:$0xff]  ;;  %vm3598_vm2 = vcmask 8192  }
 0xa90   :  { %2384 = vst.msk [vmem:[#allocation2 + $0x1e0] sm:$0xff] %vm1458_vm15, %v2380_v45  ;;  %v2379_v18 = vsel %vm5898_vm10, %v2375_v48, 0.0  ;;  %4322 = vmatprep.subr.bf16.mxu0 %v4321_v38  ;;  %v2495_v29 = vld [vmem:[#allocation2 + $0x140] sm:$0xff]  ;;  %vm6740_vm10 = vmmov %vm6738_vm7 }
 0xa91   :  { %2383 = vst.msk [vmem:[#allocation2 + $0x1c0] sm:$0xff] %vm1458_vm15, %v2379_v18  ;;  %v2464_v40 = vpop.permute.xlu0 %2463  ;;  %v4323_v20 = vpack.c.bf16 %v2496_v19, %v2495_v29 }
 0xa92   :  { %v2474_v17 = vsel %vm6738_vm7, %v2464_v40, 0.0  ;;  %v2462_v49 = vpop.permute.xlu1 %2461 }
 0xa93   :  { %v2478_v13 = vsel %vm6049_vm14, %v2474_v17, 0.0  ;;  %v2473_v0 = vsel %vm6739_vm12, %v2462_v49, 0.0  ;;  %4324 = vmatpush3.bf16.msra.mxu0 %v4323_v20  ;;  %v2516_v61 = vld [vmem:[#allocation2 + $0x3e0] sm:$0xff] }
 0xa94   :  { %2482 = vst.msk [vmem:[#allocation2 + $0x420] sm:$0xff] %vm1458_vm15, %v2478_v13  ;;  %v2477_v4 = vsel %vm6049_vm14, %v2473_v0, 0.0  ;;  %4326 = vmatprep.subr.bf16.mxu0 %v4325_v50  ;;  %v2515_v57 = vld [vmem:[#allocation2 + $0x3c0] sm:$0xff] }
 0xa95   :  { %2481 = vst.msk [vmem:[#allocation2 + $0x400] sm:$0xff] %vm1458_vm15, %v2477_v4  ;;  %v2468_v58 = vpop.permute.xlu0 %2467  ;;  %v4329_v10 = vpack.c.bf16 %v2516_v61, %v2515_v57  ;;  %v2727_v4 = vld [vmem:[%s6511_s13] sm:$0xff]  ;;  %v2728_v57 = vld [vmem:[%s6511_s13 + $0x8] sm:$0xff] }
 0xa96   :  { %v2476_v7 = vsel %vm6740_vm10, %v2468_v58, 0.0  ;;  %v2466_v1 = vpop.permute.xlu1 %2465  ;;  %v4341_v58 = vpack.c.bf16 %v2728_v57, %v2727_v4 }
 0xa97   :  { %v2480_v14 = vsel %vm6049_vm14, %v2476_v7, 0.0  ;;  %v2475_v8 = vsel %vm6741_vm9, %v2466_v1, 0.0  ;;  %4328 = vmatpush3.bf16.msra.mxu0 %v4327_v24  ;;  %v2500_v16 = vld [vmem:[#allocation2 + $0x1e0] sm:$0xff]  ;;  %v2729_v24 = vld [vmem:[%s6511_s13 + $0x10] sm:$0xff] }
 0xa98   :  { %2484 = vst.msk [vmem:[#allocation2 + $0x460] sm:$0xff] %vm1458_vm15, %v2480_v14  ;;  %v2479_v55 = vsel %vm6049_vm14, %v2475_v8, 0.0  ;;  %4330 = vmatprep.subr.bf16.mxu0 %v4329_v10  ;;  %v2499_v2 = vld [vmem:[#allocation2 + $0x1c0] sm:$0xff]  ;;  %v2730_v10 = vld [vmem:[%s6511_s13 + $0x18] sm:$0xff]  ;;  %vm6745_vm14 = vmmov %vm6734_vm0 }
 0xa99   :  { %2483 = vst.msk [vmem:[#allocation2 + $0x440] sm:$0xff] %vm1458_vm15, %v2479_v55  ;;  %v4331_v60 = vpack.c.bf16 %v2500_v16, %v2499_v2  ;;  %v4345_v7 = vpack.c.bf16 %v2730_v10, %v2729_v24  ;;  %v2983_v10 = vld [vmem:[%s6515_s17 + $0x8] sm:$0xff] }
 0xa9b   :  { %4332 = vmatpush3.bf16.msra.mxu0 %v4331_v60  ;;  %v2518_v3 = vld [vmem:[#allocation2 + $0x420] sm:$0xff] }
 0xa9c   :  { %v2517_v28 = vld [vmem:[#allocation2 + $0x400] sm:$0xff] }
 0xa9d   :  { %v4333_v62 = vpack.c.bf16 %v2518_v3, %v2517_v28 }
 0xa9e   :  { %2618 = vmatmul.mubr.f32.vlgmr.msra.gmra.mrb[24].mxu0 %v2269_v59 }
 0xa9f   :  { %4334 = vmatprep.subr.bf16.mxu1 %v4333_v62  ;;  %2622 = vmatprep.mubr.f32.mxu0 %v2273_v54  ;;  %v2520_v39 = vld [vmem:[#allocation2 + $0x460] sm:$0xff] }
 0xaa0   :  { %4336 = vmatpush3.bf16.msra.mxu1 %v4333_v62  ;;  %v2519_v36 = vld [vmem:[#allocation2 + $0x440] sm:$0xff] }
 0xaa1   :  { %v4337_v23 = vpack.c.bf16 %v2520_v39, %v2519_v36  ;;  %v2979_v39 = vld [vmem:[%s6514_s16 + $0x8] sm:$0xff]  ;;  %v2980_v36 = vld [vmem:[%s6514_s16 + $0x10] sm:$0xff] }
 0xaa2   :  { %2623 = vmatmul.mubr.f32.gmra.mrb[26].mxu0 %v2272_v34  ;;  %v2978_v34 = vld [vmem:[%s6514_s16] sm:$0xff] }
 0xaa3   :  { %4338 = vmatprep.subr.bf16.mxu1 %v4337_v23  ;;  %2627 = vmatprep.mubr.f32.mxu0 %v2276_v11  ;;  %v2981_v11 = vld [vmem:[%s6514_s16 + $0x18] sm:$0xff] }
 0xaa4   :  { %4340 = vmatpush3.bf16.msra.mxu1 %v4337_v23 }
 0xaa5   :  { %4342 = vmatprep.subr.bf16.mxu1 %v4341_v58 }
 0xaa6   :  { %2628 = vmatmul.mubr.f32.gmra.mrb[28].mxu0 %v2275_v63  ;;  %v2529_v41 = vpop.permute.xlu0 %2528 }
 0xaa7   :  { %4016 = vmatmul.mubr.msk.f32.vlgmr.msra.gmra.mrb[28].mxu1 %vm1458_vm15, %v2274_v26  ;;  %2632 = vmatprep.mubr.f32.mxu0 %v2279_v22  ;;  %v2524_v25 = vpop.permute.xlu1 %2523 }
 0xaa8   :  { %4018 = vmatprep.mubr.msk.f32.mxu1 %vm1458_vm15, %v2277_v31  ;;  %4344 = vmatpush3.bf16.msra.mxu1 %v4341_v58 }
 0xaa9   :  { %4346 = vmatprep.subr.bf16.mxu1 %v4345_v7 }
 0xaaa   :  { %2633 = vmatmul.mubr.f32.gmra.mrb[30].mxu0 %v2278_v47  ;;  %v2539_v50 = vpop.permute.xlu0 %2538 }
 0xaab   :  { %4019 = vmatmul.mubr.msk.f32.gmra.mrb[30].mxu1 %vm1458_vm15, %v2280_v51  ;;  %v2534_v48 = vpop.permute.xlu1 %2533 }
 0xaac   :  { %4348 = vmatpush3.bf16.msra.mxu1 %v4345_v7  ;;  %v2986_v7 = vld [vmem:[%s6516_s18] sm:$0xff] }
 0xb71   :  { %v3887_v52 = vpop.f32.mrb[24].mxu0 }
 0xb72   :  { %v3888_v37 = vpop.f32.mrb[25].mxu0 }
 0xb73   :  { %v3889_v12 = vadd.f32 %v3888_v37, %v3887_v52 }
 0xb75   :  { %v3890_v21 = vpop.f32.mrb[26].mxu0  ;;  %v2620_v38 = vadd.f32 %v3889_v12, %v2524_v25 }
 0xb76   :  { %v3891_v35 = vpop.f32.mrb[27].mxu0 }
 0xb77   :  { %v3892_v15 = vadd.f32 %v3891_v35, %v3890_v21  ;;  %v2876_v35 = vld [vmem:[%s6512_s14] sm:$0xff] }
 0xb78   :  { %4035 = vmatprep.subr.mxu1 %v2876_v35 }
 0xb79   :  { %v3893_v42 = vpop.f32.mrb[28].mxu0  ;;  %v2625_v43 = vadd.f32 %v3892_v15, %v2529_v41 }
 0xb7a   :  { %v3894_v30 = vpop.f32.mrb[29].mxu0  ;;  %v4017_v27 = vpop.f32.mrb[28].mxu1 }
 0xb7b   :  { %v3895_v44 = vadd.f32 %v3894_v30, %v3893_v42  ;;  %v2710_v53 = vadd.f32 %v4017_v27, %v2625_v43  ;;  %v2704_v45 = vpop.f32.mrb[29].mxu1  ;;  %v2974_v30 = vld [vmem:[%s6513_s15] sm:$0xff] }
 0xb7c   :  { %v2705_v19 = vadd.f32 %v2704_v45, %v2620_v38 }
 0xb7d   :  { %v2724_v32 = vmax.f32 %v2710_v53, 0.0  ;;  %v3896_v33 = vpop.f32.mrb[30].mxu0  ;;  %v2630_v18 = vadd.f32 %v3895_v44, %v2534_v48 }
 0xb7e   :  { %v2723_v29 = vmax.f32 %v2705_v19, 0.0  ;;  %v3897_v40 = vpop.f32.mrb[31].mxu0  ;;  %v4020_v20 = vpop.f32.mrb[30].mxu1  ;;  %v2975_v19 = vld [vmem:[%s6513_s15 + $0x8] sm:$0xff] }
 0xb7f   :  { %v3898_v17 = vadd.f32 %v3897_v40, %v3896_v33  ;;  %v2714_v49 = vpop.f32.mrb[31].mxu1  ;;  %2737 = vrot.lane.b32.xlu0 %v2724_v32, %s4598_s4  ;;  %v2977_v33 = vld [vmem:[%s6513_s15 + $0x18] sm:$0xff] }
 0xb80   :  { %v2715_v56 = vadd.f32 %v2714_v49, %v2630_v18  ;;  %2735 = vrot.lane.b32.xlu1 %v2723_v29, %s4598_s4 }
 0xb81   :  { %v2635_v6 = vadd.f32 %v3898_v17, %v2539_v50 }
 0xb82   :  { %v2725_v13 = vmax.f32 %v2715_v56, 0.0 }
 0xb83   :  { %v2720_v0 = vadd.f32 %v4020_v20, %v2635_v6 }
 0xb84   :  { %2739 = vrot.lane.b32.xlu1 %v2725_v13, %s4598_s4 }
 0xb85   :  { %v2726_v61 = vmax.f32 %v2720_v0, 0.0 }
 0xb87   :  { %2741 = vrot.lane.b32.xlu0 %v2726_v61, %s4598_s4 }
 0xbf1   :  { %v2738_v1 = vpop.permute.xlu0 %2737 }
 0xbf2   :  { %v2748_v14 = vsel %vm1936_vm3, %v2738_v1, 0.0  ;;  %v2736_v8 = vpop.permute.xlu1 %2735  ;;  %v2982_v1 = vld [vmem:[%s6515_s17] sm:$0xff] }
 0xbf3   :  { %v2752_v16 = vmax.f32 %v2724_v32, %v2748_v14  ;;  %v2747_v55 = vsel %vm1936_vm3, %v2736_v8, 0.0  ;;  %v2976_v32 = vld [vmem:[%s6513_s15 + $0x10] sm:$0xff]  ;;  %v2987_v8 = vld [vmem:[%s6516_s18 + $0x8] sm:$0xff]  ;;  %s4574_s15 = scalar_lea.vmem %s3607_s6, 32 }
 0xbf4   :  { %v2751_v2 = vmax.f32 %v2723_v29, %v2747_v55  ;;  %v2984_v14 = vld [vmem:[%s6515_s17 + $0x10] sm:$0xff]  ;;  %p4576_p2 = scmp.lt.s32.totalorder %s4574_s15, %s4570_s9 }
 0xbf5   :  { %2761 = vrot.lane.b32.xlu0 %v2752_v16, %s6726_s29 }
 0xbf6   :  { %2759 = vrot.lane.b32.xlu1 %v2751_v2, %s6726_s29  ;;  %v2740_v60 = vpop.permute.xlu1 %2739  ;;  %p4577_p3 = por %p4576_p2, %p4575_p1 }
 0xbf7   :  { %v2749_v59 = vsel %vm1936_vm3, %v2740_v60, 0.0 }
 0xbf8   :  { %v2753_v3 = vmax.f32 %v2725_v13, %v2749_v59  ;;  %p4578_p4 = pnand %p4577_p3, %p4571_p0 }
 0xbf9   :  { %v2742_v28 = vpop.permute.xlu0 %2741 }
 0xbfa   :  { %v2750_v54 = vsel %vm1936_vm3, %v2742_v28, 0.0  ;;  %2763 = vrot.lane.b32.xlu1 %v2753_v3, %s6726_s29  ;;  %vm6742_vm3 = vmmov %vm6734_vm0 }
 0xbfb   :  { %v2754_v62 = vmax.f32 %v2726_v61, %v2750_v54  ;;  %vm6749_vm0 = vmmov %vm6746_vm1 }
 0xbfd   :  { %2765 = vrot.lane.b32.xlu0 %v2754_v62, %s6726_s29 }
 0xbfe   :  { %2992 = vperm.xlu1 %4397, %v2978_v34  }
 0xc01   :  { %2997 = vperm.xlu0 %4396, %v2979_v39  }
 0xc02   :  { %3002 = vperm.xlu1 %4397, %v2980_v36  }
 0xc05   :  { %3007 = vperm.xlu0 %4396, %v2981_v11  }
 0xc67   :  { %v2762_v23 = vpop.permute.xlu0 %2761 }
 0xc68   :  { %v2772_v63 = vsel %vm6742_vm3, %v2762_v23, 0.0  ;;  %v2760_v26 = vpop.permute.xlu1 %2759 }
 0xc69   :  { %v2771_v22 = vsel %vm6743_vm8, %v2760_v26, 0.0  ;;  %v2776_v47 = vmax.f32 %v2752_v16, %v2772_v63  ;;  %v2985_v16 = vld [vmem:[%s6515_s17 + $0x18] sm:$0xff] }
 0xc6a   :  { %v2775_v31 = vmax.f32 %v2751_v2, %v2771_v22 }
 0xc6c   :  { %4029 = vmatprep.mubr.msk.f32.mxu1 %vm1458_vm15, %v2775_v31  ;;  %v2764_v51 = vpop.permute.xlu1 %2763 }
 0xc6d   :  { %v2773_v52 = vsel %vm6744_vm5, %v2764_v51, 0.0  ;;  %4030 = vmatmul.mubr.msk.f32.vlgmr.msra.gmra.mrb[32].mxu1 %vm1458_vm15, %v2776_v47 }
 0xc6e   :  { %v2777_v37 = vmax.f32 %v2753_v3, %v2773_v52  ;;  %4036 = vmatpush3.msra.mxu1 %v2876_v35  ;;  %v3250_v35 = vld [vmem:[%s6518_s20 + $0x8] sm:$0xff] }
 0xc6f   :  { %v2766_v12 = vpop.permute.xlu0 %2765 }
 0xc70   :  { %v2774_v21 = vsel %vm6745_vm14, %v2766_v12, 0.0  ;;  %4032 = vmatprep.mubr.msk.f32.mxu1 %vm1458_vm15, %v2777_v37  ;;  %v2988_v37 = vld [vmem:[%s6516_s18 + $0x10] sm:$0xff]  ;;  %v3249_v12 = vld [vmem:[%s6518_s20] sm:$0xff] }
 0xc71   :  { %v2778_v25 = vmax.f32 %v2754_v62, %v2774_v21  ;;  %v2989_v21 = vld [vmem:[%s6516_s18 + $0x18] sm:$0xff] }
 0xc73   :  { %4033 = vmatmul.mubr.msk.f32.gmra.mrb[34].mxu1 %vm1458_vm15, %v2778_v25  ;;  %v3251_v25 = vld [vmem:[%s6518_s20 + $0x10] sm:$0xff] }
 0xc7d   :  { %v2993_v29 = vpop.permute.xlu1 %2992 }
 0xc80   :  { %v2998_v18 = vpop.permute.xlu0 %2997 }
 0xc81   :  { %v3003_v0 = vpop.permute.xlu1 %3002 }
 0xc84   :  { %v3008_v56 = vpop.permute.xlu0 %3007 }
 0xd40   :  { %v4031_v15 = vpop.f32.mrb[32].mxu1 }
 0xd41   :  { %v2857_v41 = vpop.f32.mrb[33].mxu1 }
 0xd42   :  { %4037 = vmatprep.mubr.msk.f32.mxu1 %vm6746_vm1, %v2857_v41  ;;  %v3245_v41 = vld [vmem:[%s6517_s19] sm:$0xff] }
 0xd43   :  { %4038 = vmatmul.mubr.msk.f32.vlgmr.msra.gmra.mrb[36].mxu1 %vm6747_vm13, %v4031_v15  ;;  %v3252_v15 = vld [vmem:[%s6518_s20 + $0x18] sm:$0xff]  ;;  %4065 = vmatprep.mubr.msk.f32.mxu0 %vm1458_vm15, %v3245_v41 }
 0xd46   :  { %v4034_v42 = vpop.f32.mrb[34].mxu1 }
 0xd47   :  { %v2867_v43 = vpop.f32.mrb[35].mxu1 }
 0xd48   :  { %4040 = vmatprep.mubr.msk.f32.mxu1 %vm6748_vm6, %v2867_v43 }
 0xd49   :  { %4041 = vmatmul.mubr.msk.f32.gmra.mrb[38].mxu1 %vm6749_vm0, %v4034_v42 }
 0xd4a   :  { %4051 = vmatprep.mubr.msk.f32.mxu1 %vm1458_vm15, %v2974_v30 }
 0xe16   :  { %v4039_v27 = vpop.f32.mrb[36].mxu1 }
 0xe17   :  { %v2955_v38 = vpop.f32.mrb[37].mxu1 }
 0xe18   :  { %v4349_v44 = vpack.c.bf16 %v4039_v27, %v2955_v38 }
 0xe1a   :  { %4350 = vmatprep.subr.bf16.mxu1 %v4349_v44 }
 0xe1b   :  { %4352 = vmatpush3.bf16.msra.mxu1 %v4349_v44 }
 0xe1c   :  { %v4042_v53 = vpop.f32.mrb[38].mxu1 }
 0xe1d   :  { %v2965_v45 = vpop.f32.mrb[39].mxu1 }
 0xe1e   :  { %v4353_v48 = vpack.c.bf16 %v4042_v53, %v2965_v45 }
 0xe20   :  { %4354 = vmatprep.subr.bf16.mxu1 %v4353_v48 }
 0xe21   :  { %4356 = vmatpush3.bf16.msra.mxu1 %v4353_v48 }
 0xe22   :  { %4365 = vmatprep.subr.bf16.mxu1 %v4604_v46 }
 0xe24   :  { %4052 = vmatmul.mubr.msk.f32.vlgmr.msra.gmra.mrb[40].mxu1 %vm1458_vm15, %v2975_v19 }
 0xe25   :  { %4054 = vmatprep.mubr.msk.f32.mxu1 %vm1458_vm15, %v2976_v32 }
 0xe28   :  { %4055 = vmatmul.mubr.msk.f32.gmra.mrb[42].mxu1 %vm1458_vm15, %v2977_v33 }
 0xe29   :  { %4079 = vmatprep.mubr.msk.f32.mxu1 %vm4617_vm11, %v4602_v5 }
 0xef7   :  { %v4053_v40 = vpop.f32.mrb[40].mxu1 }
 0xef8   :  { %v3094_v20 = vadd.f32 %v4053_v40, %v2998_v18  ;;  %v3088_v17 = vpop.f32.mrb[41].mxu1 }
 0xef9   :  { %v3089_v49 = vadd.f32 %v3088_v17, %v2993_v29 }
 0xefa   :  { %v3111_v50 = vsel %vm3107_vm4, %v3094_v20, 0.0 }
 0xefb   :  { %3112 = vadd.xlane.f32.xlu0 %v3111_v50  ;;  %v4056_v6 = vpop.f32.mrb[42].mxu1  ;;  %v3108_v13 = vsel %vm3107_vm4, %v3089_v49, 0.0 }
 0xefc   :  { %v3104_v61 = vadd.f32 %v4056_v6, %v3008_v56  ;;  %v3098_v4 = vpop.f32.mrb[43].mxu1  ;;  %3109 = vadd.xlane.f32.xlu1 %v3108_v13 }
 0xefd   :  { %v3099_v57 = vadd.f32 %v3098_v4, %v3003_v0 }
 0xefe   :  { %v3117_v58 = vsel %vm3107_vm4, %v3104_v61, 0.0 }
 0xeff   :  { %v3114_v24 = vsel %vm3107_vm4, %v3099_v57, 0.0 }
 0xf00   :  { %3118 = vadd.xlane.f32.xlu1 %v3117_v58  ;;  %3115 = vadd.xlane.f32.xlu0 %v3114_v24 }
 0xf11   :  { %3168 = vperm.xlu1 %4397, %v2983_v10  }
 0xf15   :  { %3187 = vperm.xlu1 %4397, %v2986_v7  }
 0xf16   :  { %3163 = vperm.xlu0 %4396, %v2982_v1  }
 0xf19   :  { %3173 = vperm.xlu1 %4397, %v2984_v14  }
 0xf1a   :  { %3192 = vperm.xlu0 %4396, %v2987_v8  }
 0xf1e   :  { %3178 = vperm.xlu0 %4396, %v2985_v16  }
 0xf88   :  { %v3113_v55 = vpop.xlane.xlu0 %3112 }
 0xf89   :  { %v3122_v2 = vmul.f32 0.5, %v3113_v55  ;;  %v3110_v60 = vpop.xlane.xlu1 %3109 }
 0xf8a   :  { %v3121_v59 = vmul.f32 0.5, %v3110_v60 }
 0xf8b   :  { %v3126_v3 = vsub.f32 %v3094_v20, %v3122_v2 }
 0xf8c   :  { %v3125_v28 = vsub.f32 %v3089_v49, %v3121_v59 }
 0xf8d   :  { %v3116_v54 = vpop.xlane.xlu0 %3115  ;;  %v3119_v62 = vpop.xlane.xlu1 %3118  ;;  %v3130_v34 = vmul.f32 %v3126_v3, %v3126_v3 }
 0xf8e   :  { %v3123_v39 = vmul.f32 0.5, %v3116_v54  ;;  %v3124_v36 = vmul.f32 0.5, %v3119_v62  ;;  %v3129_v11 = vmul.f32 %v3125_v28, %v3125_v28 }
 0xf8f   :  { %v3136_v23 = vsel %vm3107_vm4, %v3130_v34, 0.0 }
 0xf90   :  { %v3127_v63 = vsub.f32 %v3099_v57, %v3123_v39  ;;  %v3128_v26 = vsub.f32 %v3104_v61, %v3124_v36  ;;  %3137 = vadd.xlane.f32.xlu1 %v3136_v23  ;;  %v3133_v22 = vsel %vm3107_vm4, %v3129_v11, 0.0 }
 0xf91   :  { %3134 = vadd.xlane.f32.xlu0 %v3133_v22  ;;  %v3169_v42 = vpop.permute.xlu1 %3168 }
 0xf92   :  { %v3131_v31 = vmul.f32 %v3127_v63, %v3127_v63  ;;  %v3132_v47 = vmul.f32 %v3128_v26, %v3128_v26 }
 0xf94   :  { %v3139_v51 = vsel %vm3107_vm4, %v3131_v31, 0.0  ;;  %v3142_v52 = vsel %vm3107_vm4, %v3132_v47, 0.0 }
 0xf95   :  { %3140 = vadd.xlane.f32.xlu0 %v3139_v51  ;;  %3143 = vadd.xlane.f32.xlu1 %v3142_v52  ;;  %v3164_v43 = vpop.permute.xlu0 %3163  ;;  %v3188_v30 = vpop.permute.xlu1 %3187 }
 0xf99   :  { %v3193_v27 = vpop.permute.xlu0 %3192  ;;  %v3174_v38 = vpop.permute.xlu1 %3173 }
 0xf9d   :  { %v3179_v44 = vpop.permute.xlu0 %3178 }
 0xfa6   :  { %3197 = vperm.xlu1 %4397, %v2988_v37  }
 0xfaa   :  { %3263 = vperm.xlu1 %4397, %v3249_v12  }
 0xfab   :  { %3202 = vperm.xlu0 %4396, %v2989_v21  }
 0xfae   :  { %3273 = vperm.xlu1 %4397, %v3251_v25  }
 0xfaf   :  { %3268 = vperm.xlu0 %4396, %v3250_v35  }
 0xfb3   :  { %3278 = vperm.xlu0 %4396, %v3252_v15  }
0x101d   :  { %v3138_v53 = vpop.xlane.xlu1 %3137 }
0x101e   :  { %v3146_v45 = vmul.f32 0.5, %v3138_v53  ;;  %v3135_v48 = vpop.xlane.xlu0 %3134 }
0x101f   :  { %v3145_v19 = vmul.f32 0.5, %v3135_v48 }
0x1020   :  { %v3150_v32 = vadd.f32 1e-05, %v3146_v45 }
0x1021   :  { %v3149_v33 = vadd.f32 1e-05, %v3145_v19 }
0x1022   :  { %4460 = vrsqrt.f32 %v3150_v32  ;;  %v3141_v18 = vpop.xlane.xlu0 %3140  ;;  %v3144_v29 = vpop.xlane.xlu1 %3143 }
0x1023   :  { %4462 = vrsqrt.f32 %v3149_v33  ;;  %v3147_v40 = vmul.f32 0.5, %v3141_v18  ;;  %v3148_v20 = vmul.f32 0.5, %v3144_v29  ;;  %v3246_v29 = vld [vmem:[%s6517_s19 + $0x8] sm:$0xff] }
0x1025   :  { %v3151_v17 = vadd.f32 1e-05, %v3147_v40  ;;  %v3152_v49 = vadd.f32 1e-05, %v3148_v20  ;;  %v3247_v40 = vld [vmem:[%s6517_s19 + $0x10] sm:$0xff]  ;;  %v3248_v20 = vld [vmem:[%s6517_s19 + $0x18] sm:$0xff] }
0x1026   :  { %v3198_v16 = vpop.permute.xlu1 %3197 }
0x1027   :  { %4464 = vrsqrt.f32 %v3151_v17 }
0x1028   :  { %4466 = vrsqrt.f32 %v3152_v49 }
0x102a   :  { %v3203_v59 = vpop.permute.xlu0 %3202  ;;  %v3264_v49 = vpop.permute.xlu1 %3263 }
0x102c   :  { %v4461_v50 = vpop.eup %4460 }
0x102d   :  { %v4463_v56 = vpop.eup %4462  ;;  %v3158_v6 = vmul.f32 %v4461_v50, %v3126_v3 }
0x102e   :  { %v3157_v13 = vmul.f32 %v4463_v56, %v3125_v28  ;;  %v3269_v17 = vpop.permute.xlu0 %3268 }
0x102f   :  { %v3182_v0 = vmul.f32 %v3169_v42, %v3158_v6 }
0x1030   :  { %v3181_v61 = vmul.f32 %v3164_v43, %v3157_v13 }
0x1031   :  { %v4465_v4 = vpop.eup %4464  ;;  %v3206_v57 = vadd.f32 %v3193_v27, %v3182_v0 }
0x1032   :  { %v4467_v58 = vpop.eup %4466  ;;  %v3205_v24 = vadd.f32 %v3188_v30, %v3181_v61  ;;  %v3159_v10 = vmul.f32 %v4465_v4, %v3127_v63  ;;  %v3279_v61 = vpop.permute.xlu0 %3278 }
0x1033   :  { %v3160_v7 = vmul.f32 %v4467_v58, %v3128_v26  ;;  %v3214_v1 = vmul.f32 0.044715, %v3206_v57  ;;  %v3210_v35 = vmul.f32 0.5, %v3206_v57  ;;  %v3274_v58 = vpop.permute.xlu1 %3273 }
0x1034   :  { %v3183_v14 = vmul.f32 %v3174_v38, %v3159_v10  ;;  %v3213_v8 = vmul.f32 0.044715, %v3205_v24  ;;  %v3209_v41 = vmul.f32 0.5, %v3205_v24 }
0x1035   :  { %v3184_v55 = vmul.f32 %v3179_v44, %v3160_v7  ;;  %v3218_v2 = vmul.f32 %v3214_v1, %v3206_v57 }
0x1036   :  { %v3207_v60 = vadd.f32 %v3198_v16, %v3183_v14  ;;  %v3217_v54 = vmul.f32 %v3213_v8, %v3205_v24  ;;  %v3254_v8 = vld [vmem:[%s6519_s21 + $0x8] sm:$0xff]  ;;  %v3257_v16 = vld [vmem:[%s6520_s22] sm:$0xff] }
0x1037   :  { %v3208_v62 = vadd.f32 %v3203_v59, %v3184_v55  ;;  %v3222_v3 = vmul.f32 %v3218_v2, %v3206_v57  ;;  %v3253_v55 = vld [vmem:[%s6519_s21] sm:$0xff]  ;;  %v3255_v2 = vld [vmem:[%s6519_s21 + $0x10] sm:$0xff]  ;;  %v3256_v59 = vld [vmem:[%s6519_s21 + $0x18] sm:$0xff] }
0x1038   :  { %v3215_v28 = vmul.f32 0.044715, %v3207_v60  ;;  %v3221_v34 = vmul.f32 %v3217_v54, %v3205_v24  ;;  %v3211_v53 = vmul.f32 0.5, %v3207_v60 }
0x1039   :  { %v3216_v39 = vmul.f32 0.044715, %v3208_v62  ;;  %v3226_v36 = vadd.f32 %v3222_v3, %v3206_v57  ;;  %v3212_v48 = vmul.f32 0.5, %v3208_v62 }
0x103a   :  { %v3219_v11 = vmul.f32 %v3215_v28, %v3207_v60  ;;  %v3225_v23 = vadd.f32 %v3221_v34, %v3205_v24 }
0x103b   :  { %v3220_v22 = vmul.f32 %v3216_v39, %v3208_v62  ;;  %v3230_v63 = vmul.f32 0.7978846, %v3226_v36 }
0x103c   :  { %v3223_v26 = vmul.f32 %v3219_v11, %v3207_v60  ;;  %v3229_v31 = vmul.f32 0.7978846, %v3225_v23 }
0x103d   :  { %v3224_v47 = vmul.f32 %v3220_v22, %v3208_v62  ;;  %4468 = vtanh.f32 %v3230_v63 }
0x103e   :  { %4470 = vtanh.f32 %v3229_v31  ;;  %v3227_v51 = vadd.f32 %v3223_v26, %v3207_v60  ;;  %v3258_v60 = vld [vmem:[%s6520_s22 + $0x8] sm:$0xff] }
0x103f   :  { %v3228_v52 = vadd.f32 %v3224_v47, %v3208_v62 }
0x1040   :  { %v3231_v37 = vmul.f32 0.7978846, %v3227_v51 }
0x1041   :  { %v3232_v12 = vmul.f32 0.7978846, %v3228_v52 }
0x1042   :  { %4472 = vtanh.f32 %v3231_v37 }
0x1043   :  { %4474 = vtanh.f32 %v3232_v12 }
0x1047   :  { %v4469_v21 = vpop.eup %4468 }
0x1048   :  { %v4471_v25 = vpop.eup %4470  ;;  %v3238_v15 = vadd.f32 1.0, %v4469_v21 }
0x1049   :  { %v3237_v42 = vadd.f32 1.0, %v4471_v25 }
0x104a   :  { %v3242_v43 = vmul.f32 %v3238_v15, %v3210_v35  ;;  %v3259_v35 = vld [vmem:[%s6520_s22 + $0x10] sm:$0xff]  ;;  %v3515_v15 = vld [vmem:[#allocation3] sm:$0x1] }
0x104b   :  { %v3241_v30 = vmul.f32 %v3237_v42, %v3209_v41  ;;  %v3260_v41 = vld [vmem:[%s6520_s22 + $0x18] sm:$0xff] }
0x104c   :  { %v4473_v27 = vpop.eup %4472 }
0x104d   :  { %v4475_v38 = vpop.eup %4474  ;;  %v4357_v44 = vpack.c.bf16 %v3242_v43, %v3241_v30  ;;  %v3239_v45 = vadd.f32 1.0, %v4473_v27 }
0x104e   :  { %v3240_v19 = vadd.f32 1.0, %v4475_v38 }
0x104f   :  { %4358 = vmatprep.subr.bf16.mxu0 %v4357_v44  ;;  %v3243_v32 = vmul.f32 %v3239_v45, %v3211_v53 }
0x1050   :  { %4360 = vmatpush3.bf16.msra.mxu0 %v4357_v44  ;;  %v3244_v33 = vmul.f32 %v3240_v19, %v3212_v48 }
0x1052   :  { %v4361_v18 = vpack.c.bf16 %v3244_v33, %v3243_v32 }
0x1054   :  { %4362 = vmatprep.subr.bf16.mxu0 %v4361_v18 }
0x1055   :  { %4364 = vmatpush3.bf16.msra.mxu0 %v4361_v18 }
0x1058   :  { %4066 = vmatmul.mubr.msk.f32.vlgmr.msra.gmra.mrb[32].mxu0 %vm1458_vm15, %v3246_v29 }
0x1059   :  { %4068 = vmatprep.mubr.msk.f32.mxu0 %vm1458_vm15, %v3247_v40 }
0x105c   :  { %4069 = vmatmul.mubr.msk.f32.gmra.mrb[34].mxu0 %vm1458_vm15, %v3248_v20 }
0x112b   :  { %v4067_v50 = vpop.f32.mrb[32].mxu0 }
0x112c   :  { %v3365_v56 = vadd.f32 %v4067_v50, %v3269_v17  ;;  %v3359_v6 = vpop.f32.mrb[33].mxu0 }
0x112d   :  { %v3360_v13 = vadd.f32 %v3359_v6, %v3264_v49 }
0x112e   :  { %v3381_v0 = vsel %vm3107_vm4, %v3365_v56, 0.0 }
0x112f   :  { %3382 = vadd.xlane.f32.xlu0 %v3381_v0  ;;  %v4070_v4 = vpop.f32.mrb[34].mxu0  ;;  %v3378_v57 = vsel %vm3107_vm4, %v3360_v13, 0.0 }
0x1130   :  { %v3375_v24 = vadd.f32 %v4070_v4, %v3279_v61  ;;  %v3369_v10 = vpop.f32.mrb[35].mxu0  ;;  %3379 = vadd.xlane.f32.xlu1 %v3378_v57 }
0x1131   :  { %v3370_v7 = vadd.f32 %v3369_v10, %v3274_v58 }
0x1132   :  { %v3387_v1 = vsel %vm3107_vm4, %v3375_v24, 0.0 }
0x1133   :  { %v3384_v14 = vsel %vm3107_vm4, %v3370_v7, 0.0 }
0x1134   :  { %3388 = vadd.xlane.f32.xlu1 %v3387_v1  ;;  %3385 = vadd.xlane.f32.xlu0 %v3384_v14 }
0x1145   :  { %3437 = vperm.xlu1 %4397, %v3254_v8  }
0x1149   :  { %3456 = vperm.xlu1 %4397, %v3257_v16  }
0x114a   :  { %3432 = vperm.xlu0 %4396, %v3253_v55  }
0x114d   :  { %3442 = vperm.xlu1 %4397, %v3255_v2  }
0x114e   :  { %3461 = vperm.xlu0 %4396, %v3258_v60  }
0x1152   :  { %3447 = vperm.xlu0 %4396, %v3256_v59  }
0x11bc   :  { %v3383_v54 = vpop.xlane.xlu0 %3382 }
0x11bd   :  { %v3391_v62 = vmul.f32 0.5, %v3383_v54  ;;  %v3380_v3 = vpop.xlane.xlu1 %3379 }
0x11be   :  { %v3390_v28 = vmul.f32 0.5, %v3380_v3 }
0x11bf   :  { %v3395_v34 = vsub.f32 %v3365_v56, %v3391_v62 }
0x11c0   :  { %v3394_v39 = vsub.f32 %v3360_v13, %v3390_v28 }
0x11c1   :  { %v3386_v36 = vpop.xlane.xlu0 %3385  ;;  %v3389_v11 = vpop.xlane.xlu1 %3388  ;;  %v3399_v23 = vmul.f32 %v3395_v34, %v3395_v34 }
0x11c2   :  { %v3392_v22 = vmul.f32 0.5, %v3386_v36  ;;  %v3393_v63 = vmul.f32 0.5, %v3389_v11  ;;  %v3398_v26 = vmul.f32 %v3394_v39, %v3394_v39 }
0x11c3   :  { %v3405_v31 = vsel %vm3107_vm4, %v3399_v23, 0.0 }
0x11c4   :  { %v3396_v47 = vsub.f32 %v3370_v7, %v3392_v22  ;;  %v3397_v51 = vsub.f32 %v3375_v24, %v3393_v63  ;;  %3406 = vadd.xlane.f32.xlu1 %v3405_v31  ;;  %v3402_v52 = vsel %vm3107_vm4, %v3398_v26, 0.0 }
0x11c5   :  { %3403 = vadd.xlane.f32.xlu0 %v3402_v52  ;;  %v3438_v42 = vpop.permute.xlu1 %3437 }
0x11c6   :  { %v3400_v37 = vmul.f32 %v3396_v47, %v3396_v47  ;;  %v3401_v12 = vmul.f32 %v3397_v51, %v3397_v51 }
0x11c8   :  { %v3408_v21 = vsel %vm3107_vm4, %v3400_v37, 0.0  ;;  %v3411_v25 = vsel %vm3107_vm4, %v3401_v12, 0.0 }
0x11c9   :  { %3409 = vadd.xlane.f32.xlu0 %v3408_v21  ;;  %3412 = vadd.xlane.f32.xlu1 %v3411_v25  ;;  %v3433_v43 = vpop.permute.xlu0 %3432  ;;  %v3457_v30 = vpop.permute.xlu1 %3456 }
0x11cd   :  { %v3462_v27 = vpop.permute.xlu0 %3461  ;;  %v3443_v38 = vpop.permute.xlu1 %3442 }
0x11d1   :  { %v3448_v44 = vpop.permute.xlu0 %3447 }
0x11da   :  { %3466 = vperm.xlu1 %4397, %v3259_v35  }
0x11de   :  { %3518 = vperm.xlu1 %4397, %v3515_v15  }
0x11df   :  { %3471 = vperm.xlu0 %4396, %v3260_v41  }
0x1251   :  { %v3407_v53 = vpop.xlane.xlu1 %3406 }
0x1252   :  { %v3415_v45 = vmul.f32 0.5, %v3407_v53  ;;  %v3404_v48 = vpop.xlane.xlu0 %3403 }
0x1253   :  { %v3414_v19 = vmul.f32 0.5, %v3404_v48 }
0x1254   :  { %v3419_v32 = vadd.f32 1e-05, %v3415_v45 }
0x1255   :  { %v3418_v33 = vadd.f32 1e-05, %v3414_v19 }
0x1256   :  { %4476 = vrsqrt.f32 %v3419_v32  ;;  %v3410_v18 = vpop.xlane.xlu0 %3409  ;;  %v3413_v29 = vpop.xlane.xlu1 %3412 }
0x1257   :  { %4478 = vrsqrt.f32 %v3418_v33  ;;  %v3416_v40 = vmul.f32 0.5, %v3410_v18  ;;  %v3417_v20 = vmul.f32 0.5, %v3413_v29  ;;  %v3514_v18 = vld [vmem:[%s6521_s23] sm:$0x1]  ;;  %v3522_v29 = vshrl.u32 %v89_v9, 7 }
0x1259   :  { %v3420_v17 = vadd.f32 1e-05, %v3416_v40  ;;  %v3421_v5 = vadd.f32 1e-05, %v3417_v20  ;;  %v3523_v40 = vsub.s32 0, %v3522_v29 }
0x125a   :  { %v3467_v8 = vpop.permute.xlu1 %3466 }
0x125b   :  { %4480 = vrsqrt.f32 %v3420_v17 }
0x125c   :  { %4482 = vrsqrt.f32 %v3421_v5 }
0x125e   :  { %v3472_v60 = vpop.permute.xlu0 %3471  ;;  %v3519_v20 = vpop.permute.xlu1 %3518 }
0x125f   :  { %v3524_v17 = vrot.slane %v3519_v20, %v3523_v40 }
0x1260   :  { %v4477_v49 = vpop.eup %4476 }
0x1261   :  { %v4479_v50 = vpop.eup %4478  ;;  %v3427_v56 = vmul.f32 %v4477_v49, %v3395_v34 }
0x1262   :  { %v3426_v6 = vmul.f32 %v4479_v50, %v3394_v39 }
0x1263   :  { %v3451_v13 = vmul.f32 %v3438_v42, %v3427_v56 }
0x1264   :  { %v3450_v0 = vmul.f32 %v3433_v43, %v3426_v6 }
0x1265   :  { %v4481_v61 = vpop.eup %4480  ;;  %v3475_v4 = vadd.f32 %v3462_v27, %v3451_v13 }
0x1266   :  { %v4483_v57 = vpop.eup %4482  ;;  %v3474_v58 = vadd.f32 %v3457_v30, %v3450_v0  ;;  %v3428_v24 = vmul.f32 %v4481_v61, %v3396_v47 }
0x1267   :  { %v3429_v10 = vmul.f32 %v4483_v57, %v3397_v51  ;;  %v3483_v7 = vmul.f32 0.044715, %v3475_v4  ;;  %v3479_v25 = vmul.f32 0.5, %v3475_v4 }
0x1268   :  { %v3452_v1 = vmul.f32 %v3443_v38, %v3428_v24  ;;  %v3482_v14 = vmul.f32 0.044715, %v3474_v58  ;;  %v3478_v15 = vmul.f32 0.5, %v3474_v58 }
0x1269   :  { %v3453_v16 = vmul.f32 %v3448_v44, %v3429_v10  ;;  %v3487_v55 = vmul.f32 %v3483_v7, %v3475_v4 }
0x126a   :  { %v3476_v2 = vadd.f32 %v3467_v8, %v3452_v1  ;;  %v3486_v59 = vmul.f32 %v3482_v14, %v3474_v58 }
0x126b   :  { %v3477_v54 = vadd.f32 %v3472_v60, %v3453_v16  ;;  %v3491_v62 = vmul.f32 %v3487_v55, %v3475_v4 }
0x126c   :  { %v3484_v3 = vmul.f32 0.044715, %v3476_v2  ;;  %v3490_v28 = vmul.f32 %v3486_v59, %v3474_v58  ;;  %v3480_v44 = vmul.f32 0.5, %v3476_v2 }
0x126d   :  { %v3485_v34 = vmul.f32 0.044715, %v3477_v54  ;;  %v3495_v39 = vadd.f32 %v3491_v62, %v3475_v4  ;;  %v3481_v45 = vmul.f32 0.5, %v3477_v54 }
0x126e   :  { %v3488_v36 = vmul.f32 %v3484_v3, %v3476_v2  ;;  %v3494_v11 = vadd.f32 %v3490_v28, %v3474_v58 }
0x126f   :  { %v3489_v23 = vmul.f32 %v3485_v34, %v3477_v54  ;;  %v3499_v22 = vmul.f32 0.7978846, %v3495_v39 }
0x1270   :  { %v3492_v63 = vmul.f32 %v3488_v36, %v3476_v2  ;;  %v3498_v26 = vmul.f32 0.7978846, %v3494_v11 }
0x1271   :  { %v3493_v31 = vmul.f32 %v3489_v23, %v3477_v54  ;;  %4484 = vtanh.f32 %v3499_v22 }
0x1272   :  { %v3496_v47 = vadd.f32 %v3492_v63, %v3476_v2  ;;  %4486 = vtanh.f32 %v3498_v26 }
0x1273   :  { %v3497_v51 = vadd.f32 %v3493_v31, %v3477_v54 }
0x1274   :  { %v3500_v52 = vmul.f32 0.7978846, %v3496_v47 }
0x1275   :  { %v3501_v37 = vmul.f32 0.7978846, %v3497_v51 }
0x1276   :  { %4488 = vtanh.f32 %v3500_v52 }
0x1277   :  { %4490 = vtanh.f32 %v3501_v37 }
0x127b   :  { %v4485_v12 = vpop.eup %4484 }
0x127c   :  { %v4487_v21 = vpop.eup %4486  ;;  %v3507_v35 = vadd.f32 1.0, %v4485_v12 }
0x127d   :  { %v3506_v41 = vadd.f32 1.0, %v4487_v21 }
0x127e   :  { %v3511_v42 = vmul.f32 %v3507_v35, %v3479_v25 }
0x127f   :  { %v3510_v43 = vmul.f32 %v3506_v41, %v3478_v15 }
0x1280   :  { %v4489_v30 = vpop.eup %4488 }
0x1281   :  { %v4491_v27 = vpop.eup %4490  ;;  %v4366_v38 = vpack.c.bf16 %v3511_v42, %v3510_v43  ;;  %v3508_v53 = vadd.f32 1.0, %v4489_v30 }
0x1282   :  { %v3509_v48 = vadd.f32 1.0, %v4491_v27 }
0x1283   :  { %4367 = vmatpush3.bf16.msra.mxu1 %v4366_v38  ;;  %v3512_v19 = vmul.f32 %v3508_v53, %v3480_v44 }
0x1284   :  { %4368 = vmatprep.subr.bf16.mxu1 %v4604_v46  ;;  %v3513_v32 = vmul.f32 %v3509_v48, %v3481_v45 }
0x1286   :  { %v4369_v33 = vpack.c.bf16 %v3513_v32, %v3512_v19 }
0x1288   :  { %4370 = vmatpush3.bf16.msra.mxu1 %v4369_v33 }
0x128b   :  { %4080 = vmatmul.mubr.msk.f32.vlgmr.msra.gmra.mrb[44].mxu1 %vm1458_vm15, %v3514_v18 }
0x135e   :  { %v3594_v5 = vpop.f32.mrb[44].mxu1 }
0x135f   :  { %v3595_v49 = vadd.f32 %v3594_v5, %v3524_v17  ;;  %v4081_v46 = vpop.f32.mrb[45].mxu1 }
0x1361   :  { %3599 = vst.msk [vmem:[#allocation4] sm:$0x1] %vm3598_vm2, %v3595_v49 }
0x1362   :  { %4581 = shalt.err (!%p4578_p4)
}
0x1363   :  { %s4582_s18 = scalar_lea.hbm %s6523_s25, 16 }
0x1364   :  { %p4583_p5 = scmp.ne.s32.totalorder %s6523_s25, %s4582_s18  ;;  %p4586_p6 = scmp.lt.u32.totalorder %s4582_s18, %s6523_s25 }
0x1366   :  { %p4588_p7 = pnand %p4586_p6, %p4583_p5 }
0x1368   :  { %4591 = shalt.err (!%p4588_p7)
}
0x1369   :  { %3609 = dma.vmem_to_hbm [thread:$0]  %s3607_s6, 16, %s6523_s25, [#allocation5]  }
0x136a   :  { %4592 = dma.done.wait [#allocation5], 16  }
0x136b   :  { %4593 = vsyncadd [#allocation5], 4294967280 }
0x136c   :  { %3613 = vsyncpa [#allocation5], 1 }

</bundles_post_ra>
